<compile_context>
chip_gen: v6e
topology: v6e:2x2x1
jax: 0.10.0
libtpu: 0.0.40
codegen_flags: <defaults>
</compile_context>

<pallas_src>
import jax
import jax.numpy as jnp
from jax.experimental import pallas as pl
from jax.experimental.pallas import tpu as pltpu


# ----------------------------------------------------------------------------
# Fused kernel: 2-layer BiLSTM -> FC -> CRF Viterbi decode (single grid step).
# ----------------------------------------------------------------------------
def _make_fused_kernel(T, B, H, start_id):

    def lstm_cell(gx_t, h_prev, c_prev, whh):
        # gx_t: (B, 4H) precomputed input gates [i|f|g|o]; whh: (H, 4H) with
        # the same gate-column order, so ONE 128-lane dot covers all gates.
        gates = gx_t + jnp.dot(h_prev, whh, preferred_element_type=jnp.float32)
        i_g = jax.nn.sigmoid(gates[:, 0 * H:1 * H])
        f_g = jax.nn.sigmoid(gates[:, 1 * H:2 * H])
        g_g = jnp.tanh(gates[:, 2 * H:3 * H])
        o_g = jax.nn.sigmoid(gates[:, 3 * H:4 * H])
        c_new = f_g * c_prev + i_g * g_g
        h_new = o_g * jnp.tanh(c_new)
        return h_new, c_new

    def bilstm(gx, whh_f, whh_b):
        # gx: (T*B, 8H); fwd gates in lanes [0, 4H), bwd gates in [4H, 8H).
        # whh_f / whh_b are values (loaded once by the caller), reused every t.
        zero = jnp.zeros((B, H), jnp.float32)
        h_f, c_f, h_b, c_b = zero, zero, zero, zero
        hf = [None] * T
        hb = [None] * T
        # TODO(synk): for production T, switch to lax.fori_loop(unroll=k)
        # carrying (h_f, c_f, h_b, c_b) and stage gx through a tiled pipeline.
        for t in range(T):
            tr = T - 1 - t                          # backward-direction time
            h_f, c_f = lstm_cell(gx[t * B:(t + 1) * B, 0:4 * H],
                                 h_f, c_f, whh_f)
            h_b, c_b = lstm_cell(gx[tr * B:(tr + 1) * B, 4 * H:8 * H],
                                 h_b, c_b, whh_b)
            hf[t] = h_f
            hb[tr] = h_b
        # One lane-dense (T*B, 2H) value [h_fwd | h_bwd] in time order.
        return jnp.concatenate(
            [jnp.concatenate([hf[t], hb[t]], axis=1) for t in range(T)],
            axis=0)

    def kernel(x_ref, wih1_ref, b1_ref, whh1f_ref, whh1b_ref,
               wih2_ref, b2_ref, whh2f_ref, whh2b_ref,
               wfc_ref, bfc_ref, trans_ref,
               score_ref, path_ref):
        K = trans_ref.shape[0]

        # ---- BiLSTM layer 1: input projection for all steps/gates/directions
        #      as ONE MXU matmul, then the fused fwd+bwd recurrence.
        gx1 = (jnp.dot(x_ref[...], wih1_ref[...],
                       preferred_element_type=jnp.float32) + b1_ref[...])
        h1 = bilstm(gx1, whh1f_ref[...], whh1b_ref[...])        # (T*B, 2H)

        # ---- BiLSTM layer 2 (input is layer-1 output, kept on-chip).
        gx2 = (jnp.dot(h1, wih2_ref[...],
                       preferred_element_type=jnp.float32) + b2_ref[...])
        h2 = bilstm(gx2, whh2f_ref[...], whh2b_ref[...])        # (T*B, 2H)

        # ---- FC (nn.Linear): feats never leave VMEM/vregs.
        feats = (jnp.dot(h2, wfc_ref[...],
                         preferred_element_type=jnp.float32) + bfc_ref[...])

        # ---- CRF Viterbi forward recursion.  Matches the PyTorch reference:
        #      loop t = 1..T-1, feats[:, 0] is never added, and no terminal
        #      stop-tag transition is applied (faithful to _viterbi_decode).
        trans = trans_ref[...]                                   # (K, K)
        col_k = jax.lax.broadcasted_iota(jnp.int32, (B, K), 1)
        idx3 = jax.lax.broadcasted_iota(jnp.int32, (B, K, K), 2)

        delta = jnp.where(col_k == start_id, 0.0, -10000.0).astype(jnp.float32)
        psi = [None] * T
        # TODO(synk): for large T, store psi in a VMEM scratch indexed by t.
        for t in range(1, T):
            m = trans[None, :, :] + delta[:, None, :]            # (B, K, K)
            best = jnp.max(m, axis=-1)                           # (B, K)
            psi[t] = jnp.min(jnp.where(m == best[..., None], idx3, K),
                             axis=-1).astype(jnp.int32)          # argmax_k
            delta = best + feats[t * B:(t + 1) * B, :]

        # Terminal step reuses delta directly (no (B,1,K) re-broadcast).
        best_fin = jnp.max(delta, axis=-1, keepdims=True)        # (B, 1)
        last = jnp.min(jnp.where(delta == best_fin, col_k, K),
                       axis=-1, keepdims=True).astype(jnp.int32) # (B, 1)
        score_ref[...] = best_fin

        # ---- In-kernel backtrace (one-hot select instead of gather); only
        #      the final (B, T) path and (B, 1) score leave the kernel.
        col_t = jax.lax.broadcasted_iota(jnp.int32, (B, T), 1)
        path = jnp.where(col_t == T - 1, last, 0)
        cur = last
        for t in range(T - 2, -1, -1):
            sel = jnp.where(col_k == cur, psi[t + 1], 0)         # (B, K)
            cur = jnp.sum(sel, axis=-1, keepdims=True)           # (B, 1)
            path = jnp.where(col_t == t, cur, path)
        path_ref[...] = path.astype(jnp.int32)

    return kernel


# ----------------------------------------------------------------------------
# Wrapper: weight re-layout + single pallas_call.
# ----------------------------------------------------------------------------
def bert_bilstm_crf_forward(params, sentence):
    B, T = sentence.shape
    # TODO(synk): the pretrained 'dbmdz/bert-base-turkish-cased' encoder has no
    # clean Pallas equivalent; replaced by a deterministic embedding lookup
    # producing the same (B, T, embed_dim) activation shape.
    enc = params["bert_embed"][sentence]                        # (B, T, E)
    # time-major rows flattened as (t*B + b, feature)
    x = jnp.transpose(enc, (1, 0, 2)).reshape(T * B, -1)

    H = params["lstm"][0]["fwd"][1].shape[1]                    # hidden per dir
    K = params["transitions"].shape[0]

    def layer_inputs(lp):
        w_ih_f, w_hh_f, b_ih_f, b_hh_f = lp["fwd"]
        w_ih_b, w_hh_b, b_ih_b, b_hh_b = lp["bwd"]
        # Column order: [fwd i|f|g|o | bwd i|f|g|o] -> each direction's gates
        # occupy a contiguous 4H = 128-lane span.
        wih = jnp.concatenate([w_ih_f.T, w_ih_b.T], axis=1)     # (in, 8H)
        bias = jnp.concatenate([b_ih_f + b_hh_f, b_ih_b + b_hh_b])[None, :]
        return wih, bias, w_hh_f.T, w_hh_b.T                    # whh: (H, 4H)

    wih1, b1, whh1f, whh1b = layer_inputs(params["lstm"][0])
    wih2, b2, whh2f, whh2b = layer_inputs(params["lstm"][1])
    wfc = params["fc_w"].T                                      # (2H, K)
    bfc = params["fc_b"][None, :]                               # (1, K)
    trans = params["transitions"]                               # (K, K)

    TB, E = x.shape

    def full2d(shape):
        return pl.BlockSpec(shape, lambda i: (0, 0))

    score, path = pl.pallas_call(
        _make_fused_kernel(T, B, H, int(params["start_id"])),
        out_shape=(jax.ShapeDtypeStruct((B, 1), jnp.float32),
                   jax.ShapeDtypeStruct((B, T), jnp.int32)),
        grid_spec=pltpu.PrefetchScalarGridSpec(
            num_scalar_prefetch=0,
            grid=(1,),
            in_specs=[
                full2d((TB, E)),
                full2d((E, 8 * H)), full2d((1, 8 * H)),
                full2d((H, 4 * H)), full2d((H, 4 * H)),
                full2d((2 * H, 8 * H)), full2d((1, 8 * H)),
                full2d((H, 4 * H)), full2d((H, 4 * H)),
                full2d((2 * H, K)), full2d((1, K)),
                full2d((K, K)),
            ],
            out_specs=(full2d((B, 1)), full2d((B, T))),
        ),
        compiler_params=pltpu.CompilerParams(
            dimension_semantics=("arbitrary",)),
    )(x, wih1, b1, whh1f, whh1b, wih2, b2, whh2f, whh2b, wfc, bfc, trans)
    return score[:, 0], path


# ----------------------------------------------------------------------------
# Parameter init (matches nn.LSTM / nn.Linear / CRF parameter shapes).
# ----------------------------------------------------------------------------
def init_params(key, vocab, embed_dim, hidden_dim, tag_to_ix):
    K = len(tag_to_ix)
    H = hidden_dim // 2
    keys = iter(jax.random.split(key, 32))

    def rnd(shape, scale=0.1):
        return scale * jax.random.normal(next(keys), shape, jnp.float32)

    params = {"bert_embed": rnd((vocab, embed_dim), 1.0)}
    lstm, in_size = [], embed_dim
    for _ in range(2):                        # num_layers=2, bidirectional
        lp = {}
        for d in ("fwd", "bwd"):
            lp[d] = (rnd((4 * H, in_size)), rnd((4 * H, H)),
                     rnd((4 * H,)), rnd((4 * H,)))
        lstm.append(lp)
        in_size = 2 * H
    params["lstm"] = lstm
    params["fc_w"] = rnd((K, hidden_dim))
    params["fc_b"] = rnd((K,))

    trans = jax.random.normal(next(keys), (K, K), jnp.float32)
    start, end = tag_to_ix['[CLS]'], tag_to_ix['[SEP]']
    trans = trans.at[start, :].set(-10000.0)
    trans = trans.at[:, end].set(-10000.0)
    params["transitions"] = trans
    params["start_id"] = start
    return params


if __name__ == "__main__":
    # Small shapes consistent with the module (768 -> 64, seq=8, batch=2)
    B, T, EMBED, HIDDEN, VOCAB = 2, 8, 64, 64, 100
    tags = ['[CLS]', 'O', 'B-PER', 'I-PER', 'B-LOC', 'I-LOC', '[SEP]', '[PAD]']
    tag_to_ix = {t: i for i, t in enumerate(tags)}

    key = jax.random.PRNGKey(0)
    k_params, k_sent = jax.random.split(key)
    params = init_params(k_params, VOCAB, EMBED, HIDDEN, tag_to_ix)
    sentence = jax.random.randint(k_sent, (B, T), 0, VOCAB, dtype=jnp.int32)

    score, tag_seq = bert_bilstm_crf_forward(params, sentence)
    jax.block_until_ready((score, tag_seq))
    assert score.shape == (B,) and tag_seq.shape == (B, T)
    assert bool(jnp.all(tag_seq >= 0)) and bool(jnp.all(tag_seq < len(tags)))
    print("KERNEL_OK")
</pallas_src>

<mosaic_0001>
module attributes {stable_mosaic.version = 11 : i64} {
  func.func @kernel(%arg0: i32, %arg1: memref<16x64xf32, #tpu.memory_space<vmem>>, %arg2: memref<64x256xf32, #tpu.memory_space<vmem>>, %arg3: memref<1x256xf32, #tpu.memory_space<vmem>>, %arg4: memref<32x128xf32, #tpu.memory_space<vmem>>, %arg5: memref<32x128xf32, #tpu.memory_space<vmem>>, %arg6: memref<64x256xf32, #tpu.memory_space<vmem>>, %arg7: memref<1x256xf32, #tpu.memory_space<vmem>>, %arg8: memref<32x128xf32, #tpu.memory_space<vmem>>, %arg9: memref<32x128xf32, #tpu.memory_space<vmem>>, %arg10: memref<64x8xf32, #tpu.memory_space<vmem>>, %arg11: memref<1x8xf32, #tpu.memory_space<vmem>>, %arg12: memref<8x8xf32, #tpu.memory_space<vmem>>, %arg13: memref<2x1xf32, #tpu.memory_space<vmem>>, %arg14: memref<2x8xi32, #tpu.memory_space<vmem>>) attributes {dimension_semantics = [#tpu.dimension_semantics<arbitrary>], iteration_bounds = array<i64: 1>, scalar_prefetch = 0 : i64, scratch_operands = 0 : i64, tpu.core_type = #tpu.core_type<tc>, window_params = [{pipeline_mode = #tpu.pipeline_mode<synchronous>, transform_indices = @transform_0, window_bounds = array<i64: 16, 64>}, {pipeline_mode = #tpu.pipeline_mode<synchronous>, transform_indices = @transform_1, window_bounds = array<i64: 64, 256>}, {pipeline_mode = #tpu.pipeline_mode<synchronous>, transform_indices = @transform_2, window_bounds = array<i64: 1, 256>}, {pipeline_mode = #tpu.pipeline_mode<synchronous>, transform_indices = @transform_3, window_bounds = array<i64: 32, 128>}, {pipeline_mode = #tpu.pipeline_mode<synchronous>, transform_indices = @transform_4, window_bounds = array<i64: 32, 128>}, {pipeline_mode = #tpu.pipeline_mode<synchronous>, transform_indices = @transform_5, window_bounds = array<i64: 64, 256>}, {pipeline_mode = #tpu.pipeline_mode<synchronous>, transform_indices = @transform_6, window_bounds = array<i64: 1, 256>}, {pipeline_mode = #tpu.pipeline_mode<synchronous>, transform_indices = @transform_7, window_bounds = array<i64: 32, 128>}, {pipeline_mode = #tpu.pipeline_mode<synchronous>, transform_indices = @transform_8, window_bounds = array<i64: 32, 128>}, {pipeline_mode = #tpu.pipeline_mode<synchronous>, transform_indices = @transform_9, window_bounds = array<i64: 64, 8>}, {pipeline_mode = #tpu.pipeline_mode<synchronous>, transform_indices = @transform_10, window_bounds = array<i64: 1, 8>}, {pipeline_mode = #tpu.pipeline_mode<synchronous>, transform_indices = @transform_11, window_bounds = array<i64: 8, 8>}, {pipeline_mode = #tpu.pipeline_mode<synchronous>, transform_indices = @transform_12, window_bounds = array<i64: 2, 1>}, {pipeline_mode = #tpu.pipeline_mode<synchronous>, transform_indices = @transform_13, window_bounds = array<i64: 2, 8>}]} {
    %c0 = arith.constant 0 : index
    %c0_0 = arith.constant 0 : index
    %0 = vector.load %arg1[%c0, %c0_0] : memref<16x64xf32, #tpu.memory_space<vmem>>, vector<16x64xf32>
    %c0_1 = arith.constant 0 : index
    %c0_2 = arith.constant 0 : index
    %1 = vector.load %arg2[%c0_1, %c0_2] : memref<64x256xf32, #tpu.memory_space<vmem>>, vector<64x256xf32>
    %cst = arith.constant dense<0.000000e+00> : vector<16x256xf32>
    %2 = tpu.matmul %0, %1, %cst {dimension_numbers = #tpu.dot_dimension_numbers<[1], [0], [0], [1], [0, 0, 1, 1], [], []>} : vector<16x64xf32>, vector<64x256xf32>, vector<16x256xf32> -> vector<16x256xf32>
    %c0_3 = arith.constant 0 : index
    %c0_4 = arith.constant 0 : index
    %3 = vector.load %arg3[%c0_3, %c0_4] : memref<1x256xf32, #tpu.memory_space<vmem>>, vector<1x256xf32>
    %4 = vector.broadcast %3 : vector<1x256xf32> to vector<16x256xf32>
    %5 = arith.addf %2, %4 : vector<16x256xf32>
    %c0_5 = arith.constant 0 : index
    %c0_6 = arith.constant 0 : index
    %6 = vector.load %arg4[%c0_5, %c0_6] : memref<32x128xf32, #tpu.memory_space<vmem>>, vector<32x128xf32>
    %c0_7 = arith.constant 0 : index
    %c0_8 = arith.constant 0 : index
    %7 = vector.load %arg5[%c0_7, %c0_8] : memref<32x128xf32, #tpu.memory_space<vmem>>, vector<32x128xf32>
    %cst_9 = arith.constant 0.000000e+00 : f32
    %8 = vector.broadcast %cst_9 : f32 to vector<2x32xf32>
    %9 = vector.extract_strided_slice %5 {offsets = [0, 0], sizes = [2, 128], strides = [1, 1]} : vector<16x256xf32> to vector<2x128xf32>
    %cst_10 = arith.constant dense<0.000000e+00> : vector<2x128xf32>
    %10 = tpu.matmul %8, %6, %cst_10 {dimension_numbers = #tpu.dot_dimension_numbers<[1], [0], [0], [1], [0, 0, 1, 1], [], []>} : vector<2x32xf32>, vector<32x128xf32>, vector<2x128xf32> -> vector<2x128xf32>
    %11 = arith.addf %9, %10 : vector<2x128xf32>
    %12 = vector.extract_strided_slice %11 {offsets = [0, 0], sizes = [2, 32], strides = [1, 1]} : vector<2x128xf32> to vector<2x32xf32>
    %13 = arith.negf %12 : vector<2x32xf32>
    %14 = math.exp %13 : vector<2x32xf32>
    %cst_11 = arith.constant 1.000000e+00 : f32
    %15 = vector.broadcast %cst_11 : f32 to vector<2x32xf32>
    %16 = arith.addf %15, %14 : vector<2x32xf32>
    %17 = arith.divf %15, %16 : vector<2x32xf32>
    %18 = vector.extract_strided_slice %11 {offsets = [0, 32], sizes = [2, 32], strides = [1, 1]} : vector<2x128xf32> to vector<2x32xf32>
    %19 = arith.negf %18 : vector<2x32xf32>
    %20 = math.exp %19 : vector<2x32xf32>
    %cst_12 = arith.constant 1.000000e+00 : f32
    %21 = vector.broadcast %cst_12 : f32 to vector<2x32xf32>
    %22 = arith.addf %21, %20 : vector<2x32xf32>
    %23 = arith.divf %21, %22 : vector<2x32xf32>
    %24 = vector.extract_strided_slice %11 {offsets = [0, 64], sizes = [2, 32], strides = [1, 1]} : vector<2x128xf32> to vector<2x32xf32>
    %25 = math.tanh %24 : vector<2x32xf32>
    %26 = vector.extract_strided_slice %11 {offsets = [0, 96], sizes = [2, 32], strides = [1, 1]} : vector<2x128xf32> to vector<2x32xf32>
    %27 = arith.negf %26 : vector<2x32xf32>
    %28 = math.exp %27 : vector<2x32xf32>
    %cst_13 = arith.constant 1.000000e+00 : f32
    %29 = vector.broadcast %cst_13 : f32 to vector<2x32xf32>
    %30 = arith.addf %29, %28 : vector<2x32xf32>
    %31 = arith.divf %29, %30 : vector<2x32xf32>
    %32 = arith.mulf %23, %8 : vector<2x32xf32>
    %33 = arith.mulf %17, %25 : vector<2x32xf32>
    %34 = arith.addf %32, %33 : vector<2x32xf32>
    %35 = math.tanh %34 : vector<2x32xf32>
    %36 = arith.mulf %31, %35 : vector<2x32xf32>
    %37 = vector.extract_strided_slice %5 {offsets = [14, 128], sizes = [2, 128], strides = [1, 1]} : vector<16x256xf32> to vector<2x128xf32>
    %cst_14 = arith.constant dense<0.000000e+00> : vector<2x128xf32>
    %38 = tpu.matmul %8, %7, %cst_14 {dimension_numbers = #tpu.dot_dimension_numbers<[1], [0], [0], [1], [0, 0, 1, 1], [], []>} : vector<2x32xf32>, vector<32x128xf32>, vector<2x128xf32> -> vector<2x128xf32>
    %39 = arith.addf %37, %38 : vector<2x128xf32>
    %40 = vector.extract_strided_slice %39 {offsets = [0, 0], sizes = [2, 32], strides = [1, 1]} : vector<2x128xf32> to vector<2x32xf32>
    %41 = arith.negf %40 : vector<2x32xf32>
    %42 = math.exp %41 : vector<2x32xf32>
    %cst_15 = arith.constant 1.000000e+00 : f32
    %43 = vector.broadcast %cst_15 : f32 to vector<2x32xf32>
    %44 = arith.addf %43, %42 : vector<2x32xf32>
    %45 = arith.divf %43, %44 : vector<2x32xf32>
    %46 = vector.extract_strided_slice %39 {offsets = [0, 32], sizes = [2, 32], strides = [1, 1]} : vector<2x128xf32> to vector<2x32xf32>
    %47 = arith.negf %46 : vector<2x32xf32>
    %48 = math.exp %47 : vector<2x32xf32>
    %cst_16 = arith.constant 1.000000e+00 : f32
    %49 = vector.broadcast %cst_16 : f32 to vector<2x32xf32>
    %50 = arith.addf %49, %48 : vector<2x32xf32>
    %51 = arith.divf %49, %50 : vector<2x32xf32>
    %52 = vector.extract_strided_slice %39 {offsets = [0, 64], sizes = [2, 32], strides = [1, 1]} : vector<2x128xf32> to vector<2x32xf32>
    %53 = math.tanh %52 : vector<2x32xf32>
    %54 = vector.extract_strided_slice %39 {offsets = [0, 96], sizes = [2, 32], strides = [1, 1]} : vector<2x128xf32> to vector<2x32xf32>
    %55 = arith.negf %54 : vector<2x32xf32>
    %56 = math.exp %55 : vector<2x32xf32>
    %cst_17 = arith.constant 1.000000e+00 : f32
    %57 = vector.broadcast %cst_17 : f32 to vector<2x32xf32>
    %58 = arith.addf %57, %56 : vector<2x32xf32>
    %59 = arith.divf %57, %58 : vector<2x32xf32>
    %60 = arith.mulf %51, %8 : vector<2x32xf32>
    %61 = arith.mulf %45, %53 : vector<2x32xf32>
    %62 = arith.addf %60, %61 : vector<2x32xf32>
    %63 = math.tanh %62 : vector<2x32xf32>
    %64 = arith.mulf %59, %63 : vector<2x32xf32>
    %65 = vector.extract_strided_slice %5 {offsets = [2, 0], sizes = [2, 128], strides = [1, 1]} : vector<16x256xf32> to vector<2x128xf32>
    %cst_18 = arith.constant dense<0.000000e+00> : vector<2x128xf32>
    %66 = tpu.matmul %36, %6, %cst_18 {dimension_numbers = #tpu.dot_dimension_numbers<[1], [0], [0], [1], [0, 0, 1, 1], [], []>} : vector<2x32xf32>, vector<32x128xf32>, vector<2x128xf32> -> vector<2x128xf32>
    %67 = arith.addf %65, %66 : vector<2x128xf32>
    %68 = vector.extract_strided_slice %67 {offsets = [0, 0], sizes = [2, 32], strides = [1, 1]} : vector<2x128xf32> to vector<2x32xf32>
    %69 = arith.negf %68 : vector<2x32xf32>
    %70 = math.exp %69 : vector<2x32xf32>
    %cst_19 = arith.constant 1.000000e+00 : f32
    %71 = vector.broadcast %cst_19 : f32 to vector<2x32xf32>
    %72 = arith.addf %71, %70 : vector<2x32xf32>
    %73 = arith.divf %71, %72 : vector<2x32xf32>
    %74 = vector.extract_strided_slice %67 {offsets = [0, 32], sizes = [2, 32], strides = [1, 1]} : vector<2x128xf32> to vector<2x32xf32>
    %75 = arith.negf %74 : vector<2x32xf32>
    %76 = math.exp %75 : vector<2x32xf32>
    %cst_20 = arith.constant 1.000000e+00 : f32
    %77 = vector.broadcast %cst_20 : f32 to vector<2x32xf32>
    %78 = arith.addf %77, %76 : vector<2x32xf32>
    %79 = arith.divf %77, %78 : vector<2x32xf32>
    %80 = vector.extract_strided_slice %67 {offsets = [0, 64], sizes = [2, 32], strides = [1, 1]} : vector<2x128xf32> to vector<2x32xf32>
    %81 = math.tanh %80 : vector<2x32xf32>
    %82 = vector.extract_strided_slice %67 {offsets = [0, 96], sizes = [2, 32], strides = [1, 1]} : vector<2x128xf32> to vector<2x32xf32>
    %83 = arith.negf %82 : vector<2x32xf32>
    %84 = math.exp %83 : vector<2x32xf32>
    %cst_21 = arith.constant 1.000000e+00 : f32
    %85 = vector.broadcast %cst_21 : f32 to vector<2x32xf32>
    %86 = arith.addf %85, %84 : vector<2x32xf32>
    %87 = arith.divf %85, %86 : vector<2x32xf32>
    %88 = arith.mulf %79, %34 : vector<2x32xf32>
    %89 = arith.mulf %73, %81 : vector<2x32xf32>
    %90 = arith.addf %88, %89 : vector<2x32xf32>
    %91 = math.tanh %90 : vector<2x32xf32>
    %92 = arith.mulf %87, %91 : vector<2x32xf32>
    %93 = vector.extract_strided_slice %5 {offsets = [12, 128], sizes = [2, 128], strides = [1, 1]} : vector<16x256xf32> to vector<2x128xf32>
    %cst_22 = arith.constant dense<0.000000e+00> : vector<2x128xf32>
    %94 = tpu.matmul %64, %7, %cst_22 {dimension_numbers = #tpu.dot_dimension_numbers<[1], [0], [0], [1], [0, 0, 1, 1], [], []>} : vector<2x32xf32>, vector<32x128xf32>, vector<2x128xf32> -> vector<2x128xf32>
    %95 = arith.addf %93, %94 : vector<2x128xf32>
    %96 = vector.extract_strided_slice %95 {offsets = [0, 0], sizes = [2, 32], strides = [1, 1]} : vector<2x128xf32> to vector<2x32xf32>
    %97 = arith.negf %96 : vector<2x32xf32>
    %98 = math.exp %97 : vector<2x32xf32>
    %cst_23 = arith.constant 1.000000e+00 : f32
    %99 = vector.broadcast %cst_23 : f32 to vector<2x32xf32>
    %100 = arith.addf %99, %98 : vector<2x32xf32>
    %101 = arith.divf %99, %100 : vector<2x32xf32>
    %102 = vector.extract_strided_slice %95 {offsets = [0, 32], sizes = [2, 32], strides = [1, 1]} : vector<2x128xf32> to vector<2x32xf32>
    %103 = arith.negf %102 : vector<2x32xf32>
    %104 = math.exp %103 : vector<2x32xf32>
    %cst_24 = arith.constant 1.000000e+00 : f32
    %105 = vector.broadcast %cst_24 : f32 to vector<2x32xf32>
    %106 = arith.addf %105, %104 : vector<2x32xf32>
    %107 = arith.divf %105, %106 : vector<2x32xf32>
    %108 = vector.extract_strided_slice %95 {offsets = [0, 64], sizes = [2, 32], strides = [1, 1]} : vector<2x128xf32> to vector<2x32xf32>
    %109 = math.tanh %108 : vector<2x32xf32>
    %110 = vector.extract_strided_slice %95 {offsets = [0, 96], sizes = [2, 32], strides = [1, 1]} : vector<2x128xf32> to vector<2x32xf32>
    %111 = arith.negf %110 : vector<2x32xf32>
    %112 = math.exp %111 : vector<2x32xf32>
    %cst_25 = arith.constant 1.000000e+00 : f32
    %113 = vector.broadcast %cst_25 : f32 to vector<2x32xf32>
    %114 = arith.addf %113, %112 : vector<2x32xf32>
    %115 = arith.divf %113, %114 : vector<2x32xf32>
    %116 = arith.mulf %107, %62 : vector<2x32xf32>
    %117 = arith.mulf %101, %109 : vector<2x32xf32>
    %118 = arith.addf %116, %117 : vector<2x32xf32>
    %119 = math.tanh %118 : vector<2x32xf32>
    %120 = arith.mulf %115, %119 : vector<2x32xf32>
    %121 = vector.extract_strided_slice %5 {offsets = [4, 0], sizes = [2, 128], strides = [1, 1]} : vector<16x256xf32> to vector<2x128xf32>
    %cst_26 = arith.constant dense<0.000000e+00> : vector<2x128xf32>
    %122 = tpu.matmul %92, %6, %cst_26 {dimension_numbers = #tpu.dot_dimension_numbers<[1], [0], [0], [1], [0, 0, 1, 1], [], []>} : vector<2x32xf32>, vector<32x128xf32>, vector<2x128xf32> -> vector<2x128xf32>
    %123 = arith.addf %121, %122 : vector<2x128xf32>
    %124 = vector.extract_strided_slice %123 {offsets = [0, 0], sizes = [2, 32], strides = [1, 1]} : vector<2x128xf32> to vector<2x32xf32>
    %125 = arith.negf %124 : vector<2x32xf32>
    %126 = math.exp %125 : vector<2x32xf32>
    %cst_27 = arith.constant 1.000000e+00 : f32
    %127 = vector.broadcast %cst_27 : f32 to vector<2x32xf32>
    %128 = arith.addf %127, %126 : vector<2x32xf32>
    %129 = arith.divf %127, %128 : vector<2x32xf32>
    %130 = vector.extract_strided_slice %123 {offsets = [0, 32], sizes = [2, 32], strides = [1, 1]} : vector<2x128xf32> to vector<2x32xf32>
    %131 = arith.negf %130 : vector<2x32xf32>
    %132 = math.exp %131 : vector<2x32xf32>
    %cst_28 = arith.constant 1.000000e+00 : f32
    %133 = vector.broadcast %cst_28 : f32 to vector<2x32xf32>
    %134 = arith.addf %133, %132 : vector<2x32xf32>
    %135 = arith.divf %133, %134 : vector<2x32xf32>
    %136 = vector.extract_strided_slice %123 {offsets = [0, 64], sizes = [2, 32], strides = [1, 1]} : vector<2x128xf32> to vector<2x32xf32>
    %137 = math.tanh %136 : vector<2x32xf32>
    %138 = vector.extract_strided_slice %123 {offsets = [0, 96], sizes = [2, 32], strides = [1, 1]} : vector<2x128xf32> to vector<2x32xf32>
    %139 = arith.negf %138 : vector<2x32xf32>
    %140 = math.exp %139 : vector<2x32xf32>
    %cst_29 = arith.constant 1.000000e+00 : f32
    %141 = vector.broadcast %cst_29 : f32 to vector<2x32xf32>
    %142 = arith.addf %141, %140 : vector<2x32xf32>
    %143 = arith.divf %141, %142 : vector<2x32xf32>
    %144 = arith.mulf %135, %90 : vector<2x32xf32>
    %145 = arith.mulf %129, %137 : vector<2x32xf32>
    %146 = arith.addf %144, %145 : vector<2x32xf32>
    %147 = math.tanh %146 : vector<2x32xf32>
    %148 = arith.mulf %143, %147 : vector<2x32xf32>
    %149 = vector.extract_strided_slice %5 {offsets = [10, 128], sizes = [2, 128], strides = [1, 1]} : vector<16x256xf32> to vector<2x128xf32>
    %cst_30 = arith.constant dense<0.000000e+00> : vector<2x128xf32>
    %150 = tpu.matmul %120, %7, %cst_30 {dimension_numbers = #tpu.dot_dimension_numbers<[1], [0], [0], [1], [0, 0, 1, 1], [], []>} : vector<2x32xf32>, vector<32x128xf32>, vector<2x128xf32> -> vector<2x128xf32>
    %151 = arith.addf %149, %150 : vector<2x128xf32>
    %152 = vector.extract_strided_slice %151 {offsets = [0, 0], sizes = [2, 32], strides = [1, 1]} : vector<2x128xf32> to vector<2x32xf32>
    %153 = arith.negf %152 : vector<2x32xf32>
    %154 = math.exp %153 : vector<2x32xf32>
    %cst_31 = arith.constant 1.000000e+00 : f32
    %155 = vector.broadcast %cst_31 : f32 to vector<2x32xf32>
    %156 = arith.addf %155, %154 : vector<2x32xf32>
    %157 = arith.divf %155, %156 : vector<2x32xf32>
    %158 = vector.extract_strided_slice %151 {offsets = [0, 32], sizes = [2, 32], strides = [1, 1]} : vector<2x128xf32> to vector<2x32xf32>
    %159 = arith.negf %158 : vector<2x32xf32>
    %160 = math.exp %159 : vector<2x32xf32>
    %cst_32 = arith.constant 1.000000e+00 : f32
    %161 = vector.broadcast %cst_32 : f32 to vector<2x32xf32>
    %162 = arith.addf %161, %160 : vector<2x32xf32>
    %163 = arith.divf %161, %162 : vector<2x32xf32>
    %164 = vector.extract_strided_slice %151 {offsets = [0, 64], sizes = [2, 32], strides = [1, 1]} : vector<2x128xf32> to vector<2x32xf32>
    %165 = math.tanh %164 : vector<2x32xf32>
    %166 = vector.extract_strided_slice %151 {offsets = [0, 96], sizes = [2, 32], strides = [1, 1]} : vector<2x128xf32> to vector<2x32xf32>
    %167 = arith.negf %166 : vector<2x32xf32>
    %168 = math.exp %167 : vector<2x32xf32>
    %cst_33 = arith.constant 1.000000e+00 : f32
    %169 = vector.broadcast %cst_33 : f32 to vector<2x32xf32>
    %170 = arith.addf %169, %168 : vector<2x32xf32>
    %171 = arith.divf %169, %170 : vector<2x32xf32>
    %172 = arith.mulf %163, %118 : vector<2x32xf32>
    %173 = arith.mulf %157, %165 : vector<2x32xf32>
    %174 = arith.addf %172, %173 : vector<2x32xf32>
    %175 = math.tanh %174 : vector<2x32xf32>
    %176 = arith.mulf %171, %175 : vector<2x32xf32>
    %177 = vector.extract_strided_slice %5 {offsets = [6, 0], sizes = [2, 128], strides = [1, 1]} : vector<16x256xf32> to vector<2x128xf32>
    %cst_34 = arith.constant dense<0.000000e+00> : vector<2x128xf32>
    %178 = tpu.matmul %148, %6, %cst_34 {dimension_numbers = #tpu.dot_dimension_numbers<[1], [0], [0], [1], [0, 0, 1, 1], [], []>} : vector<2x32xf32>, vector<32x128xf32>, vector<2x128xf32> -> vector<2x128xf32>
    %179 = arith.addf %177, %178 : vector<2x128xf32>
    %180 = vector.extract_strided_slice %179 {offsets = [0, 0], sizes = [2, 32], strides = [1, 1]} : vector<2x128xf32> to vector<2x32xf32>
    %181 = arith.negf %180 : vector<2x32xf32>
    %182 = math.exp %181 : vector<2x32xf32>
    %cst_35 = arith.constant 1.000000e+00 : f32
    %183 = vector.broadcast %cst_35 : f32 to vector<2x32xf32>
    %184 = arith.addf %183, %182 : vector<2x32xf32>
    %185 = arith.divf %183, %184 : vector<2x32xf32>
    %186 = vector.extract_strided_slice %179 {offsets = [0, 32], sizes = [2, 32], strides = [1, 1]} : vector<2x128xf32> to vector<2x32xf32>
    %187 = arith.negf %186 : vector<2x32xf32>
    %188 = math.exp %187 : vector<2x32xf32>
    %cst_36 = arith.constant 1.000000e+00 : f32
    %189 = vector.broadcast %cst_36 : f32 to vector<2x32xf32>
    %190 = arith.addf %189, %188 : vector<2x32xf32>
    %191 = arith.divf %189, %190 : vector<2x32xf32>
    %192 = vector.extract_strided_slice %179 {offsets = [0, 64], sizes = [2, 32], strides = [1, 1]} : vector<2x128xf32> to vector<2x32xf32>
    %193 = math.tanh %192 : vector<2x32xf32>
    %194 = vector.extract_strided_slice %179 {offsets = [0, 96], sizes = [2, 32], strides = [1, 1]} : vector<2x128xf32> to vector<2x32xf32>
    %195 = arith.negf %194 : vector<2x32xf32>
    %196 = math.exp %195 : vector<2x32xf32>
    %cst_37 = arith.constant 1.000000e+00 : f32
    %197 = vector.broadcast %cst_37 : f32 to vector<2x32xf32>
    %198 = arith.addf %197, %196 : vector<2x32xf32>
    %199 = arith.divf %197, %198 : vector<2x32xf32>
    %200 = arith.mulf %191, %146 : vector<2x32xf32>
    %201 = arith.mulf %185, %193 : vector<2x32xf32>
    %202 = arith.addf %200, %201 : vector<2x32xf32>
    %203 = math.tanh %202 : vector<2x32xf32>
    %204 = arith.mulf %199, %203 : vector<2x32xf32>
    %205 = vector.extract_strided_slice %5 {offsets = [8, 128], sizes = [2, 128], strides = [1, 1]} : vector<16x256xf32> to vector<2x128xf32>
    %cst_38 = arith.constant dense<0.000000e+00> : vector<2x128xf32>
    %206 = tpu.matmul %176, %7, %cst_38 {dimension_numbers = #tpu.dot_dimension_numbers<[1], [0], [0], [1], [0, 0, 1, 1], [], []>} : vector<2x32xf32>, vector<32x128xf32>, vector<2x128xf32> -> vector<2x128xf32>
    %207 = arith.addf %205, %206 : vector<2x128xf32>
    %208 = vector.extract_strided_slice %207 {offsets = [0, 0], sizes = [2, 32], strides = [1, 1]} : vector<2x128xf32> to vector<2x32xf32>
    %209 = arith.negf %208 : vector<2x32xf32>
    %210 = math.exp %209 : vector<2x32xf32>
    %cst_39 = arith.constant 1.000000e+00 : f32
    %211 = vector.broadcast %cst_39 : f32 to vector<2x32xf32>
    %212 = arith.addf %211, %210 : vector<2x32xf32>
    %213 = arith.divf %211, %212 : vector<2x32xf32>
    %214 = vector.extract_strided_slice %207 {offsets = [0, 32], sizes = [2, 32], strides = [1, 1]} : vector<2x128xf32> to vector<2x32xf32>
    %215 = arith.negf %214 : vector<2x32xf32>
    %216 = math.exp %215 : vector<2x32xf32>
    %cst_40 = arith.constant 1.000000e+00 : f32
    %217 = vector.broadcast %cst_40 : f32 to vector<2x32xf32>
    %218 = arith.addf %217, %216 : vector<2x32xf32>
    %219 = arith.divf %217, %218 : vector<2x32xf32>
    %220 = vector.extract_strided_slice %207 {offsets = [0, 64], sizes = [2, 32], strides = [1, 1]} : vector<2x128xf32> to vector<2x32xf32>
    %221 = math.tanh %220 : vector<2x32xf32>
    %222 = vector.extract_strided_slice %207 {offsets = [0, 96], sizes = [2, 32], strides = [1, 1]} : vector<2x128xf32> to vector<2x32xf32>
    %223 = arith.negf %222 : vector<2x32xf32>
    %224 = math.exp %223 : vector<2x32xf32>
    %cst_41 = arith.constant 1.000000e+00 : f32
    %225 = vector.broadcast %cst_41 : f32 to vector<2x32xf32>
    %226 = arith.addf %225, %224 : vector<2x32xf32>
    %227 = arith.divf %225, %226 : vector<2x32xf32>
    %228 = arith.mulf %219, %174 : vector<2x32xf32>
    %229 = arith.mulf %213, %221 : vector<2x32xf32>
    %230 = arith.addf %228, %229 : vector<2x32xf32>
    %231 = math.tanh %230 : vector<2x32xf32>
    %232 = arith.mulf %227, %231 : vector<2x32xf32>
    %233 = vector.extract_strided_slice %5 {offsets = [8, 0], sizes = [2, 128], strides = [1, 1]} : vector<16x256xf32> to vector<2x128xf32>
    %cst_42 = arith.constant dense<0.000000e+00> : vector<2x128xf32>
    %234 = tpu.matmul %204, %6, %cst_42 {dimension_numbers = #tpu.dot_dimension_numbers<[1], [0], [0], [1], [0, 0, 1, 1], [], []>} : vector<2x32xf32>, vector<32x128xf32>, vector<2x128xf32> -> vector<2x128xf32>
    %235 = arith.addf %233, %234 : vector<2x128xf32>
    %236 = vector.extract_strided_slice %235 {offsets = [0, 0], sizes = [2, 32], strides = [1, 1]} : vector<2x128xf32> to vector<2x32xf32>
    %237 = arith.negf %236 : vector<2x32xf32>
    %238 = math.exp %237 : vector<2x32xf32>
    %cst_43 = arith.constant 1.000000e+00 : f32
    %239 = vector.broadcast %cst_43 : f32 to vector<2x32xf32>
    %240 = arith.addf %239, %238 : vector<2x32xf32>
    %241 = arith.divf %239, %240 : vector<2x32xf32>
    %242 = vector.extract_strided_slice %235 {offsets = [0, 32], sizes = [2, 32], strides = [1, 1]} : vector<2x128xf32> to vector<2x32xf32>
    %243 = arith.negf %242 : vector<2x32xf32>
    %244 = math.exp %243 : vector<2x32xf32>
    %cst_44 = arith.constant 1.000000e+00 : f32
    %245 = vector.broadcast %cst_44 : f32 to vector<2x32xf32>
    %246 = arith.addf %245, %244 : vector<2x32xf32>
    %247 = arith.divf %245, %246 : vector<2x32xf32>
    %248 = vector.extract_strided_slice %235 {offsets = [0, 64], sizes = [2, 32], strides = [1, 1]} : vector<2x128xf32> to vector<2x32xf32>
    %249 = math.tanh %248 : vector<2x32xf32>
    %250 = vector.extract_strided_slice %235 {offsets = [0, 96], sizes = [2, 32], strides = [1, 1]} : vector<2x128xf32> to vector<2x32xf32>
    %251 = arith.negf %250 : vector<2x32xf32>
    %252 = math.exp %251 : vector<2x32xf32>
    %cst_45 = arith.constant 1.000000e+00 : f32
    %253 = vector.broadcast %cst_45 : f32 to vector<2x32xf32>
    %254 = arith.addf %253, %252 : vector<2x32xf32>
    %255 = arith.divf %253, %254 : vector<2x32xf32>
    %256 = arith.mulf %247, %202 : vector<2x32xf32>
    %257 = arith.mulf %241, %249 : vector<2x32xf32>
    %258 = arith.addf %256, %257 : vector<2x32xf32>
    %259 = math.tanh %258 : vector<2x32xf32>
    %260 = arith.mulf %255, %259 : vector<2x32xf32>
    %261 = vector.extract_strided_slice %5 {offsets = [6, 128], sizes = [2, 128], strides = [1, 1]} : vector<16x256xf32> to vector<2x128xf32>
    %cst_46 = arith.constant dense<0.000000e+00> : vector<2x128xf32>
    %262 = tpu.matmul %232, %7, %cst_46 {dimension_numbers = #tpu.dot_dimension_numbers<[1], [0], [0], [1], [0, 0, 1, 1], [], []>} : vector<2x32xf32>, vector<32x128xf32>, vector<2x128xf32> -> vector<2x128xf32>
    %263 = arith.addf %261, %262 : vector<2x128xf32>
    %264 = vector.extract_strided_slice %263 {offsets = [0, 0], sizes = [2, 32], strides = [1, 1]} : vector<2x128xf32> to vector<2x32xf32>
    %265 = arith.negf %264 : vector<2x32xf32>
    %266 = math.exp %265 : vector<2x32xf32>
    %cst_47 = arith.constant 1.000000e+00 : f32
    %267 = vector.broadcast %cst_47 : f32 to vector<2x32xf32>
    %268 = arith.addf %267, %266 : vector<2x32xf32>
    %269 = arith.divf %267, %268 : vector<2x32xf32>
    %270 = vector.extract_strided_slice %263 {offsets = [0, 32], sizes = [2, 32], strides = [1, 1]} : vector<2x128xf32> to vector<2x32xf32>
    %271 = arith.negf %270 : vector<2x32xf32>
    %272 = math.exp %271 : vector<2x32xf32>
    %cst_48 = arith.constant 1.000000e+00 : f32
    %273 = vector.broadcast %cst_48 : f32 to vector<2x32xf32>
    %274 = arith.addf %273, %272 : vector<2x32xf32>
    %275 = arith.divf %273, %274 : vector<2x32xf32>
    %276 = vector.extract_strided_slice %263 {offsets = [0, 64], sizes = [2, 32], strides = [1, 1]} : vector<2x128xf32> to vector<2x32xf32>
    %277 = math.tanh %276 : vector<2x32xf32>
    %278 = vector.extract_strided_slice %263 {offsets = [0, 96], sizes = [2, 32], strides = [1, 1]} : vector<2x128xf32> to vector<2x32xf32>
    %279 = arith.negf %278 : vector<2x32xf32>
    %280 = math.exp %279 : vector<2x32xf32>
    %cst_49 = arith.constant 1.000000e+00 : f32
    %281 = vector.broadcast %cst_49 : f32 to vector<2x32xf32>
    %282 = arith.addf %281, %280 : vector<2x32xf32>
    %283 = arith.divf %281, %282 : vector<2x32xf32>
    %284 = arith.mulf %275, %230 : vector<2x32xf32>
    %285 = arith.mulf %269, %277 : vector<2x32xf32>
    %286 = arith.addf %284, %285 : vector<2x32xf32>
    %287 = math.tanh %286 : vector<2x32xf32>
    %288 = arith.mulf %283, %287 : vector<2x32xf32>
    %289 = vector.extract_strided_slice %5 {offsets = [10, 0], sizes = [2, 128], strides = [1, 1]} : vector<16x256xf32> to vector<2x128xf32>
    %cst_50 = arith.constant dense<0.000000e+00> : vector<2x128xf32>
    %290 = tpu.matmul %260, %6, %cst_50 {dimension_numbers = #tpu.dot_dimension_numbers<[1], [0], [0], [1], [0, 0, 1, 1], [], []>} : vector<2x32xf32>, vector<32x128xf32>, vector<2x128xf32> -> vector<2x128xf32>
    %291 = arith.addf %289, %290 : vector<2x128xf32>
    %292 = vector.extract_strided_slice %291 {offsets = [0, 0], sizes = [2, 32], strides = [1, 1]} : vector<2x128xf32> to vector<2x32xf32>
    %293 = arith.negf %292 : vector<2x32xf32>
    %294 = math.exp %293 : vector<2x32xf32>
    %cst_51 = arith.constant 1.000000e+00 : f32
    %295 = vector.broadcast %cst_51 : f32 to vector<2x32xf32>
    %296 = arith.addf %295, %294 : vector<2x32xf32>
    %297 = arith.divf %295, %296 : vector<2x32xf32>
    %298 = vector.extract_strided_slice %291 {offsets = [0, 32], sizes = [2, 32], strides = [1, 1]} : vector<2x128xf32> to vector<2x32xf32>
    %299 = arith.negf %298 : vector<2x32xf32>
    %300 = math.exp %299 : vector<2x32xf32>
    %cst_52 = arith.constant 1.000000e+00 : f32
    %301 = vector.broadcast %cst_52 : f32 to vector<2x32xf32>
    %302 = arith.addf %301, %300 : vector<2x32xf32>
    %303 = arith.divf %301, %302 : vector<2x32xf32>
    %304 = vector.extract_strided_slice %291 {offsets = [0, 64], sizes = [2, 32], strides = [1, 1]} : vector<2x128xf32> to vector<2x32xf32>
    %305 = math.tanh %304 : vector<2x32xf32>
    %306 = vector.extract_strided_slice %291 {offsets = [0, 96], sizes = [2, 32], strides = [1, 1]} : vector<2x128xf32> to vector<2x32xf32>
    %307 = arith.negf %306 : vector<2x32xf32>
    %308 = math.exp %307 : vector<2x32xf32>
    %cst_53 = arith.constant 1.000000e+00 : f32
    %309 = vector.broadcast %cst_53 : f32 to vector<2x32xf32>
    %310 = arith.addf %309, %308 : vector<2x32xf32>
    %311 = arith.divf %309, %310 : vector<2x32xf32>
    %312 = arith.mulf %303, %258 : vector<2x32xf32>
    %313 = arith.mulf %297, %305 : vector<2x32xf32>
    %314 = arith.addf %312, %313 : vector<2x32xf32>
    %315 = math.tanh %314 : vector<2x32xf32>
    %316 = arith.mulf %311, %315 : vector<2x32xf32>
    %317 = vector.extract_strided_slice %5 {offsets = [4, 128], sizes = [2, 128], strides = [1, 1]} : vector<16x256xf32> to vector<2x128xf32>
    %cst_54 = arith.constant dense<0.000000e+00> : vector<2x128xf32>
    %318 = tpu.matmul %288, %7, %cst_54 {dimension_numbers = #tpu.dot_dimension_numbers<[1], [0], [0], [1], [0, 0, 1, 1], [], []>} : vector<2x32xf32>, vector<32x128xf32>, vector<2x128xf32> -> vector<2x128xf32>
    %319 = arith.addf %317, %318 : vector<2x128xf32>
    %320 = vector.extract_strided_slice %319 {offsets = [0, 0], sizes = [2, 32], strides = [1, 1]} : vector<2x128xf32> to vector<2x32xf32>
    %321 = arith.negf %320 : vector<2x32xf32>
    %322 = math.exp %321 : vector<2x32xf32>
    %cst_55 = arith.constant 1.000000e+00 : f32
    %323 = vector.broadcast %cst_55 : f32 to vector<2x32xf32>
    %324 = arith.addf %323, %322 : vector<2x32xf32>
    %325 = arith.divf %323, %324 : vector<2x32xf32>
    %326 = vector.extract_strided_slice %319 {offsets = [0, 32], sizes = [2, 32], strides = [1, 1]} : vector<2x128xf32> to vector<2x32xf32>
    %327 = arith.negf %326 : vector<2x32xf32>
    %328 = math.exp %327 : vector<2x32xf32>
    %cst_56 = arith.constant 1.000000e+00 : f32
    %329 = vector.broadcast %cst_56 : f32 to vector<2x32xf32>
    %330 = arith.addf %329, %328 : vector<2x32xf32>
    %331 = arith.divf %329, %330 : vector<2x32xf32>
    %332 = vector.extract_strided_slice %319 {offsets = [0, 64], sizes = [2, 32], strides = [1, 1]} : vector<2x128xf32> to vector<2x32xf32>
    %333 = math.tanh %332 : vector<2x32xf32>
    %334 = vector.extract_strided_slice %319 {offsets = [0, 96], sizes = [2, 32], strides = [1, 1]} : vector<2x128xf32> to vector<2x32xf32>
    %335 = arith.negf %334 : vector<2x32xf32>
    %336 = math.exp %335 : vector<2x32xf32>
    %cst_57 = arith.constant 1.000000e+00 : f32
    %337 = vector.broadcast %cst_57 : f32 to vector<2x32xf32>
    %338 = arith.addf %337, %336 : vector<2x32xf32>
    %339 = arith.divf %337, %338 : vector<2x32xf32>
    %340 = arith.mulf %331, %286 : vector<2x32xf32>
    %341 = arith.mulf %325, %333 : vector<2x32xf32>
    %342 = arith.addf %340, %341 : vector<2x32xf32>
    %343 = math.tanh %342 : vector<2x32xf32>
    %344 = arith.mulf %339, %343 : vector<2x32xf32>
    %345 = vector.extract_strided_slice %5 {offsets = [12, 0], sizes = [2, 128], strides = [1, 1]} : vector<16x256xf32> to vector<2x128xf32>
    %cst_58 = arith.constant dense<0.000000e+00> : vector<2x128xf32>
    %346 = tpu.matmul %316, %6, %cst_58 {dimension_numbers = #tpu.dot_dimension_numbers<[1], [0], [0], [1], [0, 0, 1, 1], [], []>} : vector<2x32xf32>, vector<32x128xf32>, vector<2x128xf32> -> vector<2x128xf32>
    %347 = arith.addf %345, %346 : vector<2x128xf32>
    %348 = vector.extract_strided_slice %347 {offsets = [0, 0], sizes = [2, 32], strides = [1, 1]} : vector<2x128xf32> to vector<2x32xf32>
    %349 = arith.negf %348 : vector<2x32xf32>
    %350 = math.exp %349 : vector<2x32xf32>
    %cst_59 = arith.constant 1.000000e+00 : f32
    %351 = vector.broadcast %cst_59 : f32 to vector<2x32xf32>
    %352 = arith.addf %351, %350 : vector<2x32xf32>
    %353 = arith.divf %351, %352 : vector<2x32xf32>
    %354 = vector.extract_strided_slice %347 {offsets = [0, 32], sizes = [2, 32], strides = [1, 1]} : vector<2x128xf32> to vector<2x32xf32>
    %355 = arith.negf %354 : vector<2x32xf32>
    %356 = math.exp %355 : vector<2x32xf32>
    %cst_60 = arith.constant 1.000000e+00 : f32
    %357 = vector.broadcast %cst_60 : f32 to vector<2x32xf32>
    %358 = arith.addf %357, %356 : vector<2x32xf32>
    %359 = arith.divf %357, %358 : vector<2x32xf32>
    %360 = vector.extract_strided_slice %347 {offsets = [0, 64], sizes = [2, 32], strides = [1, 1]} : vector<2x128xf32> to vector<2x32xf32>
    %361 = math.tanh %360 : vector<2x32xf32>
    %362 = vector.extract_strided_slice %347 {offsets = [0, 96], sizes = [2, 32], strides = [1, 1]} : vector<2x128xf32> to vector<2x32xf32>
    %363 = arith.negf %362 : vector<2x32xf32>
    %364 = math.exp %363 : vector<2x32xf32>
    %cst_61 = arith.constant 1.000000e+00 : f32
    %365 = vector.broadcast %cst_61 : f32 to vector<2x32xf32>
    %366 = arith.addf %365, %364 : vector<2x32xf32>
    %367 = arith.divf %365, %366 : vector<2x32xf32>
    %368 = arith.mulf %359, %314 : vector<2x32xf32>
    %369 = arith.mulf %353, %361 : vector<2x32xf32>
    %370 = arith.addf %368, %369 : vector<2x32xf32>
    %371 = math.tanh %370 : vector<2x32xf32>
    %372 = arith.mulf %367, %371 : vector<2x32xf32>
    %373 = vector.extract_strided_slice %5 {offsets = [2, 128], sizes = [2, 128], strides = [1, 1]} : vector<16x256xf32> to vector<2x128xf32>
    %cst_62 = arith.constant dense<0.000000e+00> : vector<2x128xf32>
    %374 = tpu.matmul %344, %7, %cst_62 {dimension_numbers = #tpu.dot_dimension_numbers<[1], [0], [0], [1], [0, 0, 1, 1], [], []>} : vector<2x32xf32>, vector<32x128xf32>, vector<2x128xf32> -> vector<2x128xf32>
    %375 = arith.addf %373, %374 : vector<2x128xf32>
    %376 = vector.extract_strided_slice %375 {offsets = [0, 0], sizes = [2, 32], strides = [1, 1]} : vector<2x128xf32> to vector<2x32xf32>
    %377 = arith.negf %376 : vector<2x32xf32>
    %378 = math.exp %377 : vector<2x32xf32>
    %cst_63 = arith.constant 1.000000e+00 : f32
    %379 = vector.broadcast %cst_63 : f32 to vector<2x32xf32>
    %380 = arith.addf %379, %378 : vector<2x32xf32>
    %381 = arith.divf %379, %380 : vector<2x32xf32>
    %382 = vector.extract_strided_slice %375 {offsets = [0, 32], sizes = [2, 32], strides = [1, 1]} : vector<2x128xf32> to vector<2x32xf32>
    %383 = arith.negf %382 : vector<2x32xf32>
    %384 = math.exp %383 : vector<2x32xf32>
    %cst_64 = arith.constant 1.000000e+00 : f32
    %385 = vector.broadcast %cst_64 : f32 to vector<2x32xf32>
    %386 = arith.addf %385, %384 : vector<2x32xf32>
    %387 = arith.divf %385, %386 : vector<2x32xf32>
    %388 = vector.extract_strided_slice %375 {offsets = [0, 64], sizes = [2, 32], strides = [1, 1]} : vector<2x128xf32> to vector<2x32xf32>
    %389 = math.tanh %388 : vector<2x32xf32>
    %390 = vector.extract_strided_slice %375 {offsets = [0, 96], sizes = [2, 32], strides = [1, 1]} : vector<2x128xf32> to vector<2x32xf32>
    %391 = arith.negf %390 : vector<2x32xf32>
    %392 = math.exp %391 : vector<2x32xf32>
    %cst_65 = arith.constant 1.000000e+00 : f32
    %393 = vector.broadcast %cst_65 : f32 to vector<2x32xf32>
    %394 = arith.addf %393, %392 : vector<2x32xf32>
    %395 = arith.divf %393, %394 : vector<2x32xf32>
    %396 = arith.mulf %387, %342 : vector<2x32xf32>
    %397 = arith.mulf %381, %389 : vector<2x32xf32>
    %398 = arith.addf %396, %397 : vector<2x32xf32>
    %399 = math.tanh %398 : vector<2x32xf32>
    %400 = arith.mulf %395, %399 : vector<2x32xf32>
    %401 = vector.extract_strided_slice %5 {offsets = [14, 0], sizes = [2, 128], strides = [1, 1]} : vector<16x256xf32> to vector<2x128xf32>
    %cst_66 = arith.constant dense<0.000000e+00> : vector<2x128xf32>
    %402 = tpu.matmul %372, %6, %cst_66 {dimension_numbers = #tpu.dot_dimension_numbers<[1], [0], [0], [1], [0, 0, 1, 1], [], []>} : vector<2x32xf32>, vector<32x128xf32>, vector<2x128xf32> -> vector<2x128xf32>
    %403 = arith.addf %401, %402 : vector<2x128xf32>
    %404 = vector.extract_strided_slice %403 {offsets = [0, 0], sizes = [2, 32], strides = [1, 1]} : vector<2x128xf32> to vector<2x32xf32>
    %405 = arith.negf %404 : vector<2x32xf32>
    %406 = math.exp %405 : vector<2x32xf32>
    %cst_67 = arith.constant 1.000000e+00 : f32
    %407 = vector.broadcast %cst_67 : f32 to vector<2x32xf32>
    %408 = arith.addf %407, %406 : vector<2x32xf32>
    %409 = arith.divf %407, %408 : vector<2x32xf32>
    %410 = vector.extract_strided_slice %403 {offsets = [0, 32], sizes = [2, 32], strides = [1, 1]} : vector<2x128xf32> to vector<2x32xf32>
    %411 = arith.negf %410 : vector<2x32xf32>
    %412 = math.exp %411 : vector<2x32xf32>
    %cst_68 = arith.constant 1.000000e+00 : f32
    %413 = vector.broadcast %cst_68 : f32 to vector<2x32xf32>
    %414 = arith.addf %413, %412 : vector<2x32xf32>
    %415 = arith.divf %413, %414 : vector<2x32xf32>
    %416 = vector.extract_strided_slice %403 {offsets = [0, 64], sizes = [2, 32], strides = [1, 1]} : vector<2x128xf32> to vector<2x32xf32>
    %417 = math.tanh %416 : vector<2x32xf32>
    %418 = vector.extract_strided_slice %403 {offsets = [0, 96], sizes = [2, 32], strides = [1, 1]} : vector<2x128xf32> to vector<2x32xf32>
    %419 = arith.negf %418 : vector<2x32xf32>
    %420 = math.exp %419 : vector<2x32xf32>
    %cst_69 = arith.constant 1.000000e+00 : f32
    %421 = vector.broadcast %cst_69 : f32 to vector<2x32xf32>
    %422 = arith.addf %421, %420 : vector<2x32xf32>
    %423 = arith.divf %421, %422 : vector<2x32xf32>
    %424 = arith.mulf %415, %370 : vector<2x32xf32>
    %425 = arith.mulf %409, %417 : vector<2x32xf32>
    %426 = arith.addf %424, %425 : vector<2x32xf32>
    %427 = math.tanh %426 : vector<2x32xf32>
    %428 = arith.mulf %423, %427 : vector<2x32xf32>
    %429 = vector.extract_strided_slice %5 {offsets = [0, 128], sizes = [2, 128], strides = [1, 1]} : vector<16x256xf32> to vector<2x128xf32>
    %cst_70 = arith.constant dense<0.000000e+00> : vector<2x128xf32>
    %430 = tpu.matmul %400, %7, %cst_70 {dimension_numbers = #tpu.dot_dimension_numbers<[1], [0], [0], [1], [0, 0, 1, 1], [], []>} : vector<2x32xf32>, vector<32x128xf32>, vector<2x128xf32> -> vector<2x128xf32>
    %431 = arith.addf %429, %430 : vector<2x128xf32>
    %432 = vector.extract_strided_slice %431 {offsets = [0, 0], sizes = [2, 32], strides = [1, 1]} : vector<2x128xf32> to vector<2x32xf32>
    %433 = arith.negf %432 : vector<2x32xf32>
    %434 = math.exp %433 : vector<2x32xf32>
    %cst_71 = arith.constant 1.000000e+00 : f32
    %435 = vector.broadcast %cst_71 : f32 to vector<2x32xf32>
    %436 = arith.addf %435, %434 : vector<2x32xf32>
    %437 = arith.divf %435, %436 : vector<2x32xf32>
    %438 = vector.extract_strided_slice %431 {offsets = [0, 32], sizes = [2, 32], strides = [1, 1]} : vector<2x128xf32> to vector<2x32xf32>
    %439 = arith.negf %438 : vector<2x32xf32>
    %440 = math.exp %439 : vector<2x32xf32>
    %cst_72 = arith.constant 1.000000e+00 : f32
    %441 = vector.broadcast %cst_72 : f32 to vector<2x32xf32>
    %442 = arith.addf %441, %440 : vector<2x32xf32>
    %443 = arith.divf %441, %442 : vector<2x32xf32>
    %444 = vector.extract_strided_slice %431 {offsets = [0, 64], sizes = [2, 32], strides = [1, 1]} : vector<2x128xf32> to vector<2x32xf32>
    %445 = math.tanh %444 : vector<2x32xf32>
    %446 = vector.extract_strided_slice %431 {offsets = [0, 96], sizes = [2, 32], strides = [1, 1]} : vector<2x128xf32> to vector<2x32xf32>
    %447 = arith.negf %446 : vector<2x32xf32>
    %448 = math.exp %447 : vector<2x32xf32>
    %cst_73 = arith.constant 1.000000e+00 : f32
    %449 = vector.broadcast %cst_73 : f32 to vector<2x32xf32>
    %450 = arith.addf %449, %448 : vector<2x32xf32>
    %451 = arith.divf %449, %450 : vector<2x32xf32>
    %452 = arith.mulf %443, %398 : vector<2x32xf32>
    %453 = arith.mulf %437, %445 : vector<2x32xf32>
    %454 = arith.addf %452, %453 : vector<2x32xf32>
    %455 = math.tanh %454 : vector<2x32xf32>
    %456 = arith.mulf %451, %455 : vector<2x32xf32>
    %457 = tpu.concatenate %36, %456 in 1 : vector<2x32xf32>, vector<2x32xf32> -> vector<2x64xf32>
    %458 = tpu.concatenate %92, %400 in 1 : vector<2x32xf32>, vector<2x32xf32> -> vector<2x64xf32>
    %459 = tpu.concatenate %148, %344 in 1 : vector<2x32xf32>, vector<2x32xf32> -> vector<2x64xf32>
    %460 = tpu.concatenate %204, %288 in 1 : vector<2x32xf32>, vector<2x32xf32> -> vector<2x64xf32>
    %461 = tpu.concatenate %260, %232 in 1 : vector<2x32xf32>, vector<2x32xf32> -> vector<2x64xf32>
    %462 = tpu.concatenate %316, %176 in 1 : vector<2x32xf32>, vector<2x32xf32> -> vector<2x64xf32>
    %463 = tpu.concatenate %372, %120 in 1 : vector<2x32xf32>, vector<2x32xf32> -> vector<2x64xf32>
    %464 = tpu.concatenate %428, %64 in 1 : vector<2x32xf32>, vector<2x32xf32> -> vector<2x64xf32>
    %465 = tpu.concatenate %457, %458, %459, %460, %461, %462, %463, %464 in 0 : vector<2x64xf32>, vector<2x64xf32>, vector<2x64xf32>, vector<2x64xf32>, vector<2x64xf32>, vector<2x64xf32>, vector<2x64xf32>, vector<2x64xf32> -> vector<16x64xf32>
    %c0_74 = arith.constant 0 : index
    %c0_75 = arith.constant 0 : index
    %466 = vector.load %arg6[%c0_74, %c0_75] : memref<64x256xf32, #tpu.memory_space<vmem>>, vector<64x256xf32>
    %cst_76 = arith.constant dense<0.000000e+00> : vector<16x256xf32>
    %467 = tpu.matmul %465, %466, %cst_76 {dimension_numbers = #tpu.dot_dimension_numbers<[1], [0], [0], [1], [0, 0, 1, 1], [], []>} : vector<16x64xf32>, vector<64x256xf32>, vector<16x256xf32> -> vector<16x256xf32>
    %c0_77 = arith.constant 0 : index
    %c0_78 = arith.constant 0 : index
    %468 = vector.load %arg7[%c0_77, %c0_78] : memref<1x256xf32, #tpu.memory_space<vmem>>, vector<1x256xf32>
    %469 = vector.broadcast %468 : vector<1x256xf32> to vector<16x256xf32>
    %470 = arith.addf %467, %469 : vector<16x256xf32>
    %c0_79 = arith.constant 0 : index
    %c0_80 = arith.constant 0 : index
    %471 = vector.load %arg8[%c0_79, %c0_80] : memref<32x128xf32, #tpu.memory_space<vmem>>, vector<32x128xf32>
    %c0_81 = arith.constant 0 : index
    %c0_82 = arith.constant 0 : index
    %472 = vector.load %arg9[%c0_81, %c0_82] : memref<32x128xf32, #tpu.memory_space<vmem>>, vector<32x128xf32>
    %cst_83 = arith.constant 0.000000e+00 : f32
    %473 = vector.broadcast %cst_83 : f32 to vector<2x32xf32>
    %474 = vector.extract_strided_slice %470 {offsets = [0, 0], sizes = [2, 128], strides = [1, 1]} : vector<16x256xf32> to vector<2x128xf32>
    %cst_84 = arith.constant dense<0.000000e+00> : vector<2x128xf32>
    %475 = tpu.matmul %473, %471, %cst_84 {dimension_numbers = #tpu.dot_dimension_numbers<[1], [0], [0], [1], [0, 0, 1, 1], [], []>} : vector<2x32xf32>, vector<32x128xf32>, vector<2x128xf32> -> vector<2x128xf32>
    %476 = arith.addf %474, %475 : vector<2x128xf32>
    %477 = vector.extract_strided_slice %476 {offsets = [0, 0], sizes = [2, 32], strides = [1, 1]} : vector<2x128xf32> to vector<2x32xf32>
    %478 = arith.negf %477 : vector<2x32xf32>
    %479 = math.exp %478 : vector<2x32xf32>
    %cst_85 = arith.constant 1.000000e+00 : f32
    %480 = vector.broadcast %cst_85 : f32 to vector<2x32xf32>
    %481 = arith.addf %480, %479 : vector<2x32xf32>
    %482 = arith.divf %480, %481 : vector<2x32xf32>
    %483 = vector.extract_strided_slice %476 {offsets = [0, 32], sizes = [2, 32], strides = [1, 1]} : vector<2x128xf32> to vector<2x32xf32>
    %484 = arith.negf %483 : vector<2x32xf32>
    %485 = math.exp %484 : vector<2x32xf32>
    %cst_86 = arith.constant 1.000000e+00 : f32
    %486 = vector.broadcast %cst_86 : f32 to vector<2x32xf32>
    %487 = arith.addf %486, %485 : vector<2x32xf32>
    %488 = arith.divf %486, %487 : vector<2x32xf32>
    %489 = vector.extract_strided_slice %476 {offsets = [0, 64], sizes = [2, 32], strides = [1, 1]} : vector<2x128xf32> to vector<2x32xf32>
    %490 = math.tanh %489 : vector<2x32xf32>
    %491 = vector.extract_strided_slice %476 {offsets = [0, 96], sizes = [2, 32], strides = [1, 1]} : vector<2x128xf32> to vector<2x32xf32>
    %492 = arith.negf %491 : vector<2x32xf32>
    %493 = math.exp %492 : vector<2x32xf32>
    %cst_87 = arith.constant 1.000000e+00 : f32
    %494 = vector.broadcast %cst_87 : f32 to vector<2x32xf32>
    %495 = arith.addf %494, %493 : vector<2x32xf32>
    %496 = arith.divf %494, %495 : vector<2x32xf32>
    %497 = arith.mulf %488, %473 : vector<2x32xf32>
    %498 = arith.mulf %482, %490 : vector<2x32xf32>
    %499 = arith.addf %497, %498 : vector<2x32xf32>
    %500 = math.tanh %499 : vector<2x32xf32>
    %501 = arith.mulf %496, %500 : vector<2x32xf32>
    %502 = vector.extract_strided_slice %470 {offsets = [14, 128], sizes = [2, 128], strides = [1, 1]} : vector<16x256xf32> to vector<2x128xf32>
    %cst_88 = arith.constant dense<0.000000e+00> : vector<2x128xf32>
    %503 = tpu.matmul %473, %472, %cst_88 {dimension_numbers = #tpu.dot_dimension_numbers<[1], [0], [0], [1], [0, 0, 1, 1], [], []>} : vector<2x32xf32>, vector<32x128xf32>, vector<2x128xf32> -> vector<2x128xf32>
    %504 = arith.addf %502, %503 : vector<2x128xf32>
    %505 = vector.extract_strided_slice %504 {offsets = [0, 0], sizes = [2, 32], strides = [1, 1]} : vector<2x128xf32> to vector<2x32xf32>
    %506 = arith.negf %505 : vector<2x32xf32>
    %507 = math.exp %506 : vector<2x32xf32>
    %cst_89 = arith.constant 1.000000e+00 : f32
    %508 = vector.broadcast %cst_89 : f32 to vector<2x32xf32>
    %509 = arith.addf %508, %507 : vector<2x32xf32>
    %510 = arith.divf %508, %509 : vector<2x32xf32>
    %511 = vector.extract_strided_slice %504 {offsets = [0, 32], sizes = [2, 32], strides = [1, 1]} : vector<2x128xf32> to vector<2x32xf32>
    %512 = arith.negf %511 : vector<2x32xf32>
    %513 = math.exp %512 : vector<2x32xf32>
    %cst_90 = arith.constant 1.000000e+00 : f32
    %514 = vector.broadcast %cst_90 : f32 to vector<2x32xf32>
    %515 = arith.addf %514, %513 : vector<2x32xf32>
    %516 = arith.divf %514, %515 : vector<2x32xf32>
    %517 = vector.extract_strided_slice %504 {offsets = [0, 64], sizes = [2, 32], strides = [1, 1]} : vector<2x128xf32> to vector<2x32xf32>
    %518 = math.tanh %517 : vector<2x32xf32>
    %519 = vector.extract_strided_slice %504 {offsets = [0, 96], sizes = [2, 32], strides = [1, 1]} : vector<2x128xf32> to vector<2x32xf32>
    %520 = arith.negf %519 : vector<2x32xf32>
    %521 = math.exp %520 : vector<2x32xf32>
    %cst_91 = arith.constant 1.000000e+00 : f32
    %522 = vector.broadcast %cst_91 : f32 to vector<2x32xf32>
    %523 = arith.addf %522, %521 : vector<2x32xf32>
    %524 = arith.divf %522, %523 : vector<2x32xf32>
    %525 = arith.mulf %516, %473 : vector<2x32xf32>
    %526 = arith.mulf %510, %518 : vector<2x32xf32>
    %527 = arith.addf %525, %526 : vector<2x32xf32>
    %528 = math.tanh %527 : vector<2x32xf32>
    %529 = arith.mulf %524, %528 : vector<2x32xf32>
    %530 = vector.extract_strided_slice %470 {offsets = [2, 0], sizes = [2, 128], strides = [1, 1]} : vector<16x256xf32> to vector<2x128xf32>
    %cst_92 = arith.constant dense<0.000000e+00> : vector<2x128xf32>
    %531 = tpu.matmul %501, %471, %cst_92 {dimension_numbers = #tpu.dot_dimension_numbers<[1], [0], [0], [1], [0, 0, 1, 1], [], []>} : vector<2x32xf32>, vector<32x128xf32>, vector<2x128xf32> -> vector<2x128xf32>
    %532 = arith.addf %530, %531 : vector<2x128xf32>
    %533 = vector.extract_strided_slice %532 {offsets = [0, 0], sizes = [2, 32], strides = [1, 1]} : vector<2x128xf32> to vector<2x32xf32>
    %534 = arith.negf %533 : vector<2x32xf32>
    %535 = math.exp %534 : vector<2x32xf32>
    %cst_93 = arith.constant 1.000000e+00 : f32
    %536 = vector.broadcast %cst_93 : f32 to vector<2x32xf32>
    %537 = arith.addf %536, %535 : vector<2x32xf32>
    %538 = arith.divf %536, %537 : vector<2x32xf32>
    %539 = vector.extract_strided_slice %532 {offsets = [0, 32], sizes = [2, 32], strides = [1, 1]} : vector<2x128xf32> to vector<2x32xf32>
    %540 = arith.negf %539 : vector<2x32xf32>
    %541 = math.exp %540 : vector<2x32xf32>
    %cst_94 = arith.constant 1.000000e+00 : f32
    %542 = vector.broadcast %cst_94 : f32 to vector<2x32xf32>
    %543 = arith.addf %542, %541 : vector<2x32xf32>
    %544 = arith.divf %542, %543 : vector<2x32xf32>
    %545 = vector.extract_strided_slice %532 {offsets = [0, 64], sizes = [2, 32], strides = [1, 1]} : vector<2x128xf32> to vector<2x32xf32>
    %546 = math.tanh %545 : vector<2x32xf32>
    %547 = vector.extract_strided_slice %532 {offsets = [0, 96], sizes = [2, 32], strides = [1, 1]} : vector<2x128xf32> to vector<2x32xf32>
    %548 = arith.negf %547 : vector<2x32xf32>
    %549 = math.exp %548 : vector<2x32xf32>
    %cst_95 = arith.constant 1.000000e+00 : f32
    %550 = vector.broadcast %cst_95 : f32 to vector<2x32xf32>
    %551 = arith.addf %550, %549 : vector<2x32xf32>
    %552 = arith.divf %550, %551 : vector<2x32xf32>
    %553 = arith.mulf %544, %499 : vector<2x32xf32>
    %554 = arith.mulf %538, %546 : vector<2x32xf32>
    %555 = arith.addf %553, %554 : vector<2x32xf32>
    %556 = math.tanh %555 : vector<2x32xf32>
    %557 = arith.mulf %552, %556 : vector<2x32xf32>
    %558 = vector.extract_strided_slice %470 {offsets = [12, 128], sizes = [2, 128], strides = [1, 1]} : vector<16x256xf32> to vector<2x128xf32>
    %cst_96 = arith.constant dense<0.000000e+00> : vector<2x128xf32>
    %559 = tpu.matmul %529, %472, %cst_96 {dimension_numbers = #tpu.dot_dimension_numbers<[1], [0], [0], [1], [0, 0, 1, 1], [], []>} : vector<2x32xf32>, vector<32x128xf32>, vector<2x128xf32> -> vector<2x128xf32>
    %560 = arith.addf %558, %559 : vector<2x128xf32>
    %561 = vector.extract_strided_slice %560 {offsets = [0, 0], sizes = [2, 32], strides = [1, 1]} : vector<2x128xf32> to vector<2x32xf32>
    %562 = arith.negf %561 : vector<2x32xf32>
    %563 = math.exp %562 : vector<2x32xf32>
    %cst_97 = arith.constant 1.000000e+00 : f32
    %564 = vector.broadcast %cst_97 : f32 to vector<2x32xf32>
    %565 = arith.addf %564, %563 : vector<2x32xf32>
    %566 = arith.divf %564, %565 : vector<2x32xf32>
    %567 = vector.extract_strided_slice %560 {offsets = [0, 32], sizes = [2, 32], strides = [1, 1]} : vector<2x128xf32> to vector<2x32xf32>
    %568 = arith.negf %567 : vector<2x32xf32>
    %569 = math.exp %568 : vector<2x32xf32>
    %cst_98 = arith.constant 1.000000e+00 : f32
    %570 = vector.broadcast %cst_98 : f32 to vector<2x32xf32>
    %571 = arith.addf %570, %569 : vector<2x32xf32>
    %572 = arith.divf %570, %571 : vector<2x32xf32>
    %573 = vector.extract_strided_slice %560 {offsets = [0, 64], sizes = [2, 32], strides = [1, 1]} : vector<2x128xf32> to vector<2x32xf32>
    %574 = math.tanh %573 : vector<2x32xf32>
    %575 = vector.extract_strided_slice %560 {offsets = [0, 96], sizes = [2, 32], strides = [1, 1]} : vector<2x128xf32> to vector<2x32xf32>
    %576 = arith.negf %575 : vector<2x32xf32>
    %577 = math.exp %576 : vector<2x32xf32>
    %cst_99 = arith.constant 1.000000e+00 : f32
    %578 = vector.broadcast %cst_99 : f32 to vector<2x32xf32>
    %579 = arith.addf %578, %577 : vector<2x32xf32>
    %580 = arith.divf %578, %579 : vector<2x32xf32>
    %581 = arith.mulf %572, %527 : vector<2x32xf32>
    %582 = arith.mulf %566, %574 : vector<2x32xf32>
    %583 = arith.addf %581, %582 : vector<2x32xf32>
    %584 = math.tanh %583 : vector<2x32xf32>
    %585 = arith.mulf %580, %584 : vector<2x32xf32>
    %586 = vector.extract_strided_slice %470 {offsets = [4, 0], sizes = [2, 128], strides = [1, 1]} : vector<16x256xf32> to vector<2x128xf32>
    %cst_100 = arith.constant dense<0.000000e+00> : vector<2x128xf32>
    %587 = tpu.matmul %557, %471, %cst_100 {dimension_numbers = #tpu.dot_dimension_numbers<[1], [0], [0], [1], [0, 0, 1, 1], [], []>} : vector<2x32xf32>, vector<32x128xf32>, vector<2x128xf32> -> vector<2x128xf32>
    %588 = arith.addf %586, %587 : vector<2x128xf32>
    %589 = vector.extract_strided_slice %588 {offsets = [0, 0], sizes = [2, 32], strides = [1, 1]} : vector<2x128xf32> to vector<2x32xf32>
    %590 = arith.negf %589 : vector<2x32xf32>
    %591 = math.exp %590 : vector<2x32xf32>
    %cst_101 = arith.constant 1.000000e+00 : f32
    %592 = vector.broadcast %cst_101 : f32 to vector<2x32xf32>
    %593 = arith.addf %592, %591 : vector<2x32xf32>
    %594 = arith.divf %592, %593 : vector<2x32xf32>
    %595 = vector.extract_strided_slice %588 {offsets = [0, 32], sizes = [2, 32], strides = [1, 1]} : vector<2x128xf32> to vector<2x32xf32>
    %596 = arith.negf %595 : vector<2x32xf32>
    %597 = math.exp %596 : vector<2x32xf32>
    %cst_102 = arith.constant 1.000000e+00 : f32
    %598 = vector.broadcast %cst_102 : f32 to vector<2x32xf32>
    %599 = arith.addf %598, %597 : vector<2x32xf32>
    %600 = arith.divf %598, %599 : vector<2x32xf32>
    %601 = vector.extract_strided_slice %588 {offsets = [0, 64], sizes = [2, 32], strides = [1, 1]} : vector<2x128xf32> to vector<2x32xf32>
    %602 = math.tanh %601 : vector<2x32xf32>
    %603 = vector.extract_strided_slice %588 {offsets = [0, 96], sizes = [2, 32], strides = [1, 1]} : vector<2x128xf32> to vector<2x32xf32>
    %604 = arith.negf %603 : vector<2x32xf32>
    %605 = math.exp %604 : vector<2x32xf32>
    %cst_103 = arith.constant 1.000000e+00 : f32
    %606 = vector.broadcast %cst_103 : f32 to vector<2x32xf32>
    %607 = arith.addf %606, %605 : vector<2x32xf32>
    %608 = arith.divf %606, %607 : vector<2x32xf32>
    %609 = arith.mulf %600, %555 : vector<2x32xf32>
    %610 = arith.mulf %594, %602 : vector<2x32xf32>
    %611 = arith.addf %609, %610 : vector<2x32xf32>
    %612 = math.tanh %611 : vector<2x32xf32>
    %613 = arith.mulf %608, %612 : vector<2x32xf32>
    %614 = vector.extract_strided_slice %470 {offsets = [10, 128], sizes = [2, 128], strides = [1, 1]} : vector<16x256xf32> to vector<2x128xf32>
    %cst_104 = arith.constant dense<0.000000e+00> : vector<2x128xf32>
    %615 = tpu.matmul %585, %472, %cst_104 {dimension_numbers = #tpu.dot_dimension_numbers<[1], [0], [0], [1], [0, 0, 1, 1], [], []>} : vector<2x32xf32>, vector<32x128xf32>, vector<2x128xf32> -> vector<2x128xf32>
    %616 = arith.addf %614, %615 : vector<2x128xf32>
    %617 = vector.extract_strided_slice %616 {offsets = [0, 0], sizes = [2, 32], strides = [1, 1]} : vector<2x128xf32> to vector<2x32xf32>
    %618 = arith.negf %617 : vector<2x32xf32>
    %619 = math.exp %618 : vector<2x32xf32>
    %cst_105 = arith.constant 1.000000e+00 : f32
    %620 = vector.broadcast %cst_105 : f32 to vector<2x32xf32>
    %621 = arith.addf %620, %619 : vector<2x32xf32>
    %622 = arith.divf %620, %621 : vector<2x32xf32>
    %623 = vector.extract_strided_slice %616 {offsets = [0, 32], sizes = [2, 32], strides = [1, 1]} : vector<2x128xf32> to vector<2x32xf32>
    %624 = arith.negf %623 : vector<2x32xf32>
    %625 = math.exp %624 : vector<2x32xf32>
    %cst_106 = arith.constant 1.000000e+00 : f32
    %626 = vector.broadcast %cst_106 : f32 to vector<2x32xf32>
    %627 = arith.addf %626, %625 : vector<2x32xf32>
    %628 = arith.divf %626, %627 : vector<2x32xf32>
    %629 = vector.extract_strided_slice %616 {offsets = [0, 64], sizes = [2, 32], strides = [1, 1]} : vector<2x128xf32> to vector<2x32xf32>
    %630 = math.tanh %629 : vector<2x32xf32>
    %631 = vector.extract_strided_slice %616 {offsets = [0, 96], sizes = [2, 32], strides = [1, 1]} : vector<2x128xf32> to vector<2x32xf32>
    %632 = arith.negf %631 : vector<2x32xf32>
    %633 = math.exp %632 : vector<2x32xf32>
    %cst_107 = arith.constant 1.000000e+00 : f32
    %634 = vector.broadcast %cst_107 : f32 to vector<2x32xf32>
    %635 = arith.addf %634, %633 : vector<2x32xf32>
    %636 = arith.divf %634, %635 : vector<2x32xf32>
    %637 = arith.mulf %628, %583 : vector<2x32xf32>
    %638 = arith.mulf %622, %630 : vector<2x32xf32>
    %639 = arith.addf %637, %638 : vector<2x32xf32>
    %640 = math.tanh %639 : vector<2x32xf32>
    %641 = arith.mulf %636, %640 : vector<2x32xf32>
    %642 = vector.extract_strided_slice %470 {offsets = [6, 0], sizes = [2, 128], strides = [1, 1]} : vector<16x256xf32> to vector<2x128xf32>
    %cst_108 = arith.constant dense<0.000000e+00> : vector<2x128xf32>
    %643 = tpu.matmul %613, %471, %cst_108 {dimension_numbers = #tpu.dot_dimension_numbers<[1], [0], [0], [1], [0, 0, 1, 1], [], []>} : vector<2x32xf32>, vector<32x128xf32>, vector<2x128xf32> -> vector<2x128xf32>
    %644 = arith.addf %642, %643 : vector<2x128xf32>
    %645 = vector.extract_strided_slice %644 {offsets = [0, 0], sizes = [2, 32], strides = [1, 1]} : vector<2x128xf32> to vector<2x32xf32>
    %646 = arith.negf %645 : vector<2x32xf32>
    %647 = math.exp %646 : vector<2x32xf32>
    %cst_109 = arith.constant 1.000000e+00 : f32
    %648 = vector.broadcast %cst_109 : f32 to vector<2x32xf32>
    %649 = arith.addf %648, %647 : vector<2x32xf32>
    %650 = arith.divf %648, %649 : vector<2x32xf32>
    %651 = vector.extract_strided_slice %644 {offsets = [0, 32], sizes = [2, 32], strides = [1, 1]} : vector<2x128xf32> to vector<2x32xf32>
    %652 = arith.negf %651 : vector<2x32xf32>
    %653 = math.exp %652 : vector<2x32xf32>
    %cst_110 = arith.constant 1.000000e+00 : f32
    %654 = vector.broadcast %cst_110 : f32 to vector<2x32xf32>
    %655 = arith.addf %654, %653 : vector<2x32xf32>
    %656 = arith.divf %654, %655 : vector<2x32xf32>
    %657 = vector.extract_strided_slice %644 {offsets = [0, 64], sizes = [2, 32], strides = [1, 1]} : vector<2x128xf32> to vector<2x32xf32>
    %658 = math.tanh %657 : vector<2x32xf32>
    %659 = vector.extract_strided_slice %644 {offsets = [0, 96], sizes = [2, 32], strides = [1, 1]} : vector<2x128xf32> to vector<2x32xf32>
    %660 = arith.negf %659 : vector<2x32xf32>
    %661 = math.exp %660 : vector<2x32xf32>
    %cst_111 = arith.constant 1.000000e+00 : f32
    %662 = vector.broadcast %cst_111 : f32 to vector<2x32xf32>
    %663 = arith.addf %662, %661 : vector<2x32xf32>
    %664 = arith.divf %662, %663 : vector<2x32xf32>
    %665 = arith.mulf %656, %611 : vector<2x32xf32>
    %666 = arith.mulf %650, %658 : vector<2x32xf32>
    %667 = arith.addf %665, %666 : vector<2x32xf32>
    %668 = math.tanh %667 : vector<2x32xf32>
    %669 = arith.mulf %664, %668 : vector<2x32xf32>
    %670 = vector.extract_strided_slice %470 {offsets = [8, 128], sizes = [2, 128], strides = [1, 1]} : vector<16x256xf32> to vector<2x128xf32>
    %cst_112 = arith.constant dense<0.000000e+00> : vector<2x128xf32>
    %671 = tpu.matmul %641, %472, %cst_112 {dimension_numbers = #tpu.dot_dimension_numbers<[1], [0], [0], [1], [0, 0, 1, 1], [], []>} : vector<2x32xf32>, vector<32x128xf32>, vector<2x128xf32> -> vector<2x128xf32>
    %672 = arith.addf %670, %671 : vector<2x128xf32>
    %673 = vector.extract_strided_slice %672 {offsets = [0, 0], sizes = [2, 32], strides = [1, 1]} : vector<2x128xf32> to vector<2x32xf32>
    %674 = arith.negf %673 : vector<2x32xf32>
    %675 = math.exp %674 : vector<2x32xf32>
    %cst_113 = arith.constant 1.000000e+00 : f32
    %676 = vector.broadcast %cst_113 : f32 to vector<2x32xf32>
    %677 = arith.addf %676, %675 : vector<2x32xf32>
    %678 = arith.divf %676, %677 : vector<2x32xf32>
    %679 = vector.extract_strided_slice %672 {offsets = [0, 32], sizes = [2, 32], strides = [1, 1]} : vector<2x128xf32> to vector<2x32xf32>
    %680 = arith.negf %679 : vector<2x32xf32>
    %681 = math.exp %680 : vector<2x32xf32>
    %cst_114 = arith.constant 1.000000e+00 : f32
    %682 = vector.broadcast %cst_114 : f32 to vector<2x32xf32>
    %683 = arith.addf %682, %681 : vector<2x32xf32>
    %684 = arith.divf %682, %683 : vector<2x32xf32>
    %685 = vector.extract_strided_slice %672 {offsets = [0, 64], sizes = [2, 32], strides = [1, 1]} : vector<2x128xf32> to vector<2x32xf32>
    %686 = math.tanh %685 : vector<2x32xf32>
    %687 = vector.extract_strided_slice %672 {offsets = [0, 96], sizes = [2, 32], strides = [1, 1]} : vector<2x128xf32> to vector<2x32xf32>
    %688 = arith.negf %687 : vector<2x32xf32>
    %689 = math.exp %688 : vector<2x32xf32>
    %cst_115 = arith.constant 1.000000e+00 : f32
    %690 = vector.broadcast %cst_115 : f32 to vector<2x32xf32>
    %691 = arith.addf %690, %689 : vector<2x32xf32>
    %692 = arith.divf %690, %691 : vector<2x32xf32>
    %693 = arith.mulf %684, %639 : vector<2x32xf32>
    %694 = arith.mulf %678, %686 : vector<2x32xf32>
    %695 = arith.addf %693, %694 : vector<2x32xf32>
    %696 = math.tanh %695 : vector<2x32xf32>
    %697 = arith.mulf %692, %696 : vector<2x32xf32>
    %698 = vector.extract_strided_slice %470 {offsets = [8, 0], sizes = [2, 128], strides = [1, 1]} : vector<16x256xf32> to vector<2x128xf32>
    %cst_116 = arith.constant dense<0.000000e+00> : vector<2x128xf32>
    %699 = tpu.matmul %669, %471, %cst_116 {dimension_numbers = #tpu.dot_dimension_numbers<[1], [0], [0], [1], [0, 0, 1, 1], [], []>} : vector<2x32xf32>, vector<32x128xf32>, vector<2x128xf32> -> vector<2x128xf32>
    %700 = arith.addf %698, %699 : vector<2x128xf32>
    %701 = vector.extract_strided_slice %700 {offsets = [0, 0], sizes = [2, 32], strides = [1, 1]} : vector<2x128xf32> to vector<2x32xf32>
    %702 = arith.negf %701 : vector<2x32xf32>
    %703 = math.exp %702 : vector<2x32xf32>
    %cst_117 = arith.constant 1.000000e+00 : f32
    %704 = vector.broadcast %cst_117 : f32 to vector<2x32xf32>
    %705 = arith.addf %704, %703 : vector<2x32xf32>
    %706 = arith.divf %704, %705 : vector<2x32xf32>
    %707 = vector.extract_strided_slice %700 {offsets = [0, 32], sizes = [2, 32], strides = [1, 1]} : vector<2x128xf32> to vector<2x32xf32>
    %708 = arith.negf %707 : vector<2x32xf32>
    %709 = math.exp %708 : vector<2x32xf32>
    %cst_118 = arith.constant 1.000000e+00 : f32
    %710 = vector.broadcast %cst_118 : f32 to vector<2x32xf32>
    %711 = arith.addf %710, %709 : vector<2x32xf32>
    %712 = arith.divf %710, %711 : vector<2x32xf32>
    %713 = vector.extract_strided_slice %700 {offsets = [0, 64], sizes = [2, 32], strides = [1, 1]} : vector<2x128xf32> to vector<2x32xf32>
    %714 = math.tanh %713 : vector<2x32xf32>
    %715 = vector.extract_strided_slice %700 {offsets = [0, 96], sizes = [2, 32], strides = [1, 1]} : vector<2x128xf32> to vector<2x32xf32>
    %716 = arith.negf %715 : vector<2x32xf32>
    %717 = math.exp %716 : vector<2x32xf32>
    %cst_119 = arith.constant 1.000000e+00 : f32
    %718 = vector.broadcast %cst_119 : f32 to vector<2x32xf32>
    %719 = arith.addf %718, %717 : vector<2x32xf32>
    %720 = arith.divf %718, %719 : vector<2x32xf32>
    %721 = arith.mulf %712, %667 : vector<2x32xf32>
    %722 = arith.mulf %706, %714 : vector<2x32xf32>
    %723 = arith.addf %721, %722 : vector<2x32xf32>
    %724 = math.tanh %723 : vector<2x32xf32>
    %725 = arith.mulf %720, %724 : vector<2x32xf32>
    %726 = vector.extract_strided_slice %470 {offsets = [6, 128], sizes = [2, 128], strides = [1, 1]} : vector<16x256xf32> to vector<2x128xf32>
    %cst_120 = arith.constant dense<0.000000e+00> : vector<2x128xf32>
    %727 = tpu.matmul %697, %472, %cst_120 {dimension_numbers = #tpu.dot_dimension_numbers<[1], [0], [0], [1], [0, 0, 1, 1], [], []>} : vector<2x32xf32>, vector<32x128xf32>, vector<2x128xf32> -> vector<2x128xf32>
    %728 = arith.addf %726, %727 : vector<2x128xf32>
    %729 = vector.extract_strided_slice %728 {offsets = [0, 0], sizes = [2, 32], strides = [1, 1]} : vector<2x128xf32> to vector<2x32xf32>
    %730 = arith.negf %729 : vector<2x32xf32>
    %731 = math.exp %730 : vector<2x32xf32>
    %cst_121 = arith.constant 1.000000e+00 : f32
    %732 = vector.broadcast %cst_121 : f32 to vector<2x32xf32>
    %733 = arith.addf %732, %731 : vector<2x32xf32>
    %734 = arith.divf %732, %733 : vector<2x32xf32>
    %735 = vector.extract_strided_slice %728 {offsets = [0, 32], sizes = [2, 32], strides = [1, 1]} : vector<2x128xf32> to vector<2x32xf32>
    %736 = arith.negf %735 : vector<2x32xf32>
    %737 = math.exp %736 : vector<2x32xf32>
    %cst_122 = arith.constant 1.000000e+00 : f32
    %738 = vector.broadcast %cst_122 : f32 to vector<2x32xf32>
    %739 = arith.addf %738, %737 : vector<2x32xf32>
    %740 = arith.divf %738, %739 : vector<2x32xf32>
    %741 = vector.extract_strided_slice %728 {offsets = [0, 64], sizes = [2, 32], strides = [1, 1]} : vector<2x128xf32> to vector<2x32xf32>
    %742 = math.tanh %741 : vector<2x32xf32>
    %743 = vector.extract_strided_slice %728 {offsets = [0, 96], sizes = [2, 32], strides = [1, 1]} : vector<2x128xf32> to vector<2x32xf32>
    %744 = arith.negf %743 : vector<2x32xf32>
    %745 = math.exp %744 : vector<2x32xf32>
    %cst_123 = arith.constant 1.000000e+00 : f32
    %746 = vector.broadcast %cst_123 : f32 to vector<2x32xf32>
    %747 = arith.addf %746, %745 : vector<2x32xf32>
    %748 = arith.divf %746, %747 : vector<2x32xf32>
    %749 = arith.mulf %740, %695 : vector<2x32xf32>
    %750 = arith.mulf %734, %742 : vector<2x32xf32>
    %751 = arith.addf %749, %750 : vector<2x32xf32>
    %752 = math.tanh %751 : vector<2x32xf32>
    %753 = arith.mulf %748, %752 : vector<2x32xf32>
    %754 = vector.extract_strided_slice %470 {offsets = [10, 0], sizes = [2, 128], strides = [1, 1]} : vector<16x256xf32> to vector<2x128xf32>
    %cst_124 = arith.constant dense<0.000000e+00> : vector<2x128xf32>
    %755 = tpu.matmul %725, %471, %cst_124 {dimension_numbers = #tpu.dot_dimension_numbers<[1], [0], [0], [1], [0, 0, 1, 1], [], []>} : vector<2x32xf32>, vector<32x128xf32>, vector<2x128xf32> -> vector<2x128xf32>
    %756 = arith.addf %754, %755 : vector<2x128xf32>
    %757 = vector.extract_strided_slice %756 {offsets = [0, 0], sizes = [2, 32], strides = [1, 1]} : vector<2x128xf32> to vector<2x32xf32>
    %758 = arith.negf %757 : vector<2x32xf32>
    %759 = math.exp %758 : vector<2x32xf32>
    %cst_125 = arith.constant 1.000000e+00 : f32
    %760 = vector.broadcast %cst_125 : f32 to vector<2x32xf32>
    %761 = arith.addf %760, %759 : vector<2x32xf32>
    %762 = arith.divf %760, %761 : vector<2x32xf32>
    %763 = vector.extract_strided_slice %756 {offsets = [0, 32], sizes = [2, 32], strides = [1, 1]} : vector<2x128xf32> to vector<2x32xf32>
    %764 = arith.negf %763 : vector<2x32xf32>
    %765 = math.exp %764 : vector<2x32xf32>
    %cst_126 = arith.constant 1.000000e+00 : f32
    %766 = vector.broadcast %cst_126 : f32 to vector<2x32xf32>
    %767 = arith.addf %766, %765 : vector<2x32xf32>
    %768 = arith.divf %766, %767 : vector<2x32xf32>
    %769 = vector.extract_strided_slice %756 {offsets = [0, 64], sizes = [2, 32], strides = [1, 1]} : vector<2x128xf32> to vector<2x32xf32>
    %770 = math.tanh %769 : vector<2x32xf32>
    %771 = vector.extract_strided_slice %756 {offsets = [0, 96], sizes = [2, 32], strides = [1, 1]} : vector<2x128xf32> to vector<2x32xf32>
    %772 = arith.negf %771 : vector<2x32xf32>
    %773 = math.exp %772 : vector<2x32xf32>
    %cst_127 = arith.constant 1.000000e+00 : f32
    %774 = vector.broadcast %cst_127 : f32 to vector<2x32xf32>
    %775 = arith.addf %774, %773 : vector<2x32xf32>
    %776 = arith.divf %774, %775 : vector<2x32xf32>
    %777 = arith.mulf %768, %723 : vector<2x32xf32>
    %778 = arith.mulf %762, %770 : vector<2x32xf32>
    %779 = arith.addf %777, %778 : vector<2x32xf32>
    %780 = math.tanh %779 : vector<2x32xf32>
    %781 = arith.mulf %776, %780 : vector<2x32xf32>
    %782 = vector.extract_strided_slice %470 {offsets = [4, 128], sizes = [2, 128], strides = [1, 1]} : vector<16x256xf32> to vector<2x128xf32>
    %cst_128 = arith.constant dense<0.000000e+00> : vector<2x128xf32>
    %783 = tpu.matmul %753, %472, %cst_128 {dimension_numbers = #tpu.dot_dimension_numbers<[1], [0], [0], [1], [0, 0, 1, 1], [], []>} : vector<2x32xf32>, vector<32x128xf32>, vector<2x128xf32> -> vector<2x128xf32>
    %784 = arith.addf %782, %783 : vector<2x128xf32>
    %785 = vector.extract_strided_slice %784 {offsets = [0, 0], sizes = [2, 32], strides = [1, 1]} : vector<2x128xf32> to vector<2x32xf32>
    %786 = arith.negf %785 : vector<2x32xf32>
    %787 = math.exp %786 : vector<2x32xf32>
    %cst_129 = arith.constant 1.000000e+00 : f32
    %788 = vector.broadcast %cst_129 : f32 to vector<2x32xf32>
    %789 = arith.addf %788, %787 : vector<2x32xf32>
    %790 = arith.divf %788, %789 : vector<2x32xf32>
    %791 = vector.extract_strided_slice %784 {offsets = [0, 32], sizes = [2, 32], strides = [1, 1]} : vector<2x128xf32> to vector<2x32xf32>
    %792 = arith.negf %791 : vector<2x32xf32>
    %793 = math.exp %792 : vector<2x32xf32>
    %cst_130 = arith.constant 1.000000e+00 : f32
    %794 = vector.broadcast %cst_130 : f32 to vector<2x32xf32>
    %795 = arith.addf %794, %793 : vector<2x32xf32>
    %796 = arith.divf %794, %795 : vector<2x32xf32>
    %797 = vector.extract_strided_slice %784 {offsets = [0, 64], sizes = [2, 32], strides = [1, 1]} : vector<2x128xf32> to vector<2x32xf32>
    %798 = math.tanh %797 : vector<2x32xf32>
    %799 = vector.extract_strided_slice %784 {offsets = [0, 96], sizes = [2, 32], strides = [1, 1]} : vector<2x128xf32> to vector<2x32xf32>
    %800 = arith.negf %799 : vector<2x32xf32>
    %801 = math.exp %800 : vector<2x32xf32>
    %cst_131 = arith.constant 1.000000e+00 : f32
    %802 = vector.broadcast %cst_131 : f32 to vector<2x32xf32>
    %803 = arith.addf %802, %801 : vector<2x32xf32>
    %804 = arith.divf %802, %803 : vector<2x32xf32>
    %805 = arith.mulf %796, %751 : vector<2x32xf32>
    %806 = arith.mulf %790, %798 : vector<2x32xf32>
    %807 = arith.addf %805, %806 : vector<2x32xf32>
    %808 = math.tanh %807 : vector<2x32xf32>
    %809 = arith.mulf %804, %808 : vector<2x32xf32>
    %810 = vector.extract_strided_slice %470 {offsets = [12, 0], sizes = [2, 128], strides = [1, 1]} : vector<16x256xf32> to vector<2x128xf32>
    %cst_132 = arith.constant dense<0.000000e+00> : vector<2x128xf32>
    %811 = tpu.matmul %781, %471, %cst_132 {dimension_numbers = #tpu.dot_dimension_numbers<[1], [0], [0], [1], [0, 0, 1, 1], [], []>} : vector<2x32xf32>, vector<32x128xf32>, vector<2x128xf32> -> vector<2x128xf32>
    %812 = arith.addf %810, %811 : vector<2x128xf32>
    %813 = vector.extract_strided_slice %812 {offsets = [0, 0], sizes = [2, 32], strides = [1, 1]} : vector<2x128xf32> to vector<2x32xf32>
    %814 = arith.negf %813 : vector<2x32xf32>
    %815 = math.exp %814 : vector<2x32xf32>
    %cst_133 = arith.constant 1.000000e+00 : f32
    %816 = vector.broadcast %cst_133 : f32 to vector<2x32xf32>
    %817 = arith.addf %816, %815 : vector<2x32xf32>
    %818 = arith.divf %816, %817 : vector<2x32xf32>
    %819 = vector.extract_strided_slice %812 {offsets = [0, 32], sizes = [2, 32], strides = [1, 1]} : vector<2x128xf32> to vector<2x32xf32>
    %820 = arith.negf %819 : vector<2x32xf32>
    %821 = math.exp %820 : vector<2x32xf32>
    %cst_134 = arith.constant 1.000000e+00 : f32
    %822 = vector.broadcast %cst_134 : f32 to vector<2x32xf32>
    %823 = arith.addf %822, %821 : vector<2x32xf32>
    %824 = arith.divf %822, %823 : vector<2x32xf32>
    %825 = vector.extract_strided_slice %812 {offsets = [0, 64], sizes = [2, 32], strides = [1, 1]} : vector<2x128xf32> to vector<2x32xf32>
    %826 = math.tanh %825 : vector<2x32xf32>
    %827 = vector.extract_strided_slice %812 {offsets = [0, 96], sizes = [2, 32], strides = [1, 1]} : vector<2x128xf32> to vector<2x32xf32>
    %828 = arith.negf %827 : vector<2x32xf32>
    %829 = math.exp %828 : vector<2x32xf32>
    %cst_135 = arith.constant 1.000000e+00 : f32
    %830 = vector.broadcast %cst_135 : f32 to vector<2x32xf32>
    %831 = arith.addf %830, %829 : vector<2x32xf32>
    %832 = arith.divf %830, %831 : vector<2x32xf32>
    %833 = arith.mulf %824, %779 : vector<2x32xf32>
    %834 = arith.mulf %818, %826 : vector<2x32xf32>
    %835 = arith.addf %833, %834 : vector<2x32xf32>
    %836 = math.tanh %835 : vector<2x32xf32>
    %837 = arith.mulf %832, %836 : vector<2x32xf32>
    %838 = vector.extract_strided_slice %470 {offsets = [2, 128], sizes = [2, 128], strides = [1, 1]} : vector<16x256xf32> to vector<2x128xf32>
    %cst_136 = arith.constant dense<0.000000e+00> : vector<2x128xf32>
    %839 = tpu.matmul %809, %472, %cst_136 {dimension_numbers = #tpu.dot_dimension_numbers<[1], [0], [0], [1], [0, 0, 1, 1], [], []>} : vector<2x32xf32>, vector<32x128xf32>, vector<2x128xf32> -> vector<2x128xf32>
    %840 = arith.addf %838, %839 : vector<2x128xf32>
    %841 = vector.extract_strided_slice %840 {offsets = [0, 0], sizes = [2, 32], strides = [1, 1]} : vector<2x128xf32> to vector<2x32xf32>
    %842 = arith.negf %841 : vector<2x32xf32>
    %843 = math.exp %842 : vector<2x32xf32>
    %cst_137 = arith.constant 1.000000e+00 : f32
    %844 = vector.broadcast %cst_137 : f32 to vector<2x32xf32>
    %845 = arith.addf %844, %843 : vector<2x32xf32>
    %846 = arith.divf %844, %845 : vector<2x32xf32>
    %847 = vector.extract_strided_slice %840 {offsets = [0, 32], sizes = [2, 32], strides = [1, 1]} : vector<2x128xf32> to vector<2x32xf32>
    %848 = arith.negf %847 : vector<2x32xf32>
    %849 = math.exp %848 : vector<2x32xf32>
    %cst_138 = arith.constant 1.000000e+00 : f32
    %850 = vector.broadcast %cst_138 : f32 to vector<2x32xf32>
    %851 = arith.addf %850, %849 : vector<2x32xf32>
    %852 = arith.divf %850, %851 : vector<2x32xf32>
    %853 = vector.extract_strided_slice %840 {offsets = [0, 64], sizes = [2, 32], strides = [1, 1]} : vector<2x128xf32> to vector<2x32xf32>
    %854 = math.tanh %853 : vector<2x32xf32>
    %855 = vector.extract_strided_slice %840 {offsets = [0, 96], sizes = [2, 32], strides = [1, 1]} : vector<2x128xf32> to vector<2x32xf32>
    %856 = arith.negf %855 : vector<2x32xf32>
    %857 = math.exp %856 : vector<2x32xf32>
    %cst_139 = arith.constant 1.000000e+00 : f32
    %858 = vector.broadcast %cst_139 : f32 to vector<2x32xf32>
    %859 = arith.addf %858, %857 : vector<2x32xf32>
    %860 = arith.divf %858, %859 : vector<2x32xf32>
    %861 = arith.mulf %852, %807 : vector<2x32xf32>
    %862 = arith.mulf %846, %854 : vector<2x32xf32>
    %863 = arith.addf %861, %862 : vector<2x32xf32>
    %864 = math.tanh %863 : vector<2x32xf32>
    %865 = arith.mulf %860, %864 : vector<2x32xf32>
    %866 = vector.extract_strided_slice %470 {offsets = [14, 0], sizes = [2, 128], strides = [1, 1]} : vector<16x256xf32> to vector<2x128xf32>
    %cst_140 = arith.constant dense<0.000000e+00> : vector<2x128xf32>
    %867 = tpu.matmul %837, %471, %cst_140 {dimension_numbers = #tpu.dot_dimension_numbers<[1], [0], [0], [1], [0, 0, 1, 1], [], []>} : vector<2x32xf32>, vector<32x128xf32>, vector<2x128xf32> -> vector<2x128xf32>
    %868 = arith.addf %866, %867 : vector<2x128xf32>
    %869 = vector.extract_strided_slice %868 {offsets = [0, 0], sizes = [2, 32], strides = [1, 1]} : vector<2x128xf32> to vector<2x32xf32>
    %870 = arith.negf %869 : vector<2x32xf32>
    %871 = math.exp %870 : vector<2x32xf32>
    %cst_141 = arith.constant 1.000000e+00 : f32
    %872 = vector.broadcast %cst_141 : f32 to vector<2x32xf32>
    %873 = arith.addf %872, %871 : vector<2x32xf32>
    %874 = arith.divf %872, %873 : vector<2x32xf32>
    %875 = vector.extract_strided_slice %868 {offsets = [0, 32], sizes = [2, 32], strides = [1, 1]} : vector<2x128xf32> to vector<2x32xf32>
    %876 = arith.negf %875 : vector<2x32xf32>
    %877 = math.exp %876 : vector<2x32xf32>
    %cst_142 = arith.constant 1.000000e+00 : f32
    %878 = vector.broadcast %cst_142 : f32 to vector<2x32xf32>
    %879 = arith.addf %878, %877 : vector<2x32xf32>
    %880 = arith.divf %878, %879 : vector<2x32xf32>
    %881 = vector.extract_strided_slice %868 {offsets = [0, 64], sizes = [2, 32], strides = [1, 1]} : vector<2x128xf32> to vector<2x32xf32>
    %882 = math.tanh %881 : vector<2x32xf32>
    %883 = vector.extract_strided_slice %868 {offsets = [0, 96], sizes = [2, 32], strides = [1, 1]} : vector<2x128xf32> to vector<2x32xf32>
    %884 = arith.negf %883 : vector<2x32xf32>
    %885 = math.exp %884 : vector<2x32xf32>
    %cst_143 = arith.constant 1.000000e+00 : f32
    %886 = vector.broadcast %cst_143 : f32 to vector<2x32xf32>
    %887 = arith.addf %886, %885 : vector<2x32xf32>
    %888 = arith.divf %886, %887 : vector<2x32xf32>
    %889 = arith.mulf %880, %835 : vector<2x32xf32>
    %890 = arith.mulf %874, %882 : vector<2x32xf32>
    %891 = arith.addf %889, %890 : vector<2x32xf32>
    %892 = math.tanh %891 : vector<2x32xf32>
    %893 = arith.mulf %888, %892 : vector<2x32xf32>
    %894 = vector.extract_strided_slice %470 {offsets = [0, 128], sizes = [2, 128], strides = [1, 1]} : vector<16x256xf32> to vector<2x128xf32>
    %cst_144 = arith.constant dense<0.000000e+00> : vector<2x128xf32>
    %895 = tpu.matmul %865, %472, %cst_144 {dimension_numbers = #tpu.dot_dimension_numbers<[1], [0], [0], [1], [0, 0, 1, 1], [], []>} : vector<2x32xf32>, vector<32x128xf32>, vector<2x128xf32> -> vector<2x128xf32>
    %896 = arith.addf %894, %895 : vector<2x128xf32>
    %897 = vector.extract_strided_slice %896 {offsets = [0, 0], sizes = [2, 32], strides = [1, 1]} : vector<2x128xf32> to vector<2x32xf32>
    %898 = arith.negf %897 : vector<2x32xf32>
    %899 = math.exp %898 : vector<2x32xf32>
    %cst_145 = arith.constant 1.000000e+00 : f32
    %900 = vector.broadcast %cst_145 : f32 to vector<2x32xf32>
    %901 = arith.addf %900, %899 : vector<2x32xf32>
    %902 = arith.divf %900, %901 : vector<2x32xf32>
    %903 = vector.extract_strided_slice %896 {offsets = [0, 32], sizes = [2, 32], strides = [1, 1]} : vector<2x128xf32> to vector<2x32xf32>
    %904 = arith.negf %903 : vector<2x32xf32>
    %905 = math.exp %904 : vector<2x32xf32>
    %cst_146 = arith.constant 1.000000e+00 : f32
    %906 = vector.broadcast %cst_146 : f32 to vector<2x32xf32>
    %907 = arith.addf %906, %905 : vector<2x32xf32>
    %908 = arith.divf %906, %907 : vector<2x32xf32>
    %909 = vector.extract_strided_slice %896 {offsets = [0, 64], sizes = [2, 32], strides = [1, 1]} : vector<2x128xf32> to vector<2x32xf32>
    %910 = math.tanh %909 : vector<2x32xf32>
    %911 = vector.extract_strided_slice %896 {offsets = [0, 96], sizes = [2, 32], strides = [1, 1]} : vector<2x128xf32> to vector<2x32xf32>
    %912 = arith.negf %911 : vector<2x32xf32>
    %913 = math.exp %912 : vector<2x32xf32>
    %cst_147 = arith.constant 1.000000e+00 : f32
    %914 = vector.broadcast %cst_147 : f32 to vector<2x32xf32>
    %915 = arith.addf %914, %913 : vector<2x32xf32>
    %916 = arith.divf %914, %915 : vector<2x32xf32>
    %917 = arith.mulf %908, %863 : vector<2x32xf32>
    %918 = arith.mulf %902, %910 : vector<2x32xf32>
    %919 = arith.addf %917, %918 : vector<2x32xf32>
    %920 = math.tanh %919 : vector<2x32xf32>
    %921 = arith.mulf %916, %920 : vector<2x32xf32>
    %922 = tpu.concatenate %501, %921 in 1 : vector<2x32xf32>, vector<2x32xf32> -> vector<2x64xf32>
    %923 = tpu.concatenate %557, %865 in 1 : vector<2x32xf32>, vector<2x32xf32> -> vector<2x64xf32>
    %924 = tpu.concatenate %613, %809 in 1 : vector<2x32xf32>, vector<2x32xf32> -> vector<2x64xf32>
    %925 = tpu.concatenate %669, %753 in 1 : vector<2x32xf32>, vector<2x32xf32> -> vector<2x64xf32>
    %926 = tpu.concatenate %725, %697 in 1 : vector<2x32xf32>, vector<2x32xf32> -> vector<2x64xf32>
    %927 = tpu.concatenate %781, %641 in 1 : vector<2x32xf32>, vector<2x32xf32> -> vector<2x64xf32>
    %928 = tpu.concatenate %837, %585 in 1 : vector<2x32xf32>, vector<2x32xf32> -> vector<2x64xf32>
    %929 = tpu.concatenate %893, %529 in 1 : vector<2x32xf32>, vector<2x32xf32> -> vector<2x64xf32>
    %930 = tpu.concatenate %922, %923, %924, %925, %926, %927, %928, %929 in 0 : vector<2x64xf32>, vector<2x64xf32>, vector<2x64xf32>, vector<2x64xf32>, vector<2x64xf32>, vector<2x64xf32>, vector<2x64xf32>, vector<2x64xf32> -> vector<16x64xf32>
    %c0_148 = arith.constant 0 : index
    %c0_149 = arith.constant 0 : index
    %931 = vector.load %arg10[%c0_148, %c0_149] : memref<64x8xf32, #tpu.memory_space<vmem>>, vector<64x8xf32>
    %cst_150 = arith.constant dense<0.000000e+00> : vector<16x8xf32>
    %932 = tpu.matmul %930, %931, %cst_150 {dimension_numbers = #tpu.dot_dimension_numbers<[1], [0], [0], [1], [0, 0, 1, 1], [], []>} : vector<16x64xf32>, vector<64x8xf32>, vector<16x8xf32> -> vector<16x8xf32>
    %c0_151 = arith.constant 0 : index
    %c0_152 = arith.constant 0 : index
    %933 = vector.load %arg11[%c0_151, %c0_152] : memref<1x8xf32, #tpu.memory_space<vmem>>, vector<1x8xf32>
    %934 = vector.broadcast %933 : vector<1x8xf32> to vector<16x8xf32>
    %935 = arith.addf %932, %934 : vector<16x8xf32>
    %c0_153 = arith.constant 0 : index
    %c0_154 = arith.constant 0 : index
    %936 = vector.load %arg12[%c0_153, %c0_154] : memref<8x8xf32, #tpu.memory_space<vmem>>, vector<8x8xf32>
    %937 = tpu.iota {dimensions = array<i32: 1>} : vector<2x8xi32>
    %938 = tpu.iota {dimensions = array<i32: 2>} : vector<2x8x8xi32>
    %c0_i32 = arith.constant 0 : i32
    %939 = vector.broadcast %c0_i32 : i32 to vector<2x8xi32>
    %940 = arith.cmpi eq, %937, %939 : vector<2x8xi32>
    %cst_155 = arith.constant 0.000000e+00 : f32
    %cst_156 = arith.constant -1.000000e+04 : f32
    %941 = vector.broadcast %cst_155 : f32 to vector<2x8xf32>
    %942 = vector.broadcast %cst_156 : f32 to vector<2x8xf32>
    %943 = arith.select %940, %941, %942 : vector<2x8xi1>, vector<2x8xf32>
    %944 = vector.shape_cast %936 : vector<8x8xf32> to vector<1x8x8xf32>
    %945 = vector.shape_cast %943 : vector<2x8xf32> to vector<2x1x8xf32>
    %946 = vector.broadcast %944 : vector<1x8x8xf32> to vector<2x8x8xf32>
    %947 = vector.broadcast %945 : vector<2x1x8xf32> to vector<2x8x8xf32>
    %948 = arith.addf %946, %947 : vector<2x8x8xf32>
    %cst_157 = arith.constant dense<0xFF800000> : vector<2x8xf32>
    %949 = vector.multi_reduction <maximumf>, %948, %cst_157 [2] : vector<2x8x8xf32> to vector<2x8xf32>
    %950 = vector.shape_cast %949 : vector<2x8xf32> to vector<2x8x1xf32>
    %951 = vector.broadcast %950 : vector<2x8x1xf32> to vector<2x8x8xf32>
    %952 = arith.cmpf oeq, %948, %951 : vector<2x8x8xf32>
    %c8_i32 = arith.constant 8 : i32
    %953 = vector.broadcast %c8_i32 : i32 to vector<2x8x8xi32>
    %954 = arith.select %952, %938, %953 : vector<2x8x8xi1>, vector<2x8x8xi32>
    %cst_158 = arith.constant dense<2147483647> : vector<2x8xi32>
    %955 = vector.multi_reduction <minsi>, %954, %cst_158 [2] : vector<2x8x8xi32> to vector<2x8xi32>
    %956 = vector.extract_strided_slice %935 {offsets = [2, 0], sizes = [2, 8], strides = [1, 1]} : vector<16x8xf32> to vector<2x8xf32>
    %957 = arith.addf %949, %956 : vector<2x8xf32>
    %958 = vector.shape_cast %936 : vector<8x8xf32> to vector<1x8x8xf32>
    %959 = vector.shape_cast %957 : vector<2x8xf32> to vector<2x1x8xf32>
    %960 = vector.broadcast %958 : vector<1x8x8xf32> to vector<2x8x8xf32>
    %961 = vector.broadcast %959 : vector<2x1x8xf32> to vector<2x8x8xf32>
    %962 = arith.addf %960, %961 : vector<2x8x8xf32>
    %cst_159 = arith.constant dense<0xFF800000> : vector<2x8xf32>
    %963 = vector.multi_reduction <maximumf>, %962, %cst_159 [2] : vector<2x8x8xf32> to vector<2x8xf32>
    %964 = vector.shape_cast %963 : vector<2x8xf32> to vector<2x8x1xf32>
    %965 = vector.broadcast %964 : vector<2x8x1xf32> to vector<2x8x8xf32>
    %966 = arith.cmpf oeq, %962, %965 : vector<2x8x8xf32>
    %c8_i32_160 = arith.constant 8 : i32
    %967 = vector.broadcast %c8_i32_160 : i32 to vector<2x8x8xi32>
    %968 = arith.select %966, %938, %967 : vector<2x8x8xi1>, vector<2x8x8xi32>
    %cst_161 = arith.constant dense<2147483647> : vector<2x8xi32>
    %969 = vector.multi_reduction <minsi>, %968, %cst_161 [2] : vector<2x8x8xi32> to vector<2x8xi32>
    %970 = vector.extract_strided_slice %935 {offsets = [4, 0], sizes = [2, 8], strides = [1, 1]} : vector<16x8xf32> to vector<2x8xf32>
    %971 = arith.addf %963, %970 : vector<2x8xf32>
    %972 = vector.shape_cast %936 : vector<8x8xf32> to vector<1x8x8xf32>
    %973 = vector.shape_cast %971 : vector<2x8xf32> to vector<2x1x8xf32>
    %974 = vector.broadcast %972 : vector<1x8x8xf32> to vector<2x8x8xf32>
    %975 = vector.broadcast %973 : vector<2x1x8xf32> to vector<2x8x8xf32>
    %976 = arith.addf %974, %975 : vector<2x8x8xf32>
    %cst_162 = arith.constant dense<0xFF800000> : vector<2x8xf32>
    %977 = vector.multi_reduction <maximumf>, %976, %cst_162 [2] : vector<2x8x8xf32> to vector<2x8xf32>
    %978 = vector.shape_cast %977 : vector<2x8xf32> to vector<2x8x1xf32>
    %979 = vector.broadcast %978 : vector<2x8x1xf32> to vector<2x8x8xf32>
    %980 = arith.cmpf oeq, %976, %979 : vector<2x8x8xf32>
    %c8_i32_163 = arith.constant 8 : i32
    %981 = vector.broadcast %c8_i32_163 : i32 to vector<2x8x8xi32>
    %982 = arith.select %980, %938, %981 : vector<2x8x8xi1>, vector<2x8x8xi32>
    %cst_164 = arith.constant dense<2147483647> : vector<2x8xi32>
    %983 = vector.multi_reduction <minsi>, %982, %cst_164 [2] : vector<2x8x8xi32> to vector<2x8xi32>
    %984 = vector.extract_strided_slice %935 {offsets = [6, 0], sizes = [2, 8], strides = [1, 1]} : vector<16x8xf32> to vector<2x8xf32>
    %985 = arith.addf %977, %984 : vector<2x8xf32>
    %986 = vector.shape_cast %936 : vector<8x8xf32> to vector<1x8x8xf32>
    %987 = vector.shape_cast %985 : vector<2x8xf32> to vector<2x1x8xf32>
    %988 = vector.broadcast %986 : vector<1x8x8xf32> to vector<2x8x8xf32>
    %989 = vector.broadcast %987 : vector<2x1x8xf32> to vector<2x8x8xf32>
    %990 = arith.addf %988, %989 : vector<2x8x8xf32>
    %cst_165 = arith.constant dense<0xFF800000> : vector<2x8xf32>
    %991 = vector.multi_reduction <maximumf>, %990, %cst_165 [2] : vector<2x8x8xf32> to vector<2x8xf32>
    %992 = vector.shape_cast %991 : vector<2x8xf32> to vector<2x8x1xf32>
    %993 = vector.broadcast %992 : vector<2x8x1xf32> to vector<2x8x8xf32>
    %994 = arith.cmpf oeq, %990, %993 : vector<2x8x8xf32>
    %c8_i32_166 = arith.constant 8 : i32
    %995 = vector.broadcast %c8_i32_166 : i32 to vector<2x8x8xi32>
    %996 = arith.select %994, %938, %995 : vector<2x8x8xi1>, vector<2x8x8xi32>
    %cst_167 = arith.constant dense<2147483647> : vector<2x8xi32>
    %997 = vector.multi_reduction <minsi>, %996, %cst_167 [2] : vector<2x8x8xi32> to vector<2x8xi32>
    %998 = vector.extract_strided_slice %935 {offsets = [8, 0], sizes = [2, 8], strides = [1, 1]} : vector<16x8xf32> to vector<2x8xf32>
    %999 = arith.addf %991, %998 : vector<2x8xf32>
    %1000 = vector.shape_cast %936 : vector<8x8xf32> to vector<1x8x8xf32>
    %1001 = vector.shape_cast %999 : vector<2x8xf32> to vector<2x1x8xf32>
    %1002 = vector.broadcast %1000 : vector<1x8x8xf32> to vector<2x8x8xf32>
    %1003 = vector.broadcast %1001 : vector<2x1x8xf32> to vector<2x8x8xf32>
    %1004 = arith.addf %1002, %1003 : vector<2x8x8xf32>
    %cst_168 = arith.constant dense<0xFF800000> : vector<2x8xf32>
    %1005 = vector.multi_reduction <maximumf>, %1004, %cst_168 [2] : vector<2x8x8xf32> to vector<2x8xf32>
    %1006 = vector.shape_cast %1005 : vector<2x8xf32> to vector<2x8x1xf32>
    %1007 = vector.broadcast %1006 : vector<2x8x1xf32> to vector<2x8x8xf32>
    %1008 = arith.cmpf oeq, %1004, %1007 : vector<2x8x8xf32>
    %c8_i32_169 = arith.constant 8 : i32
    %1009 = vector.broadcast %c8_i32_169 : i32 to vector<2x8x8xi32>
    %1010 = arith.select %1008, %938, %1009 : vector<2x8x8xi1>, vector<2x8x8xi32>
    %cst_170 = arith.constant dense<2147483647> : vector<2x8xi32>
    %1011 = vector.multi_reduction <minsi>, %1010, %cst_170 [2] : vector<2x8x8xi32> to vector<2x8xi32>
    %1012 = vector.extract_strided_slice %935 {offsets = [10, 0], sizes = [2, 8], strides = [1, 1]} : vector<16x8xf32> to vector<2x8xf32>
    %1013 = arith.addf %1005, %1012 : vector<2x8xf32>
    %1014 = vector.shape_cast %936 : vector<8x8xf32> to vector<1x8x8xf32>
    %1015 = vector.shape_cast %1013 : vector<2x8xf32> to vector<2x1x8xf32>
    %1016 = vector.broadcast %1014 : vector<1x8x8xf32> to vector<2x8x8xf32>
    %1017 = vector.broadcast %1015 : vector<2x1x8xf32> to vector<2x8x8xf32>
    %1018 = arith.addf %1016, %1017 : vector<2x8x8xf32>
    %cst_171 = arith.constant dense<0xFF800000> : vector<2x8xf32>
    %1019 = vector.multi_reduction <maximumf>, %1018, %cst_171 [2] : vector<2x8x8xf32> to vector<2x8xf32>
    %1020 = vector.shape_cast %1019 : vector<2x8xf32> to vector<2x8x1xf32>
    %1021 = vector.broadcast %1020 : vector<2x8x1xf32> to vector<2x8x8xf32>
    %1022 = arith.cmpf oeq, %1018, %1021 : vector<2x8x8xf32>
    %c8_i32_172 = arith.constant 8 : i32
    %1023 = vector.broadcast %c8_i32_172 : i32 to vector<2x8x8xi32>
    %1024 = arith.select %1022, %938, %1023 : vector<2x8x8xi1>, vector<2x8x8xi32>
    %cst_173 = arith.constant dense<2147483647> : vector<2x8xi32>
    %1025 = vector.multi_reduction <minsi>, %1024, %cst_173 [2] : vector<2x8x8xi32> to vector<2x8xi32>
    %1026 = vector.extract_strided_slice %935 {offsets = [12, 0], sizes = [2, 8], strides = [1, 1]} : vector<16x8xf32> to vector<2x8xf32>
    %1027 = arith.addf %1019, %1026 : vector<2x8xf32>
    %1028 = vector.shape_cast %936 : vector<8x8xf32> to vector<1x8x8xf32>
    %1029 = vector.shape_cast %1027 : vector<2x8xf32> to vector<2x1x8xf32>
    %1030 = vector.broadcast %1028 : vector<1x8x8xf32> to vector<2x8x8xf32>
    %1031 = vector.broadcast %1029 : vector<2x1x8xf32> to vector<2x8x8xf32>
    %1032 = arith.addf %1030, %1031 : vector<2x8x8xf32>
    %cst_174 = arith.constant dense<0xFF800000> : vector<2x8xf32>
    %1033 = vector.multi_reduction <maximumf>, %1032, %cst_174 [2] : vector<2x8x8xf32> to vector<2x8xf32>
    %1034 = vector.shape_cast %1033 : vector<2x8xf32> to vector<2x8x1xf32>
    %1035 = vector.broadcast %1034 : vector<2x8x1xf32> to vector<2x8x8xf32>
    %1036 = arith.cmpf oeq, %1032, %1035 : vector<2x8x8xf32>
    %c8_i32_175 = arith.constant 8 : i32
    %1037 = vector.broadcast %c8_i32_175 : i32 to vector<2x8x8xi32>
    %1038 = arith.select %1036, %938, %1037 : vector<2x8x8xi1>, vector<2x8x8xi32>
    %cst_176 = arith.constant dense<2147483647> : vector<2x8xi32>
    %1039 = vector.multi_reduction <minsi>, %1038, %cst_176 [2] : vector<2x8x8xi32> to vector<2x8xi32>
    %1040 = vector.extract_strided_slice %935 {offsets = [14, 0], sizes = [2, 8], strides = [1, 1]} : vector<16x8xf32> to vector<2x8xf32>
    %1041 = arith.addf %1033, %1040 : vector<2x8xf32>
    %cst_177 = arith.constant dense<0xFF800000> : vector<2xf32>
    %1042 = vector.multi_reduction <maximumf>, %1041, %cst_177 [1] : vector<2x8xf32> to vector<2xf32>
    %1043 = vector.shape_cast %1042 : vector<2xf32> to vector<2x1xf32>
    %1044 = vector.broadcast %1043 : vector<2x1xf32> to vector<2x8xf32>
    %1045 = arith.cmpf oeq, %1041, %1044 : vector<2x8xf32>
    %c8_i32_178 = arith.constant 8 : i32
    %1046 = vector.broadcast %c8_i32_178 : i32 to vector<2x8xi32>
    %1047 = arith.select %1045, %937, %1046 : vector<2x8xi1>, vector<2x8xi32>
    %cst_179 = arith.constant dense<2147483647> : vector<2xi32>
    %1048 = vector.multi_reduction <minsi>, %1047, %cst_179 [1] : vector<2x8xi32> to vector<2xi32>
    %1049 = vector.shape_cast %1048 : vector<2xi32> to vector<2x1xi32>
    %c0_180 = arith.constant 0 : index
    %c0_181 = arith.constant 0 : index
    %1050 = vector.load %arg13[%c0_180, %c0_181] : memref<2x1xf32, #tpu.memory_space<vmem>>, vector<2x1xf32>
    tpu.vector_store %arg13[%c0_180, %c0_181], %1043 {strides = array<i32>} : memref<2x1xf32, #tpu.memory_space<vmem>>, vector<2x1xf32>,
    %1051 = tpu.iota {dimensions = array<i32: 1>} : vector<2x8xi32>
    %c7_i32 = arith.constant 7 : i32
    %1052 = vector.broadcast %c7_i32 : i32 to vector<2x8xi32>
    %1053 = arith.cmpi eq, %1051, %1052 : vector<2x8xi32>
    %c0_i32_182 = arith.constant 0 : i32
    %1054 = vector.shape_cast %1049 : vector<2x1xi32> to vector<2x1xi32>
    %1055 = vector.broadcast %1054 : vector<2x1xi32> to vector<2x8xi32>
    %1056 = vector.broadcast %c0_i32_182 : i32 to vector<2x8xi32>
    %1057 = arith.select %1053, %1055, %1056 : vector<2x8xi1>, vector<2x8xi32>
    %1058 = vector.broadcast %1049 : vector<2x1xi32> to vector<2x8xi32>
    %1059 = arith.cmpi eq, %937, %1058 : vector<2x8xi32>
    %c0_i32_183 = arith.constant 0 : i32
    %1060 = vector.broadcast %c0_i32_183 : i32 to vector<2x8xi32>
    %1061 = arith.select %1059, %1039, %1060 : vector<2x8xi1>, vector<2x8xi32>
    %cst_184 = arith.constant dense<0> : vector<2xi32>
    %1062 = vector.multi_reduction <add>, %1061, %cst_184 [1] : vector<2x8xi32> to vector<2xi32>
    %1063 = vector.shape_cast %1062 : vector<2xi32> to vector<2x1xi32>
    %c6_i32 = arith.constant 6 : i32
    %1064 = vector.broadcast %c6_i32 : i32 to vector<2x8xi32>
    %1065 = arith.cmpi eq, %1051, %1064 : vector<2x8xi32>
    %1066 = vector.shape_cast %1063 : vector<2x1xi32> to vector<2x1xi32>
    %1067 = vector.broadcast %1066 : vector<2x1xi32> to vector<2x8xi32>
    %1068 = arith.select %1065, %1067, %1057 : vector<2x8xi1>, vector<2x8xi32>
    %1069 = vector.broadcast %1063 : vector<2x1xi32> to vector<2x8xi32>
    %1070 = arith.cmpi eq, %937, %1069 : vector<2x8xi32>
    %c0_i32_185 = arith.constant 0 : i32
    %1071 = vector.broadcast %c0_i32_185 : i32 to vector<2x8xi32>
    %1072 = arith.select %1070, %1025, %1071 : vector<2x8xi1>, vector<2x8xi32>
    %cst_186 = arith.constant dense<0> : vector<2xi32>
    %1073 = vector.multi_reduction <add>, %1072, %cst_186 [1] : vector<2x8xi32> to vector<2xi32>
    %1074 = vector.shape_cast %1073 : vector<2xi32> to vector<2x1xi32>
    %c5_i32 = arith.constant 5 : i32
    %1075 = vector.broadcast %c5_i32 : i32 to vector<2x8xi32>
    %1076 = arith.cmpi eq, %1051, %1075 : vector<2x8xi32>
    %1077 = vector.shape_cast %1074 : vector<2x1xi32> to vector<2x1xi32>
    %1078 = vector.broadcast %1077 : vector<2x1xi32> to vector<2x8xi32>
    %1079 = arith.select %1076, %1078, %1068 : vector<2x8xi1>, vector<2x8xi32>
    %1080 = vector.broadcast %1074 : vector<2x1xi32> to vector<2x8xi32>
    %1081 = arith.cmpi eq, %937, %1080 : vector<2x8xi32>
    %c0_i32_187 = arith.constant 0 : i32
    %1082 = vector.broadcast %c0_i32_187 : i32 to vector<2x8xi32>
    %1083 = arith.select %1081, %1011, %1082 : vector<2x8xi1>, vector<2x8xi32>
    %cst_188 = arith.constant dense<0> : vector<2xi32>
    %1084 = vector.multi_reduction <add>, %1083, %cst_188 [1] : vector<2x8xi32> to vector<2xi32>
    %1085 = vector.shape_cast %1084 : vector<2xi32> to vector<2x1xi32>
    %c4_i32 = arith.constant 4 : i32
    %1086 = vector.broadcast %c4_i32 : i32 to vector<2x8xi32>
    %1087 = arith.cmpi eq, %1051, %1086 : vector<2x8xi32>
    %1088 = vector.shape_cast %1085 : vector<2x1xi32> to vector<2x1xi32>
    %1089 = vector.broadcast %1088 : vector<2x1xi32> to vector<2x8xi32>
    %1090 = arith.select %1087, %1089, %1079 : vector<2x8xi1>, vector<2x8xi32>
    %1091 = vector.broadcast %1085 : vector<2x1xi32> to vector<2x8xi32>
    %1092 = arith.cmpi eq, %937, %1091 : vector<2x8xi32>
    %c0_i32_189 = arith.constant 0 : i32
    %1093 = vector.broadcast %c0_i32_189 : i32 to vector<2x8xi32>
    %1094 = arith.select %1092, %997, %1093 : vector<2x8xi1>, vector<2x8xi32>
    %cst_190 = arith.constant dense<0> : vector<2xi32>
    %1095 = vector.multi_reduction <add>, %1094, %cst_190 [1] : vector<2x8xi32> to vector<2xi32>
    %1096 = vector.shape_cast %1095 : vector<2xi32> to vector<2x1xi32>
    %c3_i32 = arith.constant 3 : i32
    %1097 = vector.broadcast %c3_i32 : i32 to vector<2x8xi32>
    %1098 = arith.cmpi eq, %1051, %1097 : vector<2x8xi32>
    %1099 = vector.shape_cast %1096 : vector<2x1xi32> to vector<2x1xi32>
    %1100 = vector.broadcast %1099 : vector<2x1xi32> to vector<2x8xi32>
    %1101 = arith.select %1098, %1100, %1090 : vector<2x8xi1>, vector<2x8xi32>
    %1102 = vector.broadcast %1096 : vector<2x1xi32> to vector<2x8xi32>
    %1103 = arith.cmpi eq, %937, %1102 : vector<2x8xi32>
    %c0_i32_191 = arith.constant 0 : i32
    %1104 = vector.broadcast %c0_i32_191 : i32 to vector<2x8xi32>
    %1105 = arith.select %1103, %983, %1104 : vector<2x8xi1>, vector<2x8xi32>
    %cst_192 = arith.constant dense<0> : vector<2xi32>
    %1106 = vector.multi_reduction <add>, %1105, %cst_192 [1] : vector<2x8xi32> to vector<2xi32>
    %1107 = vector.shape_cast %1106 : vector<2xi32> to vector<2x1xi32>
    %c2_i32 = arith.constant 2 : i32
    %1108 = vector.broadcast %c2_i32 : i32 to vector<2x8xi32>
    %1109 = arith.cmpi eq, %1051, %1108 : vector<2x8xi32>
    %1110 = vector.shape_cast %1107 : vector<2x1xi32> to vector<2x1xi32>
    %1111 = vector.broadcast %1110 : vector<2x1xi32> to vector<2x8xi32>
    %1112 = arith.select %1109, %1111, %1101 : vector<2x8xi1>, vector<2x8xi32>
    %1113 = vector.broadcast %1107 : vector<2x1xi32> to vector<2x8xi32>
    %1114 = arith.cmpi eq, %937, %1113 : vector<2x8xi32>
    %c0_i32_193 = arith.constant 0 : i32
    %1115 = vector.broadcast %c0_i32_193 : i32 to vector<2x8xi32>
    %1116 = arith.select %1114, %969, %1115 : vector<2x8xi1>, vector<2x8xi32>
    %cst_194 = arith.constant dense<0> : vector<2xi32>
    %1117 = vector.multi_reduction <add>, %1116, %cst_194 [1] : vector<2x8xi32> to vector<2xi32>
    %1118 = vector.shape_cast %1117 : vector<2xi32> to vector<2x1xi32>
    %c1_i32 = arith.constant 1 : i32
    %1119 = vector.broadcast %c1_i32 : i32 to vector<2x8xi32>
    %1120 = arith.cmpi eq, %1051, %1119 : vector<2x8xi32>
    %1121 = vector.shape_cast %1118 : vector<2x1xi32> to vector<2x1xi32>
    %1122 = vector.broadcast %1121 : vector<2x1xi32> to vector<2x8xi32>
    %1123 = arith.select %1120, %1122, %1112 : vector<2x8xi1>, vector<2x8xi32>
    %1124 = vector.broadcast %1118 : vector<2x1xi32> to vector<2x8xi32>
    %1125 = arith.cmpi eq, %937, %1124 : vector<2x8xi32>
    %c0_i32_195 = arith.constant 0 : i32
    %1126 = vector.broadcast %c0_i32_195 : i32 to vector<2x8xi32>
    %1127 = arith.select %1125, %955, %1126 : vector<2x8xi1>, vector<2x8xi32>
    %cst_196 = arith.constant dense<0> : vector<2xi32>
    %1128 = vector.multi_reduction <add>, %1127, %cst_196 [1] : vector<2x8xi32> to vector<2xi32>
    %1129 = vector.shape_cast %1128 : vector<2xi32> to vector<2x1xi32>
    %c0_i32_197 = arith.constant 0 : i32
    %1130 = vector.broadcast %c0_i32_197 : i32 to vector<2x8xi32>
    %1131 = arith.cmpi eq, %1051, %1130 : vector<2x8xi32>
    %1132 = vector.shape_cast %1129 : vector<2x1xi32> to vector<2x1xi32>
    %1133 = vector.broadcast %1132 : vector<2x1xi32> to vector<2x8xi32>
    %1134 = arith.select %1131, %1133, %1123 : vector<2x8xi1>, vector<2x8xi32>
    %c0_198 = arith.constant 0 : index
    %c0_199 = arith.constant 0 : index
    %1135 = vector.load %arg14[%c0_198, %c0_199] : memref<2x8xi32, #tpu.memory_space<vmem>>, vector<2x8xi32>
    tpu.vector_store %arg14[%c0_198, %c0_199], %1134 {strides = array<i32>} : memref<2x8xi32, #tpu.memory_space<vmem>>, vector<2x8xi32>,
    return
  }
  func.func @transform_0(%arg0: i32) -> (i32, i32) {
    %c0_i32 = arith.constant 0 : i32
    %c0_i32_0 = arith.constant 0 : i32
    %c0_i32_1 = arith.constant 0 : i32
    return %c0_i32, %c0_i32_0 : i32, i32
  }
  func.func @transform_1(%arg0: i32) -> (i32, i32) {
    %c0_i32 = arith.constant 0 : i32
    %c0_i32_0 = arith.constant 0 : i32
    %c0_i32_1 = arith.constant 0 : i32
    return %c0_i32, %c0_i32_0 : i32, i32
  }
  func.func @transform_2(%arg0: i32) -> (i32, i32) {
    %c0_i32 = arith.constant 0 : i32
    %c0_i32_0 = arith.constant 0 : i32
    %c0_i32_1 = arith.constant 0 : i32
    return %c0_i32, %c0_i32_0 : i32, i32
  }
  func.func @transform_3(%arg0: i32) -> (i32, i32) {
    %c0_i32 = arith.constant 0 : i32
    %c0_i32_0 = arith.constant 0 : i32
    %c0_i32_1 = arith.constant 0 : i32
    return %c0_i32, %c0_i32_0 : i32, i32
  }
  func.func @transform_4(%arg0: i32) -> (i32, i32) {
    %c0_i32 = arith.constant 0 : i32
    %c0_i32_0 = arith.constant 0 : i32
    %c0_i32_1 = arith.constant 0 : i32
    return %c0_i32, %c0_i32_0 : i32, i32
  }
  func.func @transform_5(%arg0: i32) -> (i32, i32) {
    %c0_i32 = arith.constant 0 : i32
    %c0_i32_0 = arith.constant 0 : i32
    %c0_i32_1 = arith.constant 0 : i32
    return %c0_i32, %c0_i32_0 : i32, i32
  }
  func.func @transform_6(%arg0: i32) -> (i32, i32) {
    %c0_i32 = arith.constant 0 : i32
    %c0_i32_0 = arith.constant 0 : i32
    %c0_i32_1 = arith.constant 0 : i32
    return %c0_i32, %c0_i32_0 : i32, i32
  }
  func.func @transform_7(%arg0: i32) -> (i32, i32) {
    %c0_i32 = arith.constant 0 : i32
    %c0_i32_0 = arith.constant 0 : i32
    %c0_i32_1 = arith.constant 0 : i32
    return %c0_i32, %c0_i32_0 : i32, i32
  }
  func.func @transform_8(%arg0: i32) -> (i32, i32) {
    %c0_i32 = arith.constant 0 : i32
    %c0_i32_0 = arith.constant 0 : i32
    %c0_i32_1 = arith.constant 0 : i32
    return %c0_i32, %c0_i32_0 : i32, i32
  }
  func.func @transform_9(%arg0: i32) -> (i32, i32) {
    %c0_i32 = arith.constant 0 : i32
    %c0_i32_0 = arith.constant 0 : i32
    %c0_i32_1 = arith.constant 0 : i32
    return %c0_i32, %c0_i32_0 : i32, i32
  }
  func.func @transform_10(%arg0: i32) -> (i32, i32) {
    %c0_i32 = arith.constant 0 : i32
    %c0_i32_0 = arith.constant 0 : i32
    %c0_i32_1 = arith.constant 0 : i32
    return %c0_i32, %c0_i32_0 : i32, i32
  }
  func.func @transform_11(%arg0: i32) -> (i32, i32) {
    %c0_i32 = arith.constant 0 : i32
    %c0_i32_0 = arith.constant 0 : i32
    %c0_i32_1 = arith.constant 0 : i32
    return %c0_i32, %c0_i32_0 : i32, i32
  }
  func.func @transform_12(%arg0: i32) -> (i32, i32) {
    %c0_i32 = arith.constant 0 : i32
    %c0_i32_0 = arith.constant 0 : i32
    %c0_i32_1 = arith.constant 0 : i32
    return %c0_i32, %c0_i32_0 : i32, i32
  }
  func.func @transform_13(%arg0: i32) -> (i32, i32) {
    %c0_i32 = arith.constant 0 : i32
    %c0_i32_0 = arith.constant 0 : i32
    %c0_i32_1 = arith.constant 0 : i32
    return %c0_i32, %c0_i32_0 : i32, i32
  }
}

</mosaic_0001>

<bundles_post_ra>
// kernel: tpu_custom_call.1
= control target key start
LH: loop header
LB: loop body
LE: loop exit
PB: predicated region body
PF: predicated region fallthrough
CT: control target
= control target key end

     0   :  { %19 = vsyncpa [#allocation3], 0  ;;  %s7186_s0 = inlined_call_operand.hbm [shape: f32[16,64], index: 0, kind: input, shape index: {}]   ;;  %s7187_s1 = inlined_call_operand.hbm [shape: f32[64,256], index: 1, kind: input, shape index: {}]   ;;  %s7188_s2 = inlined_call_operand.vmem [shape: f32[1,256], index: 2, kind: input, shape index: {}]   ;;  %s7189_s3 = inlined_call_operand.vmem [shape: f32[32,128], index: 3, kind: input, shape index: {}]   ;;  %s7190_s4 = inlined_call_operand.vmem [shape: f32[32,128], index: 4, kind: input, shape index: {}]   ;;  %s7191_s5 = inlined_call_operand.hbm [shape: f32[64,256], index: 5, kind: input, shape index: {}]   ;;  %s7192_s6 = inlined_call_operand.vmem [shape: f32[1,256], index: 6, kind: input, shape index: {}]   ;;  %s7193_s7 = inlined_call_operand.hbm [shape: f32[32,128], index: 7, kind: input, shape index: {}]   ;;  %s7194_s8 = inlined_call_operand.hbm [shape: f32[32,128], index: 8, kind: input, shape index: {}]   ;;  %s7195_s9 = inlined_call_operand.vmem [shape: f32[64,8], index: 9, kind: input, shape index: {}]   ;;  %s7196_s10 = inlined_call_operand.vmem [shape: f32[1,8], index: 10, kind: input, shape index: {}]   ;;  %s7197_s11 = inlined_call_operand.vmem [shape: f32[8,8], index: 11, kind: input, shape index: {}]   ;;  %s7198_s12 = inlined_call_operand.vmem [shape: f32[2,1], index: 12, kind: output, shape index: {0}]   ;;  %s7199_s13 = inlined_call_operand.hbm [shape: s32[2,8], index: 13, kind: output, shape index: {1}]  }
   0x1   :  { %20 = vsyncpa [#allocation6], 0 }
   0x2   :  { %21 = vsyncpa [#allocation9], 0 }
   0x3   :  { %22 = vsyncpa [#allocation4], 0  ;;  %s5882_s25 = smov [#allocation5]  }
   0x4   :  { %s40_s26 = sshll.u32 %s5882_s25, 4  ;;  %s41_s26 = int_to_ptr.vmem [resolvable:$true] %s40_s26 }
   0x5   :  { %s5762_s27 = scalar_lea.vmem %s41_s26, 2048  ;;  %p5767_p1 = scmp.lt.s32.totalorder %s41_s26, %s41_s26 }
   0x6   :  { %p5763_p0 = scmp.ne.s32.totalorder %s41_s26, %s5762_s27  ;;  %p5768_p2 = scmp.lt.s32.totalorder %s5762_s27, %s5762_s27 }
   0x8   :  { %p5769_p3 = por %p5768_p2, %p5767_p1 }
   0xa   :  { %p5770_p4 = pnand %p5769_p3, %p5763_p0 }
   0xc   :  { %5773 = shalt.err (!%p5770_p4)
}
   0xd   :  { %s5883_s28 = smov 256   ;;  %s5884_s29 = smov 16  }
   0xe   :  { %46 = dma.hbm_to_vmem [thread:$0]  %s7187_s1, 2048, %s41_s26, [#allocation6], %s5883_s28, %s5883_s28, %s5884_s29  }
   0xf   :  { %s5885_s15 = smov [#allocation8]   ;;  %s5886_s17 = smov [#allocation2]  }
  0x10   :  { %s72_s16 = sshll.u32 %s5885_s15, 4  ;;  %s28_s18 = sshll.u32 %s5886_s17, 4  ;;  %s73_s16 = int_to_ptr.vmem [resolvable:$true] %s72_s16  ;;  %s29_s18 = int_to_ptr.vmem [resolvable:$true] %s28_s18 }
  0x11   :  { %s5782_s19 = scalar_lea.vmem %s73_s16, 512  ;;  %p5787_p6 = scmp.lt.s32.totalorder %s73_s16, %s73_s16 }
  0x12   :  { %p5783_p5 = scmp.ne.s32.totalorder %s73_s16, %s5782_s19  ;;  %p5788_p7 = scmp.lt.s32.totalorder %s5782_s19, %s5782_s19 }
  0x14   :  { %p5789_p8 = por %p5788_p7, %p5787_p6 }
  0x16   :  { %p5790_p9 = pnand %p5789_p8, %p5783_p5 }
  0x18   :  { %5793 = shalt.err (!%p5790_p9)
}
  0x19   :  { %s5887_s20 = smov 128   ;;  %s5888_s21 = smov 8  }
  0x1a   :  { %78 = dma.hbm_to_vmem [thread:$0]  %s7193_s7, 512, %s73_s16, [#allocation9], %s5887_s20, %s5887_s20, %s5888_s21  }
  0x1b   :  { %s5802_s1 = scalar_lea.vmem %s29_s18, 256  ;;  %p5807_p11 = scmp.lt.s32.totalorder %s29_s18, %s29_s18 }
  0x1c   :  { %p5803_p10 = scmp.ne.s32.totalorder %s29_s18, %s5802_s1  ;;  %p5808_p12 = scmp.lt.s32.totalorder %s5802_s1, %s5802_s1 }
  0x1e   :  { %p5809_p13 = por %p5808_p12, %p5807_p11 }
  0x20   :  { %p5810_p0 = pnand %p5809_p13, %p5803_p10 }
  0x22   :  { %5813 = shalt.err (!%p5810_p0)
}
  0x23   :  { %34 = dma.hbm_to_vmem [thread:$0]  %s7186_s0, 256, %s29_s18, [#allocation3], %s5887_s20, %s5887_s20, %s5888_s21  }
  0x24   :  { %s5889_s26 = smov [#allocation7]   ;;  %s5890_s30 = smov [#allocation10]  }
  0x25   :  { %s58_s27 = sshll.u32 %s5889_s26, 4  ;;  %s84_s7 = sshll.u32 %s5890_s30, 4  ;;  %s59_s27 = int_to_ptr.vmem [resolvable:$true] %s58_s27  ;;  %s85_s7 = int_to_ptr.vmem [resolvable:$true] %s84_s7 }
  0x26   :  { %s5822_s14 = scalar_lea.vmem %s59_s27, 2048  ;;  %p5827_p2 = scmp.lt.s32.totalorder %s59_s27, %s59_s27 }
  0x27   :  { %p5823_p1 = scmp.ne.s32.totalorder %s59_s27, %s5822_s14  ;;  %p5828_p3 = scmp.lt.s32.totalorder %s5822_s14, %s5822_s14 }
  0x29   :  { %p5829_p4 = por %p5828_p3, %p5827_p2 }
  0x2b   :  { %p5830_p5 = pnand %p5829_p4, %p5823_p1 }
  0x2d   :  { %5833 = shalt.err (!%p5830_p5)
}
  0x2e   :  { %64 = dma.hbm_to_vmem [thread:$0]  %s7191_s5, 2048, %s59_s27, [#allocation6], %s5883_s28, %s5883_s28, %s5884_s29  }
  0x2f   :  { %s5842_s0 = scalar_lea.vmem %s85_s7, 512  ;;  %p5847_p7 = scmp.lt.s32.totalorder %s85_s7, %s85_s7 }
  0x30   :  { %p5843_p6 = scmp.ne.s32.totalorder %s85_s7, %s5842_s0  ;;  %p5848_p8 = scmp.lt.s32.totalorder %s5842_s0, %s5842_s0 }
  0x32   :  { %p5849_p9 = por %p5848_p8, %p5847_p7 }
  0x34   :  { %p5850_p10 = pnand %p5849_p9, %p5843_p6 }
  0x36   :  { %5853 = shalt.err (!%p5850_p10)
}
  0x37   :  { %90 = dma.hbm_to_vmem [thread:$0]  %s7194_s8, 512, %s85_s7, [#allocation9], %s5887_s20, %s5887_s20, %s5888_s21  }
  0x38   :  { %5874 = dma.done.wait [#allocation3], 256  }
  0x39   :  { %5875 = vsyncadd [#allocation3], 4294967040 }
  0x3a   :  { %5876 = dma.done.wait [#allocation6], 4096  }
  0x3b   :  { %5877 = vsyncadd [#allocation6], 4294963200 }
  0x3c   :  { %5878 = dma.done.wait [#allocation9], 1024  }
  0x3d   :  { %5879 = vsyncadd [#allocation9], 4294966272  ;;  %v5891_v0 = vmov 0.0   ;;  %vm5892_vm0 = vmmov 0   ;;  %v129_v1 = vld [vmem:[#allocation5 + $0x78] sm:$0xff]  ;;  %v128_v2 = vld [vmem:[#allocation5 + $0x70] sm:$0xff]  ;;  %v132_v27 = vlaneseq }
  0x3e   :  { %5096 = vmatprep.subr.mxu1 %v5891_v0  ;;  %5104 = vmatprep.mubr.msk.f32.mxu1 %vm5892_vm0, %v5891_v0  ;;  %v127_v3 = vld [vmem:[#allocation5 + $0x68] sm:$0xff]  ;;  %v126_v4 = vld [vmem:[#allocation5 + $0x60] sm:$0xff]  ;;  %v125_v5 = vld [vmem:[#allocation5 + $0x58] sm:$0xff]  ;;  %vm142_vm1 = vcmask 523264   ;;  %s5894_s15 = smov 32   ;;  %vm234_vm2 = vcmask 261120  }
  0x3f   :  { %213 = vmatprep.mubr.f32.mxu0 %v5891_v0  ;;  %165 = vmatprep.subr.mxu0 %v129_v1  ;;  %v6006_v6 = vld [vmem:[%s7189_s3 + $0x18] sm:$0xff]  ;;  %v124_v7 = vld [vmem:[#allocation5 + $0x50] sm:$0xff]  ;;  %v6012_v8 = vld [vmem:[%s7189_s3 + $0x10] sm:$0xff]  ;;  %v6088_v28 = vshrl.u32 %v132_v27, 7  ;;  %vm1973_vm3 = vcmask 1043456   ;;  %vm1971_vm4 = vcmask 1041408  }
  0x40   :  { %166 = vmatpush1.msra.mxu0 %v128_v2  ;;  %5097 = vmatpush3.msra.mxu1 %v6006_v6  ;;  %v123_v9 = vld [vmem:[#allocation5 + $0x48] sm:$0xff]  ;;  %v6018_v10 = vld [vmem:[%s7189_s3 + $0x8] sm:$0xff]  ;;  %v122_v11 = vld [vmem:[#allocation5 + $0x40] sm:$0xff]  ;;  %vm1975_vm5 = vcmask 1045504   ;;  %vm3974_vm7 = vcmask 64512   ;;  %vm4050_vm9 = vcmask 1041409  }
  0x41   :  { %167 = vmatprep.subr.mxu0 %v127_v3  ;;  %5098 = vmatprep.subr.mxu1 %v5891_v0  ;;  %v121_v12 = vld [vmem:[#allocation5 + $0x38] sm:$0xff]  ;;  %v6025_v13 = vld [vmem:[%s7189_s3] sm:$0xff]  ;;  %v119_v15 = vld [vmem:[#allocation5 + $0x28] sm:$0xff]  ;;  %v6091_v29 = vsub.s32 0, %v6088_v28  ;;  %v6097_v32 = vsub.s32 1, %v6088_v28  ;;  %vm4600_vm10 = vcmask 58368  }
  0x42   :  { %168 = vmatpush1.msra.mxu0 %v126_v4  ;;  %5099 = vmatpush3.msra.mxu1 %v6012_v8  ;;  %v120_v14 = vld [vmem:[#allocation5 + $0x30] sm:$0xff]  ;;  %v118_v16 = vld [vmem:[#allocation5 + $0x20] sm:$0xff]  ;;  %v6033_v17 = vld [vmem:[%s7190_s4 + $0x18] sm:$0xff]  ;;  %vm4652_vm11 = vcmask 1024  }
  0x43   :  { %169 = vmatprep.subr.mxu0 %v125_v5  ;;  %5100 = vmatprep.subr.mxu1 %v5891_v0  ;;  %v117_v18 = vld [vmem:[#allocation5 + $0x18] sm:$0xff]  ;;  %v116_v19 = vld [vmem:[#allocation5 + $0x10] sm:$0xff]  ;;  %v6040_v20 = vld [vmem:[%s7190_s4 + $0x10] sm:$0xff] }
  0x44   :  { %170 = vmatpush1.msra.mxu0 %v124_v7  ;;  %5101 = vmatpush3.msra.mxu1 %v6018_v10  ;;  %v115_v21 = vld [vmem:[#allocation5 + $0x8] sm:$0xff]  ;;  %v114_v22 = vld [vmem:[#allocation5] sm:$0xff]  ;;  %v6047_v23 = vld [vmem:[%s7190_s4 + $0x8] sm:$0xff] }
  0x45   :  { %171 = vmatprep.subr.mxu0 %v123_v9  ;;  %5102 = vmatprep.subr.mxu1 %v5891_v0  ;;  %v112_v24 = vld [vmem:[#allocation2] sm:$0xff]  ;;  %v113_v26 = vld [vmem:[#allocation2 + $0x8] sm:$0xff] }
  0x46   :  { %172 = vmatpush1.msra.mxu0 %v122_v11  ;;  %5103 = vmatpush3.msra.mxu1 %v6025_v13  ;;  %v6054_v25 = vld [vmem:[%s7190_s4] sm:$0xff] }
  0x47   :  { %173 = vmatprep.subr.mxu0 %v121_v12  ;;  %5107 = vmatprep.subr.mxu1 %v5891_v0  ;;  %v130_v31 = vld [vmem:[%s7188_s2] sm:$0x3]  ;;  %s5893_s2 = smov 64  }
  0x48   :  { %174 = vmatpush1.msra.mxu0 %v120_v14  ;;  %5105 = vmatmul.mubr.f32.vlgmr.msra.gmra.mxu1 %v5891_v0  ;;  %v135_v34 = vrot.slane %v130_v31, %v6091_v29  ;;  %v139_v35 = vrot.slane %v130_v31, %v6097_v32 }
  0x49   :  { %175 = vmatprep.subr.mxu0 %v119_v15  ;;  %5108 = vmatpush3.msra.mxu1 %v6033_v17 }
  0x4a   :  { %176 = vmatpush1.msra.mxu0 %v118_v16  ;;  %5109 = vmatprep.subr.mxu1 %v5891_v0 }
  0x4b   :  { %177 = vmatprep.subr.mxu0 %v117_v18  ;;  %5110 = vmatpush3.msra.mxu1 %v6040_v20 }
  0x4c   :  { %178 = vmatpush1.msra.mxu0 %v116_v19  ;;  %5111 = vmatprep.subr.mxu1 %v5891_v0 }
  0x4d   :  { %179 = vmatprep.subr.mxu0 %v115_v21  ;;  %5112 = vmatpush3.msra.mxu1 %v6047_v23 }
  0x4e   :  { %180 = vmatpush1.msra.mxu0 %v114_v22  ;;  %5113 = vmatprep.subr.mxu1 %v5891_v0 }
  0x4f   :  { %4859 = vmatmul.mubr.msk.f32.vlgmr.msra.gmra.mxu0 %vm142_vm1, %v112_v24  ;;  %5114 = vmatpush3.msra.mxu1 %v6054_v25 }
  0x50   :  { %219 = vmatprep.mubr.f32.mxu0 %v5891_v0  ;;  %5115 = vmatprep.mubr.msk.f32.mxu1 %vm5892_vm0, %v5891_v0 }
  0x51   :  { %5118 = vmatprep.subr.mxu1 %v5891_v0  ;;  %5116 = vmatmul.mubr.f32.vlgmr.msra.gmra.mxu1 %v5891_v0 }
  0x52   :  { %5140 = vmatprep.subr.mxu0 %v5891_v0  ;;  %5119 = vmatpush3.msra.mxu1 %v6006_v6 }
  0x53   :  { %4860 = vmatmul.mubr.msk.f32.gmra.mxu0 %vm142_vm1, %v113_v26  ;;  %5120 = vmatprep.subr.mxu1 %v5891_v0 }
  0x54   :  { %5126 = vmatprep.mubr.msk.f32.mxu1 %vm5892_vm0, %v5891_v0  ;;  %5121 = vmatpush3.msra.mxu1 %v6012_v8 }
  0x55   :  { %5141 = vmatpush3.msra.mxu0 %v6006_v6  ;;  %5122 = vmatprep.subr.mxu1 %v5891_v0 }
  0x56   :  { %5142 = vmatprep.subr.mxu0 %v5891_v0  ;;  %5123 = vmatpush3.msra.mxu1 %v6018_v10 }
  0x57   :  { %5143 = vmatpush3.msra.mxu0 %v6012_v8  ;;  %5124 = vmatprep.subr.mxu1 %v5891_v0 }
  0x58   :  { %5144 = vmatprep.subr.mxu0 %v5891_v0  ;;  %5125 = vmatpush3.msra.mxu1 %v6025_v13 }
  0x59   :  { %5145 = vmatpush3.msra.mxu0 %v6018_v10  ;;  %5129 = vmatprep.subr.mxu1 %v5891_v0 }
  0x5a   :  { %5146 = vmatprep.subr.mxu0 %v5891_v0  ;;  %5148 = vmatprep.mubr.msk.f32.mxu0 %vm5892_vm0, %v5891_v0 }
  0x5b   :  { %5147 = vmatpush3.msra.mxu0 %v6025_v13 }
  0x5c   :  { %5162 = vmatprep.subr.mxu0 %v5891_v0 }
 0x108   :  { %v304_v30 = vpop.f32.mrf.mxu1 }
 0x10a   :  { %v5106_v33 = vpop.f32.mrf.mxu1 }
 0x10f   :  { %v215_v36 = vpop.f32.mrf.mxu0 }
 0x110   :  { %v6101_v37 = vadd.f32 %v215_v36, %v135_v34 }
 0x111   :  { %v217_v38 = vpop.f32.mrf.mxu0  ;;  %v399_v41 = vpop.f32.mrf.mxu1 }
 0x112   :  { %v308_v39 = vadd.f32 %v304_v30, %v6101_v37  ;;  %v6104_v40 = vadd.f32 %v217_v38, %v139_v35  ;;  %v404_v44 = vrot.slane %v399_v41, 2 }
 0x113   :  { %v221_v42 = vpop.f32.mrf.mxu0  ;;  %v5117_v45 = vpop.f32.mrf.mxu1 }
 0x114   :  { %5486 = vtanh.f32 %v308_v39  ;;  %v6106_v43 = vadd.f32 %v221_v42, %v135_v34  ;;  %v4861_v51 = vmul.f32 -1.442695, %v308_v39 }
 0x115   :  { %v223_v46 = vpop.f32.mrf.mxu0 }
 0x116   :  { %v6108_v47 = vadd.f32 %v223_v46, %v139_v35 }
 0x118   :  { %v406_v48 = vadd.f32 %v404_v44, %v6108_v47 }
 0x11a   :  { %5488 = vtanh.f32 %v406_v48  ;;  %v4862_v52 = vmul.f32 -1.442695, %v406_v48 }
 0x11b   :  { %5490 = vpow2.f32 %v4861_v51 }
 0x11c   :  { %5492 = vpow2.f32 %v4862_v52 }
 0x121   :  { %v5487_v49 = vpop.eup %5486 }
 0x122   :  { %318 = vrot.lane.b32.xlu0 %v5487_v49, %s5893_s2 }
 0x127   :  { %v5489_v50 = vpop.eup %5488 }
 0x128   :  { %416 = vrot.lane.b32.xlu0 %v5489_v50, %s5893_s2  ;;  %v5491_v53 = vpop.eup %5490 }
 0x129   :  { %v312_v54 = vadd.f32 1.0, %v5491_v53  ;;  %v5493_v55 = vpop.eup %5492 }
 0x12a   :  { %v410_v56 = vadd.f32 1.0, %v5493_v55 }
 0x12b   :  { %5494 = vrcp.f32 %v312_v54 }
 0x12c   :  { %5496 = vrcp.f32 %v410_v56 }
 0x138   :  { %v5495_v57 = vpop.eup %5494 }
 0x139   :  { %v5497_v60 = vpop.eup %5496  ;;  %v316_v63 = vmul.f32 0.0, %v5495_v57 }
 0x13a   :  { %v414_v3 = vmul.f32 0.0, %v5497_v60 }
 0x194   :  { %v319_v58 = vpop.permute.xlu0 %318 }
 0x195   :  { %v321_v59 = vmul.f32 %v5495_v57, %v319_v58 }
 0x197   :  { %323 = vrot.lane.b32.xlu1 %v321_v59, %s5894_s15 }
 0x19a   :  { %v417_v61 = vpop.permute.xlu0 %416 }
 0x19b   :  { %v419_v62 = vmul.f32 %v5497_v60, %v417_v61 }
 0x19d   :  { %421 = vrot.lane.b32.xlu1 %v419_v62, %s5894_s15 }
 0x209   :  { %v324_v1 = vpop.permute.xlu1 %323 }
 0x20a   :  { %v6115_v2 = vadd.f32 %v324_v1, %v316_v63 }
 0x20c   :  { %5498 = vtanh.f32 %v6115_v2  ;;  %v518_v53 = vrot.slane %v6115_v2, 6 }
 0x20f   :  { %v422_v4 = vpop.permute.xlu1 %421 }
 0x210   :  { %v6118_v5 = vadd.f32 %v422_v4, %v414_v3 }
 0x212   :  { %5500 = vtanh.f32 %v6118_v5 }
 0x219   :  { %v5499_v7 = vpop.eup %5498 }
 0x21a   :  { %329 = vrot.lane.b32.xlu0 %v5499_v7, %s5893_s2 }
 0x21f   :  { %v5501_v9 = vpop.eup %5500 }
 0x220   :  { %427 = vrot.lane.b32.xlu1 %v5501_v9, %s5893_s2 }
 0x28c   :  { %v330_v11 = vpop.permute.xlu0 %329 }
 0x28d   :  { %v332_v12 = vmul.f32 %v5495_v57, %v330_v11  ;;  %v625_v57 = vrot.slane %v6118_v5, 2 }
 0x28f   :  { %432 = vrot.lane.b32.xlu0 %v332_v12, %s5894_s15 }
 0x292   :  { %v428_v14 = vpop.permute.xlu1 %427 }
 0x293   :  { %v6124_v15 = vmul.f32 %v5497_v60, %v428_v14 }
 0x295   :  { %v538_v16 = vrot.slane %v6124_v15, 6 }
 0x297   :  { %539 = vrot.lane.b32.xlu1 %v538_v16, %s5894_s15 }
 0x301   :  { %v6128_v18 = vpop.permute.xlu0 %432 }
 0x302   :  { %5127 = vmatmul.mubr.msk.f32.vlgmr.msra.gmra.mxu1 %vm234_vm2, %v6128_v18 }
 0x303   :  { %5130 = vmatpush3.msra.mxu1 %v6033_v17  ;;  %5137 = vmatprep.mubr.msk.f32.mxu1 %vm5892_vm0, %v5891_v0 }
 0x304   :  { %5131 = vmatprep.subr.mxu1 %v5891_v0 }
 0x305   :  { %5132 = vmatpush3.msra.mxu1 %v6040_v20 }
 0x306   :  { %5133 = vmatprep.subr.mxu1 %v5891_v0 }
 0x307   :  { %5134 = vmatpush3.msra.mxu1 %v6047_v23 }
 0x308   :  { %5135 = vmatprep.subr.mxu1 %v5891_v0 }
 0x309   :  { %v540_v19 = vpop.permute.xlu1 %539  ;;  %5136 = vmatpush3.msra.mxu1 %v6054_v25 }
 0x30a   :  { %5138 = vmatmul.mubr.msk.f32.vlgmr.msra.gmra.mxu1 %vm234_vm2, %v540_v19  ;;  %5151 = vmatprep.subr.mxu1 %v5891_v0 }
 0x30b   :  { %5152 = vmatpush3.msra.mxu1 %v6033_v17  ;;  %5159 = vmatprep.mubr.msk.f32.mxu1 %vm5892_vm0, %v5891_v0 }
 0x30c   :  { %5153 = vmatprep.subr.mxu1 %v5891_v0 }
 0x30d   :  { %5154 = vmatpush3.msra.mxu1 %v6040_v20 }
 0x30e   :  { %5155 = vmatprep.subr.mxu1 %v5891_v0 }
 0x30f   :  { %5156 = vmatpush3.msra.mxu1 %v6047_v23 }
 0x310   :  { %5157 = vmatprep.subr.mxu1 %v5891_v0 }
 0x311   :  { %5158 = vmatpush3.msra.mxu1 %v6054_v25 }
 0x312   :  { %5173 = vmatprep.subr.mxu1 %v5891_v0 }
 0x3c2   :  { %v502_v21 = vpop.f32.mrf.mxu1 }
 0x3c3   :  { %v507_v22 = vrot.slane %v502_v21, 6 }
 0x3c4   :  { %v5128_v24 = vpop.f32.mrf.mxu1 }
 0x3c5   :  { %v509_v26 = vadd.f32 %v507_v22, %v6101_v37 }
 0x3c7   :  { %5502 = vtanh.f32 %v509_v26  ;;  %v4864_v38 = vmul.f32 -1.442695, %v509_v26 }
 0x3ca   :  { %v609_v30 = vpop.f32.mrf.mxu1 }
 0x3cb   :  { %v614_v31 = vrot.slane %v609_v30, 4 }
 0x3cc   :  { %v5139_v33 = vpop.f32.mrf.mxu1 }
 0x3cd   :  { %v616_v34 = vadd.f32 %v614_v31, %v6108_v47 }
 0x3cf   :  { %5504 = vtanh.f32 %v616_v34  ;;  %v4866_v39 = vmul.f32 -1.442695, %v616_v34 }
 0x3d0   :  { %5506 = vpow2.f32 %v4864_v38 }
 0x3d1   :  { %5508 = vpow2.f32 %v4866_v39 }
 0x3d4   :  { %v5503_v35 = vpop.eup %5502 }
 0x3d5   :  { %522 = vrot.lane.b32.xlu1 %v5503_v35, %s5893_s2 }
 0x3dc   :  { %v5505_v36 = vpop.eup %5504 }
 0x3dd   :  { %629 = vrot.lane.b32.xlu0 %v5505_v36, %s5893_s2  ;;  %v5507_v41 = vpop.eup %5506 }
 0x3de   :  { %v513_v42 = vadd.f32 1.0, %v5507_v41  ;;  %v5509_v44 = vpop.eup %5508 }
 0x3df   :  { %v620_v45 = vadd.f32 1.0, %v5509_v44 }
 0x3e0   :  { %5510 = vrcp.f32 %v513_v42 }
 0x3e1   :  { %5512 = vrcp.f32 %v620_v45 }
 0x3ed   :  { %v5511_v46 = vpop.eup %5510 }
 0x3ee   :  { %v5513_v50 = vpop.eup %5512  ;;  %v520_v54 = vmul.f32 %v5511_v46, %v518_v53 }
 0x3ef   :  { %v627_v58 = vmul.f32 %v5513_v50, %v625_v57 }
 0x447   :  { %v523_v48 = vpop.permute.xlu1 %522 }
 0x448   :  { %v525_v49 = vmul.f32 %v5511_v46, %v523_v48 }
 0x44a   :  { %527 = vrot.lane.b32.xlu1 %v525_v49, %s5894_s15 }
 0x44f   :  { %v630_v51 = vpop.permute.xlu0 %629 }
 0x450   :  { %v632_v52 = vmul.f32 %v5513_v50, %v630_v51 }
 0x452   :  { %634 = vrot.lane.b32.xlu0 %v632_v52, %s5894_s15 }
 0x4bc   :  { %v528_v55 = vpop.permute.xlu1 %527 }
 0x4bd   :  { %v6160_v56 = vadd.f32 %v528_v55, %v520_v54 }
 0x4bf   :  { %5514 = vtanh.f32 %v6160_v56  ;;  %v732_v48 = vrot.slane %v6160_v56, 6 }
 0x4c4   :  { %v635_v59 = vpop.permute.xlu0 %634 }
 0x4c5   :  { %v6164_v60 = vadd.f32 %v635_v59, %v627_v58 }
 0x4c7   :  { %5516 = vtanh.f32 %v6164_v60  ;;  %v839_v52 = vrot.slane %v6164_v60, 2 }
 0x4cc   :  { %v5515_v61 = vpop.eup %5514 }
 0x4cd   :  { %533 = vrot.lane.b32.xlu1 %v5515_v61, %s5893_s2 }
 0x4d4   :  { %v5517_v62 = vpop.eup %5516 }
 0x4d5   :  { %640 = vrot.lane.b32.xlu0 %v5517_v62, %s5893_s2 }
 0x53f   :  { %v534_v63 = vpop.permute.xlu1 %533 }
 0x540   :  { %v6169_v1 = vmul.f32 %v5511_v46, %v534_v63 }
 0x542   :  { %v645_v2 = vrot.slane %v6169_v1, 2 }
 0x544   :  { %646 = vrot.lane.b32.xlu1 %v645_v2, %s5894_s15 }
 0x547   :  { %v641_v3 = vpop.permute.xlu0 %640 }
 0x548   :  { %v6173_v4 = vmul.f32 %v5513_v50, %v641_v3 }
 0x54a   :  { %v752_v5 = vrot.slane %v6173_v4, 4 }
 0x54c   :  { %753 = vrot.lane.b32.xlu0 %v752_v5, %s5894_s15 }
 0x5b6   :  { %v647_v7 = vpop.permute.xlu1 %646 }
 0x5b7   :  { %5149 = vmatmul.mubr.msk.f32.vlgmr.msra.gmra.mxu0 %vm234_vm2, %v647_v7 }
 0x5b8   :  { %5163 = vmatpush3.msra.mxu0 %v6006_v6  ;;  %5170 = vmatprep.mubr.msk.f32.mxu0 %vm5892_vm0, %v5891_v0 }
 0x5b9   :  { %5164 = vmatprep.subr.mxu0 %v5891_v0 }
 0x5ba   :  { %5165 = vmatpush3.msra.mxu0 %v6012_v8 }
 0x5bb   :  { %5166 = vmatprep.subr.mxu0 %v5891_v0 }
 0x5bc   :  { %5167 = vmatpush3.msra.mxu0 %v6018_v10 }
 0x5bd   :  { %5168 = vmatprep.subr.mxu0 %v5891_v0 }
 0x5be   :  { %v754_v9 = vpop.permute.xlu0 %753  ;;  %5169 = vmatpush3.msra.mxu0 %v6025_v13 }
 0x5bf   :  { %5160 = vmatmul.mubr.msk.f32.vlgmr.msra.gmra.mxu1 %vm234_vm2, %v754_v9  ;;  %5184 = vmatprep.subr.mxu0 %v5891_v0 }
 0x5c0   :  { %5174 = vmatpush3.msra.mxu1 %v6033_v17  ;;  %5181 = vmatprep.mubr.msk.f32.mxu1 %vm5892_vm0, %v5891_v0 }
 0x5c1   :  { %5175 = vmatprep.subr.mxu1 %v5891_v0 }
 0x5c2   :  { %5176 = vmatpush3.msra.mxu1 %v6040_v20 }
 0x5c3   :  { %5177 = vmatprep.subr.mxu1 %v5891_v0 }
 0x5c4   :  { %5178 = vmatpush3.msra.mxu1 %v6047_v23 }
 0x5c5   :  { %5179 = vmatprep.subr.mxu1 %v5891_v0 }
 0x5c6   :  { %5180 = vmatpush3.msra.mxu1 %v6054_v25 }
 0x5c7   :  { %5195 = vmatprep.subr.mxu1 %v5891_v0 }
 0x677   :  { %v716_v11 = vpop.f32.mrf.mxu0 }
 0x678   :  { %v721_v12 = vrot.slane %v716_v11, 4 }
 0x679   :  { %v5150_v14 = vpop.f32.mrf.mxu0 }
 0x67a   :  { %v723_v16 = vadd.f32 %v721_v12, %v6101_v37 }
 0x67c   :  { %5518 = vtanh.f32 %v723_v16  ;;  %v4868_v31 = vmul.f32 -1.442695, %v723_v16 }
 0x67f   :  { %v823_v19 = vpop.f32.mrf.mxu1 }
 0x680   :  { %v828_v21 = vrot.slane %v823_v19, 6 }
 0x681   :  { %v5161_v22 = vpop.f32.mrf.mxu1 }
 0x682   :  { %v830_v24 = vadd.f32 %v828_v21, %v6108_v47 }
 0x684   :  { %5520 = vtanh.f32 %v830_v24  ;;  %v4870_v33 = vmul.f32 -1.442695, %v830_v24 }
 0x685   :  { %5522 = vpow2.f32 %v4868_v31 }
 0x686   :  { %5524 = vpow2.f32 %v4870_v33 }
 0x689   :  { %v5519_v26 = vpop.eup %5518 }
 0x68a   :  { %736 = vrot.lane.b32.xlu1 %v5519_v26, %s5893_s2 }
 0x691   :  { %v5521_v30 = vpop.eup %5520 }
 0x692   :  { %843 = vrot.lane.b32.xlu0 %v5521_v30, %s5893_s2  ;;  %v5523_v34 = vpop.eup %5522 }
 0x693   :  { %v727_v35 = vadd.f32 1.0, %v5523_v34  ;;  %v5525_v36 = vpop.eup %5524 }
 0x694   :  { %v834_v38 = vadd.f32 1.0, %v5525_v36 }
 0x695   :  { %5526 = vrcp.f32 %v727_v35 }
 0x696   :  { %5528 = vrcp.f32 %v834_v38 }
 0x6a2   :  { %v5527_v39 = vpop.eup %5526 }
 0x6a3   :  { %v5529_v44 = vpop.eup %5528  ;;  %v734_v49 = vmul.f32 %v5527_v39, %v732_v48 }
 0x6a4   :  { %v841_v53 = vmul.f32 %v5529_v44, %v839_v52 }
 0x6fc   :  { %v737_v41 = vpop.permute.xlu1 %736 }
 0x6fd   :  { %v739_v42 = vmul.f32 %v5527_v39, %v737_v41 }
 0x6ff   :  { %741 = vrot.lane.b32.xlu1 %v739_v42, %s5894_s15 }
 0x704   :  { %v844_v45 = vpop.permute.xlu0 %843 }
 0x705   :  { %v846_v46 = vmul.f32 %v5529_v44, %v844_v45 }
 0x707   :  { %848 = vrot.lane.b32.xlu0 %v846_v46, %s5894_s15 }
 0x771   :  { %v742_v50 = vpop.permute.xlu1 %741 }
 0x772   :  { %v6206_v51 = vadd.f32 %v742_v50, %v734_v49 }
 0x774   :  { %5530 = vtanh.f32 %v6206_v51 }
 0x779   :  { %v849_v54 = vpop.permute.xlu0 %848 }
 0x77a   :  { %v6210_v55 = vadd.f32 %v849_v54, %v841_v53 }
 0x77c   :  { %5532 = vtanh.f32 %v6210_v55  ;;  %v1050_v45 = vrot.slane %v6210_v55, 2 }
 0x781   :  { %v5531_v57 = vpop.eup %5530 }
 0x782   :  { %747 = vrot.lane.b32.xlu1 %v5531_v57, %s5893_s2 }
 0x789   :  { %v5533_v58 = vpop.eup %5532 }
 0x78a   :  { %854 = vrot.lane.b32.xlu0 %v5533_v58, %s5893_s2 }
 0x7f4   :  { %v748_v56 = vpop.permute.xlu1 %747 }
 0x7f5   :  { %v6215_v59 = vmul.f32 %v5527_v39, %v748_v56  ;;  %v946_v39 = vrot.slane %v6206_v51, 6 }
 0x7f7   :  { %v859_v61 = vrot.slane %v6215_v59, 4 }
 0x7f9   :  { %860 = vrot.lane.b32.xlu1 %v859_v61, %s5894_s15 }
 0x7fc   :  { %v855_v60 = vpop.permute.xlu0 %854 }
 0x7fd   :  { %v6219_v62 = vmul.f32 %v5529_v44, %v855_v60 }
 0x7ff   :  { %v966_v63 = vrot.slane %v6219_v62, 2 }
 0x801   :  { %967 = vrot.lane.b32.xlu0 %v966_v63, %s5894_s15 }
 0x86b   :  { %v861_v2 = vpop.permute.xlu1 %860 }
 0x86c   :  { %5171 = vmatmul.mubr.msk.f32.vlgmr.msra.gmra.mxu0 %vm234_vm2, %v861_v2 }
 0x86d   :  { %5185 = vmatpush3.msra.mxu0 %v6006_v6  ;;  %5192 = vmatprep.mubr.msk.f32.mxu0 %vm5892_vm0, %v5891_v0 }
 0x86e   :  { %5186 = vmatprep.subr.mxu0 %v5891_v0 }
 0x86f   :  { %5187 = vmatpush3.msra.mxu0 %v6012_v8 }
 0x870   :  { %5188 = vmatprep.subr.mxu0 %v5891_v0 }
 0x871   :  { %5189 = vmatpush3.msra.mxu0 %v6018_v10 }
 0x872   :  { %5190 = vmatprep.subr.mxu0 %v5891_v0 }
 0x873   :  { %v968_v3 = vpop.permute.xlu0 %967  ;;  %5191 = vmatpush3.msra.mxu0 %v6025_v13 }
 0x874   :  { %5182 = vmatmul.mubr.msk.f32.vlgmr.msra.gmra.mxu1 %vm234_vm2, %v968_v3  ;;  %5206 = vmatprep.subr.mxu0 %v5891_v0 }
 0x875   :  { %5196 = vmatpush3.msra.mxu1 %v6033_v17  ;;  %5203 = vmatprep.mubr.msk.f32.mxu1 %vm5892_vm0, %v5891_v0 }
 0x876   :  { %5197 = vmatprep.subr.mxu1 %v5891_v0 }
 0x877   :  { %5198 = vmatpush3.msra.mxu1 %v6040_v20 }
 0x878   :  { %5199 = vmatprep.subr.mxu1 %v5891_v0 }
 0x879   :  { %5200 = vmatpush3.msra.mxu1 %v6047_v23 }
 0x87a   :  { %5201 = vmatprep.subr.mxu1 %v5891_v0 }
 0x87b   :  { %5202 = vmatpush3.msra.mxu1 %v6054_v25 }
 0x87c   :  { %5217 = vmatprep.subr.mxu1 %v5891_v0 }
 0x92c   :  { %v930_v5 = vpop.f32.mrf.mxu0 }
 0x92d   :  { %v935_v7 = vrot.slane %v930_v5, 2 }
 0x92e   :  { %v5172_v9 = vpop.f32.mrf.mxu0 }
 0x92f   :  { %v937_v11 = vadd.f32 %v935_v7, %v6101_v37 }
 0x931   :  { %5534 = vtanh.f32 %v937_v11  ;;  %v4872_v22 = vmul.f32 -1.442695, %v937_v11 }
 0x934   :  { %v1037_v12 = vpop.f32.mrf.mxu1 }
 0x935   :  { %v1041_v14 = vadd.f32 %v1037_v12, %v6108_v47 }
 0x936   :  { %v5183_v16 = vpop.f32.mrf.mxu1 }
 0x937   :  { %5536 = vtanh.f32 %v1041_v14  ;;  %v4874_v24 = vmul.f32 -1.442695, %v1041_v14 }
 0x938   :  { %5538 = vpow2.f32 %v4872_v22 }
 0x939   :  { %5540 = vpow2.f32 %v4874_v24 }
 0x93e   :  { %v5535_v19 = vpop.eup %5534 }
 0x93f   :  { %950 = vrot.lane.b32.xlu1 %v5535_v19, %s5893_s2 }
 0x944   :  { %v5537_v21 = vpop.eup %5536 }
 0x945   :  { %1054 = vrot.lane.b32.xlu0 %v5537_v21, %s5893_s2  ;;  %v5539_v26 = vpop.eup %5538 }
 0x946   :  { %v941_v30 = vadd.f32 1.0, %v5539_v26  ;;  %v5541_v31 = vpop.eup %5540 }
 0x947   :  { %v1045_v37 = vadd.f32 1.0, %v5541_v31 }
 0x948   :  { %5542 = vrcp.f32 %v941_v30 }
 0x949   :  { %5544 = vrcp.f32 %v1045_v37 }
 0x955   :  { %v5543_v33 = vpop.eup %5542 }
 0x956   :  { %v5545_v35 = vpop.eup %5544  ;;  %v948_v41 = vmul.f32 %v5543_v33, %v946_v39 }
 0x957   :  { %v1052_v46 = vmul.f32 %v5545_v35, %v1050_v45 }
 0x9b1   :  { %v951_v47 = vpop.permute.xlu1 %950 }
 0x9b2   :  { %v953_v34 = vmul.f32 %v5543_v33, %v951_v47 }
 0x9b4   :  { %955 = vrot.lane.b32.xlu1 %v953_v34, %s5894_s15 }
 0x9b7   :  { %v1055_v36 = vpop.permute.xlu0 %1054 }
 0x9b8   :  { %v1057_v38 = vmul.f32 %v5545_v35, %v1055_v36 }
 0x9ba   :  { %1059 = vrot.lane.b32.xlu0 %v1057_v38, %s5894_s15 }
 0xa26   :  { %v956_v42 = vpop.permute.xlu1 %955 }
 0xa27   :  { %v6252_v44 = vadd.f32 %v956_v42, %v948_v41 }
 0xa29   :  { %5546 = vtanh.f32 %v6252_v44  ;;  %v1154_v47 = vrot.slane %v6252_v44, 6 }
 0xa2c   :  { %v1060_v48 = vpop.permute.xlu0 %1059 }
 0xa2d   :  { %v6256_v49 = vadd.f32 %v1060_v48, %v1052_v46 }
 0xa2f   :  { %5548 = vtanh.f32 %v6256_v49  ;;  %v1260_v38 = vrot.slane %v6256_v49, 2 }
 0xa36   :  { %v5547_v50 = vpop.eup %5546 }
 0xa37   :  { %961 = vrot.lane.b32.xlu1 %v5547_v50, %s5893_s2 }
 0xa3c   :  { %v5549_v52 = vpop.eup %5548 }
 0xa3d   :  { %1065 = vrot.lane.b32.xlu0 %v5549_v52, %s5893_s2 }
 0xaa9   :  { %v962_v51 = vpop.permute.xlu1 %961 }
 0xaaa   :  { %v6261_v53 = vmul.f32 %v5543_v33, %v962_v51 }
 0xaac   :  { %v1070_v54 = vrot.slane %v6261_v53, 6 }
 0xaae   :  { %1071 = vrot.lane.b32.xlu1 %v1070_v54, %s5894_s15 }
 0xaaf   :  { %v1066_v55 = vpop.permute.xlu0 %1065 }
 0xab0   :  { %v6265_v57 = vmul.f32 %v5545_v35, %v1066_v55 }
 0xab2   :  { %1174 = vrot.lane.b32.xlu0 %v6265_v57, %s5894_s15 }
 0xb20   :  { %v1072_v58 = vpop.permute.xlu1 %1071 }
 0xb21   :  { %5193 = vmatmul.mubr.msk.f32.vlgmr.msra.gmra.mxu0 %vm234_vm2, %v1072_v58 }
 0xb22   :  { %5207 = vmatpush3.msra.mxu0 %v6006_v6  ;;  %5214 = vmatprep.mubr.msk.f32.mxu0 %vm5892_vm0, %v5891_v0 }
 0xb23   :  { %5208 = vmatprep.subr.mxu0 %v5891_v0 }
 0xb24   :  { %v1175_v56 = vpop.permute.xlu0 %1174  ;;  %5209 = vmatpush3.msra.mxu0 %v6012_v8 }
 0xb25   :  { %5204 = vmatmul.mubr.msk.f32.vlgmr.msra.gmra.mxu1 %vm234_vm2, %v1175_v56  ;;  %5210 = vmatprep.subr.mxu0 %v5891_v0 }
 0xb26   :  { %5211 = vmatpush3.msra.mxu0 %v6018_v10  ;;  %5218 = vmatpush3.msra.mxu1 %v6033_v17 }
 0xb27   :  { %5212 = vmatprep.subr.mxu0 %v5891_v0  ;;  %5219 = vmatprep.subr.mxu1 %v5891_v0 }
 0xb28   :  { %5213 = vmatpush3.msra.mxu0 %v6025_v13  ;;  %5220 = vmatpush3.msra.mxu1 %v6040_v20 }
 0xb29   :  { %5221 = vmatprep.subr.mxu1 %v5891_v0  ;;  %5225 = vmatprep.mubr.msk.f32.mxu1 %vm5892_vm0, %v5891_v0 }
 0xb2a   :  { %5222 = vmatpush3.msra.mxu1 %v6047_v23  ;;  %5228 = vmatprep.subr.mxu0 %v5891_v0 }
 0xb2b   :  { %5223 = vmatprep.subr.mxu1 %v5891_v0 }
 0xb2c   :  { %5224 = vmatpush3.msra.mxu1 %v6054_v25 }
 0xb2d   :  { %5239 = vmatprep.subr.mxu1 %v5891_v0 }
 0xbe1   :  { %v1141_v61 = vpop.f32.mrf.mxu0 }
 0xbe2   :  { %v1145_v60 = vadd.f32 %v1141_v61, %v6106_v43 }
 0xbe3   :  { %v5194_v63 = vpop.f32.mrf.mxu0 }
 0xbe4   :  { %5550 = vtanh.f32 %v1145_v60  ;;  %v4876_v12 = vmul.f32 -1.442695, %v1145_v60 }
 0xbe5   :  { %v1244_v2 = vpop.f32.mrf.mxu1 }
 0xbe6   :  { %v1249_v3 = vrot.slane %v1244_v2, 2 }
 0xbe7   :  { %v5205_v5 = vpop.f32.mrf.mxu1 }
 0xbe8   :  { %v1251_v7 = vadd.f32 %v1249_v3, %v6104_v40 }
 0xbea   :  { %5552 = vtanh.f32 %v1251_v7  ;;  %v4878_v14 = vmul.f32 -1.442695, %v1251_v7 }
 0xbeb   :  { %5554 = vpow2.f32 %v4876_v12 }
 0xbec   :  { %5556 = vpow2.f32 %v4878_v14 }
 0xbf1   :  { %v5551_v9 = vpop.eup %5550 }
 0xbf2   :  { %1158 = vrot.lane.b32.xlu1 %v5551_v9, %s5893_s2 }
 0xbf7   :  { %v5553_v11 = vpop.eup %5552 }
 0xbf8   :  { %1264 = vrot.lane.b32.xlu0 %v5553_v11, %s5893_s2  ;;  %v5555_v16 = vpop.eup %5554 }
 0xbf9   :  { %v1149_v19 = vadd.f32 1.0, %v5555_v16  ;;  %v5557_v21 = vpop.eup %5556 }
 0xbfa   :  { %v1255_v22 = vadd.f32 1.0, %v5557_v21 }
 0xbfb   :  { %5558 = vrcp.f32 %v1149_v19 }
 0xbfc   :  { %5560 = vrcp.f32 %v1255_v22 }
 0xc08   :  { %v5559_v24 = vpop.eup %5558 }
 0xc09   :  { %v5561_v31 = vpop.eup %5560  ;;  %v1156_v34 = vmul.f32 %v5559_v24, %v1154_v47 }
 0xc0a   :  { %v1262_v39 = vmul.f32 %v5561_v31, %v1260_v38 }
 0xc64   :  { %v1159_v26 = vpop.permute.xlu1 %1158 }
 0xc65   :  { %v1161_v30 = vmul.f32 %v5559_v24, %v1159_v26 }
 0xc67   :  { %1163 = vrot.lane.b32.xlu1 %v1161_v30, %s5894_s15 }
 0xc6a   :  { %v1265_v37 = vpop.permute.xlu0 %1264 }
 0xc6b   :  { %v1267_v33 = vmul.f32 %v5561_v31, %v1265_v37 }
 0xc6d   :  { %1269 = vrot.lane.b32.xlu0 %v1267_v33, %s5894_s15 }
 0xcd9   :  { %v1164_v35 = vpop.permute.xlu1 %1163 }
 0xcda   :  { %v6298_v36 = vadd.f32 %v1164_v35, %v1156_v34 }
 0xcdc   :  { %5562 = vtanh.f32 %v6298_v36 }
 0xcdf   :  { %v1270_v41 = vpop.permute.xlu0 %1269 }
 0xce0   :  { %v6302_v42 = vadd.f32 %v1270_v41, %v1262_v39 }
 0xce2   :  { %5564 = vtanh.f32 %v6302_v42  ;;  %v1473_v37 = vrot.slane %v6302_v42, 2 }
 0xce9   :  { %v5563_v45 = vpop.eup %5562 }
 0xcea   :  { %1169 = vrot.lane.b32.xlu1 %v5563_v45, %s5893_s2 }
 0xcef   :  { %v5565_v46 = vpop.eup %5564 }
 0xcf0   :  { %1275 = vrot.lane.b32.xlu0 %v5565_v46, %s5893_s2 }
 0xd5c   :  { %v1170_v44 = vpop.permute.xlu1 %1169 }
 0xd5d   :  { %v1172_v48 = vmul.f32 %v5559_v24, %v1170_v44  ;;  %v1366_v24 = vrot.slane %v6298_v36, 6 }
 0xd5f   :  { %1280 = vrot.lane.b32.xlu1 %v1172_v48, %s5894_s15  ;;  %v5742_v48 = vld [vmem:[%s7189_s3 + $0x18] sm:$0xff] }
 0xd62   :  { %v1276_v50 = vpop.permute.xlu0 %1275 }
 0xd63   :  { %v6308_v49 = vmul.f32 %v5561_v31, %v1276_v50  ;;  %v5743_v50 = vld [vmem:[%s7189_s3 + $0x10] sm:$0xff] }
 0xd65   :  { %v1386_v52 = vrot.slane %v6308_v49, 6 }
 0xd67   :  { %1387 = vrot.lane.b32.xlu0 %v1386_v52, %s5894_s15  ;;  %v5744_v52 = vld [vmem:[%s7189_s3 + $0x8] sm:$0xff] }
 0xdd1   :  { %v6312_v51 = vpop.permute.xlu1 %1280 }
 0xdd2   :  { %5215 = vmatmul.mubr.msk.f32.vlgmr.msra.gmra.mxu0 %vm234_vm2, %v6312_v51 }
 0xdd3   :  { %5229 = vmatpush3.msra.mxu0 %v6006_v6  ;;  %5236 = vmatprep.mubr.msk.f32.mxu0 %vm5892_vm0, %v5891_v0 }
 0xdd4   :  { %5230 = vmatprep.subr.mxu0 %v5891_v0 }
 0xdd5   :  { %5231 = vmatpush3.msra.mxu0 %v6012_v8 }
 0xdd6   :  { %5232 = vmatprep.subr.mxu0 %v5891_v0 }
 0xdd7   :  { %5233 = vmatpush3.msra.mxu0 %v6018_v10 }
 0xdd8   :  { %5234 = vmatprep.subr.mxu0 %v5891_v0 }
 0xdd9   :  { %v1388_v54 = vpop.permute.xlu0 %1387  ;;  %5235 = vmatpush3.msra.mxu0 %v6025_v13 }
 0xdda   :  { %5226 = vmatmul.mubr.msk.f32.vlgmr.msra.gmra.mxu1 %vm234_vm2, %v1388_v54  ;;  %5250 = vmatprep.subr.mxu0 %v5891_v0 }
 0xddb   :  { %5240 = vmatpush3.msra.mxu1 %v6033_v17  ;;  %5247 = vmatprep.mubr.msk.f32.mxu1 %vm5892_vm0, %v5891_v0 }
 0xddc   :  { %5241 = vmatprep.subr.mxu1 %v5891_v0 }
 0xddd   :  { %5242 = vmatpush3.msra.mxu1 %v6040_v20 }
 0xdde   :  { %5243 = vmatprep.subr.mxu1 %v5891_v0 }
 0xddf   :  { %5244 = vmatpush3.msra.mxu1 %v6047_v23 }
 0xde0   :  { %5245 = vmatprep.subr.mxu1 %v5891_v0 }
 0xde1   :  { %5246 = vmatpush3.msra.mxu1 %v6054_v25 }
 0xde2   :  { %5261 = vmatprep.subr.mxu1 %v5891_v0 }
 0xe92   :  { %v1350_v6 = vpop.f32.mrf.mxu0 }
 0xe93   :  { %v1355_v8 = vrot.slane %v1350_v6, 6  ;;  %v5745_v6 = vld [vmem:[%s7189_s3] sm:$0xff] }
 0xe94   :  { %v5216_v10 = vpop.f32.mrf.mxu0 }
 0xe95   :  { %v1357_v13 = vadd.f32 %v1355_v8, %v6106_v43 }
 0xe97   :  { %5566 = vtanh.f32 %v1357_v13  ;;  %v4880_v2 = vmul.f32 -1.442695, %v1357_v13 }
 0xe9a   :  { %v1457_v55 = vpop.f32.mrf.mxu1 }
 0xe9b   :  { %v1462_v58 = vrot.slane %v1457_v55, 4 }
 0xe9c   :  { %v5227_v56 = vpop.f32.mrf.mxu1 }
 0xe9d   :  { %v1464_v61 = vadd.f32 %v1462_v58, %v6104_v40 }
 0xe9f   :  { %5568 = vtanh.f32 %v1464_v61  ;;  %v4882_v3 = vmul.f32 -1.442695, %v1464_v61 }
 0xea0   :  { %5570 = vpow2.f32 %v4880_v2 }
 0xea1   :  { %5572 = vpow2.f32 %v4882_v3 }
 0xea4   :  { %v5567_v60 = vpop.eup %5566 }
 0xea5   :  { %1370 = vrot.lane.b32.xlu1 %v5567_v60, %s5893_s2 }
 0xeac   :  { %v5569_v63 = vpop.eup %5568 }
 0xead   :  { %1477 = vrot.lane.b32.xlu0 %v5569_v63, %s5893_s2  ;;  %v5571_v5 = vpop.eup %5570 }
 0xeae   :  { %v1361_v7 = vadd.f32 1.0, %v5571_v5  ;;  %v5573_v9 = vpop.eup %5572 }
 0xeaf   :  { %v1468_v11 = vadd.f32 1.0, %v5573_v9 }
 0xeb0   :  { %5574 = vrcp.f32 %v1361_v7 }
 0xeb1   :  { %5576 = vrcp.f32 %v1468_v11 }
 0xebd   :  { %v5575_v12 = vpop.eup %5574 }
 0xebe   :  { %v5577_v19 = vpop.eup %5576  ;;  %v1368_v26 = vmul.f32 %v5575_v12, %v1366_v24 }
 0xebf   :  { %v1475_v33 = vmul.f32 %v5577_v19, %v1473_v37 }
 0xf17   :  { %v1371_v14 = vpop.permute.xlu1 %1370 }
 0xf18   :  { %v1373_v16 = vmul.f32 %v5575_v12, %v1371_v14 }
 0xf1a   :  { %1375 = vrot.lane.b32.xlu1 %v1373_v16, %s5894_s15 }
 0xf1f   :  { %v1478_v21 = vpop.permute.xlu0 %1477 }
 0xf20   :  { %v1480_v22 = vmul.f32 %v5577_v19, %v1478_v21 }
 0xf22   :  { %1482 = vrot.lane.b32.xlu0 %v1480_v22, %s5894_s15 }
 0xf8c   :  { %v1376_v30 = vpop.permute.xlu1 %1375 }
 0xf8d   :  { %v6344_v31 = vadd.f32 %v1376_v30, %v1368_v26 }
 0xf8f   :  { %5578 = vtanh.f32 %v6344_v31 }
 0xf94   :  { %v1483_v47 = vpop.permute.xlu0 %1482 }
 0xf95   :  { %v6348_v34 = vadd.f32 %v1483_v47, %v1475_v33 }
 0xf97   :  { %5580 = vtanh.f32 %v6348_v34  ;;  %v1687_v26 = vrot.slane %v6348_v34, 2 }
 0xf9c   :  { %v5579_v35 = vpop.eup %5578 }
 0xf9d   :  { %1381 = vrot.lane.b32.xlu1 %v5579_v35, %s5893_s2 }
 0xfa4   :  { %v5581_v38 = vpop.eup %5580 }
 0xfa5   :  { %1488 = vrot.lane.b32.xlu0 %v5581_v38, %s5893_s2 }
0x100f   :  { %v1382_v36 = vpop.permute.xlu1 %1381 }
0x1010   :  { %v6353_v39 = vmul.f32 %v5575_v12, %v1382_v36 }
0x1012   :  { %v1493_v41 = vrot.slane %v6353_v39, 2 }
0x1014   :  { %1494 = vrot.lane.b32.xlu1 %v1493_v41, %s5894_s15 }
0x1017   :  { %v1489_v42 = vpop.permute.xlu0 %1488 }
0x1018   :  { %v6357_v45 = vmul.f32 %v5577_v19, %v1489_v42  ;;  %v1580_v19 = vrot.slane %v6344_v31, 6 }
0x101a   :  { %v1600_v46 = vrot.slane %v6357_v45, 4 }
0x101c   :  { %1601 = vrot.lane.b32.xlu0 %v1600_v46, %s5894_s15 }
0x1086   :  { %v1495_v44 = vpop.permute.xlu1 %1494 }
0x1087   :  { %5237 = vmatmul.mubr.msk.f32.vlgmr.msra.gmra.mxu0 %vm234_vm2, %v1495_v44 }
0x1088   :  { %5251 = vmatpush3.msra.mxu0 %v5742_v48  ;;  %5258 = vmatprep.mubr.msk.f32.mxu0 %vm5892_vm0, %v5891_v0 }
0x1089   :  { %5252 = vmatprep.subr.mxu0 %v5891_v0 }
0x108a   :  { %5253 = vmatpush3.msra.mxu0 %v5743_v50 }
0x108b   :  { %5254 = vmatprep.subr.mxu0 %v5891_v0 }
0x108c   :  { %5255 = vmatpush3.msra.mxu0 %v5744_v52 }
0x108d   :  { %5256 = vmatprep.subr.mxu0 %v5891_v0 }
0x108e   :  { %v1602_v54 = vpop.permute.xlu0 %1601  ;;  %5257 = vmatpush3.msra.mxu0 %v5745_v6 }
0x108f   :  { %5248 = vmatmul.mubr.msk.f32.vlgmr.msra.gmra.mxu1 %vm234_vm2, %v1602_v54 }
0x1090   :  { %5262 = vmatpush3.msra.mxu1 %v6033_v17  ;;  %5269 = vmatprep.mubr.msk.f32.mxu1 %vm5892_vm0, %v5891_v0 }
0x1091   :  { %5263 = vmatprep.subr.mxu1 %v5891_v0 }
0x1092   :  { %5264 = vmatpush3.msra.mxu1 %v6040_v20 }
0x1093   :  { %5265 = vmatprep.subr.mxu1 %v5891_v0 }
0x1094   :  { %5266 = vmatpush3.msra.mxu1 %v6047_v23 }
0x1095   :  { %5267 = vmatprep.subr.mxu1 %v5891_v0 }
0x1096   :  { %5268 = vmatpush3.msra.mxu1 %v6054_v25 }
0x1097   :  { %5272 = vmatprep.subr.mxu1 %v5891_v0 }
0x1147   :  { %v1564_v8 = vpop.f32.mrf.mxu0 }
0x1148   :  { %v1569_v10 = vrot.slane %v1564_v8, 4 }
0x1149   :  { %v5238_v17 = vpop.f32.mrf.mxu0 }
0x114a   :  { %v1571_v13 = vadd.f32 %v1569_v10, %v6106_v43 }
0x114c   :  { %5582 = vtanh.f32 %v1571_v13  ;;  %v4884_v25 = vmul.f32 -1.442695, %v1571_v13 }
0x114f   :  { %v1671_v55 = vpop.f32.mrf.mxu1 }
0x1150   :  { %v1676_v58 = vrot.slane %v1671_v55, 6 }
0x1151   :  { %v5249_v56 = vpop.f32.mrf.mxu1 }
0x1152   :  { %v1678_v20 = vadd.f32 %v1676_v58, %v6104_v40 }
0x1154   :  { %5584 = vtanh.f32 %v1678_v20  ;;  %v4886_v60 = vmul.f32 -1.442695, %v1678_v20 }
0x1155   :  { %5586 = vpow2.f32 %v4884_v25 }
0x1156   :  { %5588 = vpow2.f32 %v4886_v60 }
0x1159   :  { %v5583_v61 = vpop.eup %5582 }
0x115a   :  { %1584 = vrot.lane.b32.xlu1 %v5583_v61, %s5893_s2 }
0x1161   :  { %v5585_v23 = vpop.eup %5584 }
0x1162   :  { %1691 = vrot.lane.b32.xlu0 %v5585_v23, %s5893_s2  ;;  %v5587_v63 = vpop.eup %5586 }
0x1163   :  { %v1575_v2 = vadd.f32 1.0, %v5587_v63  ;;  %v5589_v3 = vpop.eup %5588 }
0x1164   :  { %v1682_v5 = vadd.f32 1.0, %v5589_v3 }
0x1165   :  { %5590 = vrcp.f32 %v1575_v2 }
0x1166   :  { %5592 = vrcp.f32 %v1682_v5 }
0x1172   :  { %v5591_v7 = vpop.eup %5590 }
0x1173   :  { %v5593_v12 = vpop.eup %5592  ;;  %v1582_v21 = vmul.f32 %v5591_v7, %v1580_v19 }
0x1174   :  { %v1689_v30 = vmul.f32 %v5593_v12, %v1687_v26  ;;  %v1993_v26 = vld [vmem:[#allocation7 + $0x68] sm:$0xff] }
0x11cc   :  { %v1585_v9 = vpop.permute.xlu1 %1584 }
0x11cd   :  { %v1587_v11 = vmul.f32 %v5591_v7, %v1585_v9 }
0x11cf   :  { %1589 = vrot.lane.b32.xlu1 %v1587_v11, %s5894_s15 }
0x11d4   :  { %v1692_v14 = vpop.permute.xlu0 %1691 }
0x11d5   :  { %v1694_v16 = vmul.f32 %v5593_v12, %v1692_v14 }
0x11d7   :  { %1696 = vrot.lane.b32.xlu0 %v1694_v16, %s5894_s15 }
0x1241   :  { %v1590_v22 = vpop.permute.xlu1 %1589 }
0x1242   :  { %v1592_v24 = vadd.f32 %v1590_v22, %v1582_v21  ;;  %v1995_v22 = vld [vmem:[#allocation7 + $0x78] sm:$0xff] }
0x1243   :  { %2030 = vmatprep.subr.mxu0 %v1995_v22 }
0x1244   :  { %5594 = vtanh.f32 %v1592_v24  ;;  %v1794_v3 = vrot.slane %v1592_v24, 6  ;;  %v1994_v24 = vld [vmem:[#allocation7 + $0x70] sm:$0xff] }
0x1249   :  { %v1697_v37 = vpop.permute.xlu0 %1696 }
0x124a   :  { %v1699_v33 = vadd.f32 %v1697_v37, %v1689_v30  ;;  %v1992_v30 = vld [vmem:[#allocation7 + $0x60] sm:$0xff]  ;;  %v6437_v37 = vld [vmem:[#allocation8 + $0x18] sm:$0xff] }
0x124c   :  { %5596 = vtanh.f32 %v1699_v33  ;;  %v1898_v11 = vrot.slane %v1699_v33, 2  ;;  %v1988_v33 = vld [vmem:[#allocation7 + $0x40] sm:$0xff] }
0x1251   :  { %v5595_v47 = vpop.eup %5594 }
0x1252   :  { %1595 = vrot.lane.b32.xlu1 %v5595_v47, %s5893_s2  ;;  %v1986_v47 = vld [vmem:[#allocation7 + $0x30] sm:$0xff] }
0x1259   :  { %v5597_v35 = vpop.eup %5596 }
0x125a   :  { %1702 = vrot.lane.b32.xlu0 %v5597_v35, %s5893_s2  ;;  %v6450_v35 = vld [vmem:[#allocation8 + $0x8] sm:$0xff] }
0x12c4   :  { %v1596_v38 = vpop.permute.xlu1 %1595 }
0x12c5   :  { %v6400_v36 = vmul.f32 %v5591_v7, %v1596_v38  ;;  %v1984_v38 = vld [vmem:[#allocation7 + $0x20] sm:$0xff] }
0x12c7   :  { %v1707_v31 = vrot.slane %v6400_v36, 4 }
0x12c9   :  { %1708 = vrot.lane.b32.xlu1 %v1707_v31, %s5894_s15  ;;  %v6459_v31 = vld [vmem:[#allocation8] sm:$0xff] }
0x12cc   :  { %v1703_v41 = vpop.permute.xlu0 %1702 }
0x12cd   :  { %v1705_v42 = vmul.f32 %v5593_v12, %v1703_v41  ;;  %v1981_v41 = vld [vmem:[#allocation7 + $0x8] sm:$0xff] }
0x12cf   :  { %v1814_v34 = vrot.slane %v1705_v42, 2 }
0x12d1   :  { %1815 = vrot.lane.b32.xlu0 %v1814_v34, %s5894_s15  ;;  %v6472_v34 = vld [vmem:[#allocation10 + $0x8] sm:$0xff] }
0x133b   :  { %v1709_v46 = vpop.permute.xlu1 %1708 }
0x133c   :  { %5259 = vmatmul.mubr.msk.f32.vlgmr.msra.gmra.mxu0 %vm234_vm2, %v1709_v46  ;;  %v6478_v46 = vld [vmem:[#allocation10] sm:$0xff] }
0x133d   :  { %2078 = vmatprep.mubr.f32.mxu0 %v5891_v0  ;;  %2031 = vmatpush1.msra.mxu0 %v1994_v24  ;;  %v1996_v24 = vld [vmem:[%s7192_s6] sm:$0x3] }
0x133e   :  { %2032 = vmatprep.subr.mxu0 %v1993_v26  ;;  %v2001_v26 = vrot.slane %v1996_v24, %v6091_v29 }
0x133f   :  { %2033 = vmatpush1.msra.mxu0 %v1992_v30  ;;  %v2005_v30 = vrot.slane %v1996_v24, %v6097_v32 }
0x1343   :  { %v1816_v44 = vpop.permute.xlu0 %1815 }
0x1344   :  { %5270 = vmatmul.mubr.msk.f32.vlgmr.msra.gmra.mxu1 %vm234_vm2, %v1816_v44 }
0x1345   :  { %5280 = vmatprep.mubr.msk.f32.mxu1 %vm5892_vm0, %v5891_v0  ;;  %5273 = vmatpush3.msra.mxu1 %v6437_v37 }
0x1346   :  { %5274 = vmatprep.subr.mxu1 %v5891_v0 }
0x13fc   :  { %v1778_v48 = vpop.f32.mrf.mxu0 }
0x13fd   :  { %v1783_v50 = vrot.slane %v1778_v48, 2 }
0x13fe   :  { %v5260_v52 = vpop.f32.mrf.mxu0 }
0x13ff   :  { %v1785_v54 = vadd.f32 %v1783_v50, %v6106_v43 }
0x1401   :  { %5598 = vtanh.f32 %v1785_v54  ;;  %v4888_v55 = vmul.f32 -1.442695, %v1785_v54 }
0x1404   :  { %v1885_v6 = vpop.f32.mrf.mxu1 }
0x1405   :  { %v1889_v8 = vadd.f32 %v1885_v6, %v6104_v40 }
0x1406   :  { %v5271_v10 = vpop.f32.mrf.mxu1 }
0x1407   :  { %5600 = vtanh.f32 %v1889_v8  ;;  %v4890_v58 = vmul.f32 -1.442695, %v1889_v8 }
0x1408   :  { %5602 = vpow2.f32 %v4888_v55 }
0x1409   :  { %5604 = vpow2.f32 %v4890_v58 }
0x140e   :  { %v5599_v17 = vpop.eup %5598 }
0x140f   :  { %1798 = vrot.lane.b32.xlu1 %v5599_v17, %s5893_s2 }
0x1414   :  { %v5601_v13 = vpop.eup %5600 }
0x1415   :  { %1902 = vrot.lane.b32.xlu0 %v5601_v13, %s5893_s2  ;;  %v5603_v56 = vpop.eup %5602 }
0x1416   :  { %v1789_v20 = vadd.f32 1.0, %v5603_v56  ;;  %v5605_v61 = vpop.eup %5604 }
0x1417   :  { %v1893_v43 = vadd.f32 1.0, %v5605_v61 }
0x1418   :  { %5606 = vrcp.f32 %v1789_v20 }
0x1419   :  { %5608 = vrcp.f32 %v1893_v43 }
0x1425   :  { %v6414_v23 = vpop.eup %5606 }
0x1426   :  { %v6418_v60 = vpop.eup %5608  ;;  %v1796_v5 = vmul.f32 %v6414_v23, %v1794_v3 }
0x1427   :  { %v1900_v12 = vmul.f32 %v6418_v60, %v1898_v11 }
0x1481   :  { %v1799_v40 = vpop.permute.xlu1 %1798 }
0x1482   :  { %v1801_v25 = vmul.f32 %v6414_v23, %v1799_v40 }
0x1484   :  { %1803 = vrot.lane.b32.xlu1 %v1801_v25, %s5894_s15 }
0x1487   :  { %v1903_v63 = vpop.permute.xlu0 %1902 }
0x1488   :  { %v1905_v2 = vmul.f32 %v6418_v60, %v1903_v63 }
0x148a   :  { %1907 = vrot.lane.b32.xlu0 %v1905_v2, %s5894_s15 }
0x14f6   :  { %v1804_v7 = vpop.permute.xlu1 %1803 }
0x14f7   :  { %v1806_v9 = vadd.f32 %v1804_v7, %v1796_v5 }
0x14f9   :  { %5610 = vtanh.f32 %v1806_v9 }
0x14fc   :  { %v1908_v14 = vpop.permute.xlu0 %1907 }
0x14fd   :  { %v1910_v16 = vadd.f32 %v1908_v14, %v1900_v12 }
0x14ff   :  { %5612 = vtanh.f32 %v1910_v16 }
0x1506   :  { %v5611_v19 = vpop.eup %5610 }
0x1507   :  { %1809 = vrot.lane.b32.xlu1 %v5611_v19, %s5893_s2 }
0x150b   :  { %1923 = vrot.lane.b32.xlu1 %v6169_v1, %s5894_s15  ;;  %v1991_v1 = vld [vmem:[#allocation7 + $0x58] sm:$0xff] }
0x150c   :  { %v5613_v21 = vpop.eup %5612  ;;  %2034 = vmatprep.subr.mxu0 %v1991_v1 }
0x150d   :  { %1913 = vrot.lane.b32.xlu0 %v5613_v21, %s5893_s2 }
0x150f   :  { %1930 = vrot.lane.b32.xlu1 %v6215_v59, %s5894_s15  ;;  %v1990_v59 = vld [vmem:[#allocation7 + $0x50] sm:$0xff] }
0x1510   :  { %2035 = vmatpush1.msra.mxu0 %v1990_v59 }
0x1511   :  { %1926 = vrot.lane.b32.xlu0 %v1705_v42, %s5893_s2  ;;  %v6463_v42 = vld [vmem:[#allocation10 + $0x18] sm:$0xff] }
0x1513   :  { %1937 = vrot.lane.b32.xlu1 %v6261_v53, %s5894_s15  ;;  %v1989_v53 = vld [vmem:[#allocation7 + $0x48] sm:$0xff] }
0x1514   :  { %2036 = vmatprep.subr.mxu0 %v1989_v53 }
0x1515   :  { %1933 = vrot.lane.b32.xlu0 %v6357_v45, %s5893_s2  ;;  %v6442_v45 = vld [vmem:[#allocation8 + $0x10] sm:$0xff]  ;;  %2037 = vmatpush1.msra.mxu0 %v1988_v33 }
0x1516   :  { %5275 = vmatpush3.msra.mxu1 %v6442_v45 }
0x1517   :  { %1945 = vrot.lane.b32.xlu1 %v6265_v57, %s5893_s2  ;;  %v1987_v57 = vld [vmem:[#allocation7 + $0x38] sm:$0xff]  ;;  %5276 = vmatprep.subr.mxu1 %v5891_v0 }
0x1518   :  { %2038 = vmatprep.subr.mxu0 %v1987_v57  ;;  %5277 = vmatpush3.msra.mxu1 %v6450_v35 }
0x1519   :  { %1940 = vrot.lane.b32.xlu0 %v6308_v49, %s5893_s2  ;;  %v1985_v49 = vld [vmem:[#allocation7 + $0x28] sm:$0xff]  ;;  %2039 = vmatpush1.msra.mxu0 %v1986_v47 }
0x151a   :  { %2040 = vmatprep.subr.mxu0 %v1985_v49  ;;  %5278 = vmatprep.subr.mxu1 %v5891_v0 }
0x151b   :  { %1952 = vrot.lane.b32.xlu1 %v6219_v62, %s5893_s2  ;;  %2041 = vmatpush1.msra.mxu0 %v1984_v38  ;;  %v1983_v62 = vld [vmem:[#allocation7 + $0x18] sm:$0xff] }
0x151c   :  { %2042 = vmatprep.subr.mxu0 %v1983_v62  ;;  %5279 = vmatpush3.msra.mxu1 %v6459_v31 }
0x151d   :  { %1949 = vrot.lane.b32.xlu0 %v6353_v39, %s5894_s15  ;;  %v1982_v39 = vld [vmem:[#allocation7 + $0x10] sm:$0xff]  ;;  %5283 = vmatprep.subr.mxu1 %v5891_v0 }
0x151e   :  { %2043 = vmatpush1.msra.mxu0 %v1982_v39  ;;  %5281 = vmatmul.mubr.f32.vlgmr.msra.gmra.mxu1 %v5891_v0 }
0x151f   :  { %1959 = vrot.lane.b32.xlu1 %v6173_v4, %s5893_s2  ;;  %2044 = vmatprep.subr.mxu0 %v1981_v41  ;;  %v1980_v4 = vld [vmem:[#allocation7] sm:$0xff] }
0x1520   :  { %2045 = vmatpush1.msra.mxu0 %v1980_v4  ;;  %5284 = vmatpush3.msra.mxu1 %v6463_v42 }
0x1521   :  { %5291 = vmatprep.mubr.msk.f32.mxu1 %vm5892_vm0, %v5891_v0  ;;  %5285 = vmatprep.subr.mxu1 %v5891_v0 }
0x1522   :  { %5294 = vmatprep.subr.mxu0 %v5891_v0 }
0x1523   :  { %1967 = vrot.lane.b32.xlu1 %v6124_v15, %s5893_s2  ;;  %v6467_v15 = vld [vmem:[#allocation10 + $0x10] sm:$0xff] }
0x1524   :  { %5286 = vmatpush3.msra.mxu1 %v6467_v15 }
0x1525   :  { %5287 = vmatprep.subr.mxu1 %v5891_v0 }
0x1526   :  { %5288 = vmatpush3.msra.mxu1 %v6472_v34 }
0x1527   :  { %5289 = vmatprep.subr.mxu1 %v5891_v0 }
0x1528   :  { %5290 = vmatpush3.msra.mxu1 %v6478_v46 }
0x1529   :  { %5292 = vmatmul.mubr.f32.vlgmr.msra.gmra.mxu1 %v5891_v0  ;;  %5305 = vmatprep.subr.mxu1 %v5891_v0 }
0x152a   :  { %5306 = vmatpush3.msra.mxu1 %v6463_v42  ;;  %5313 = vmatprep.mubr.msk.f32.mxu1 %vm5892_vm0, %v5891_v0 }
0x152b   :  { %5307 = vmatprep.subr.mxu1 %v5891_v0 }
0x152c   :  { %5308 = vmatpush3.msra.mxu1 %v6467_v15 }
0x152d   :  { %5309 = vmatprep.subr.mxu1 %v5891_v0 }
0x152e   :  { %5310 = vmatpush3.msra.mxu1 %v6472_v34 }
0x152f   :  { %5311 = vmatprep.subr.mxu1 %v5891_v0 }
0x1530   :  { %5312 = vmatpush3.msra.mxu1 %v6478_v46 }
0x1531   :  { %5327 = vmatprep.subr.mxu1 %v5891_v0 }
0x1579   :  { %v1810_v50 = vpop.permute.xlu1 %1809 }
0x157a   :  { %v1812_v52 = vmul.f32 %v6414_v23, %v1810_v50 }
0x157d   :  { %v1924_v54 = vpop.permute.xlu1 %1923 }
0x157f   :  { %v1914_v44 = vpop.permute.xlu0 %1913 }
0x1580   :  { %v1916_v48 = vmul.f32 %v6418_v60, %v1914_v44 }
0x1581   :  { %v1931_v6 = vpop.permute.xlu1 %1930 }
0x1582   :  { %1919 = vrot.lane.b32.xlu0 %v1916_v48, %s5893_s2 }
0x1583   :  { %v1927_v8 = vpop.permute.xlu0 %1926 }
0x1584   :  { %v1929_v20 = vsel %vm234_vm2, %v1924_v54, %v1927_v8 }
0x1585   :  { %v1938_v10 = vpop.permute.xlu1 %1937 }
0x1586   :  { %1956 = vrot.lane.b32.xlu0 %v6400_v36, %s5894_s15 }
0x1587   :  { %v1934_v17 = vpop.permute.xlu0 %1933 }
0x1588   :  { %v1936_v43 = vsel %vm234_vm2, %v1931_v6, %v1934_v17 }
0x1589   :  { %v1946_v13 = vpop.permute.xlu1 %1945 }
0x158a   :  { %1964 = vrot.lane.b32.xlu0 %v1812_v52, %s5894_s15 }
0x158b   :  { %v1941_v55 = vpop.permute.xlu0 %1940 }
0x158c   :  { %v1943_v25 = vsel %vm234_vm2, %v1938_v10, %v1941_v55 }
0x158d   :  { %v1953_v58 = vpop.permute.xlu1 %1952 }
0x158f   :  { %v1950_v56 = vpop.permute.xlu0 %1949 }
0x1590   :  { %v1955_v3 = vsel %vm234_vm2, %v1950_v56, %v1953_v58 }
0x1591   :  { %v1960_v23 = vpop.permute.xlu1 %1959 }
0x1595   :  { %v1968_v9 = vpop.permute.xlu1 %1967 }
0x15f4   :  { %v1920_v36 = vpop.permute.xlu0 %1919 }
0x15f5   :  { %v1922_v61 = vsel %vm234_vm2, %v6128_v18, %v1920_v36  ;;  %v1948_v18 = vsel %vm234_vm2, %v6312_v51, %v1946_v13  ;;  %v2165_v51 = vpop.f32.mrf.mxu1 }
0x15f6   :  { %v1972_v40 = vsel %vm1971_vm4, %v1922_v61, %v1929_v20  ;;  %v1977_v7 = vsel %vm1971_vm4, %v1948_v18, %v1955_v3 }
0x15f7   :  { %v1974_v60 = vsel %vm1973_vm3, %v1972_v40, %v1936_v43  ;;  %v5282_v19 = vpop.f32.mrf.mxu1 }
0x15f8   :  { %v1957_v63 = vpop.permute.xlu0 %1956  ;;  %v1976_v2 = vsel %vm1975_vm5, %v1974_v60, %v1943_v25 }
0x15f9   :  { %4891 = vmatmul.mubr.msk.f32.vlgmr.msra.gmra.mxu0 %vm142_vm1, %v1976_v2  ;;  %v1962_v5 = vsel %vm234_vm2, %v1957_v63, %v1960_v23  ;;  %v2260_v21 = vpop.f32.mrf.mxu1 }
0x15fa   :  { %2084 = vmatprep.mubr.f32.mxu0 %v5891_v0  ;;  %5295 = vmatpush3.msra.mxu0 %v6437_v37  ;;  %v1978_v12 = vsel %vm1973_vm3, %v1977_v7, %v1962_v5  ;;  %v2265_v38 = vrot.slane %v2260_v21, 2 }
0x15fb   :  { %5296 = vmatprep.subr.mxu0 %v5891_v0  ;;  %v5293_v22 = vpop.f32.mrf.mxu1 }
0x15fc   :  { %v1965_v11 = vpop.permute.xlu0 %1964  ;;  %5297 = vmatpush3.msra.mxu0 %v6442_v45 }
0x15fd   :  { %v1970_v14 = vsel %vm234_vm2, %v1965_v11, %v1968_v9  ;;  %5298 = vmatprep.subr.mxu0 %v5891_v0 }
0x15fe   :  { %v1979_v16 = vsel %vm1975_vm5, %v1978_v12, %v1970_v14  ;;  %5299 = vmatpush3.msra.mxu0 %v6450_v35 }
0x15ff   :  { %4892 = vmatmul.mubr.msk.f32.gmra.mxu0 %vm142_vm1, %v1979_v16  ;;  %5300 = vmatprep.subr.mxu0 %v5891_v0 }
0x1600   :  { %5301 = vmatpush3.msra.mxu0 %v6459_v31  ;;  %5302 = vmatprep.mubr.msk.f32.mxu0 %vm5892_vm0, %v5891_v0 }
0x1601   :  { %5316 = vmatprep.subr.mxu0 %v5891_v0 }
0x16b9   :  { %v2080_v1 = vpop.f32.mrf.mxu0 }
0x16ba   :  { %v6534_v59 = vadd.f32 %v2080_v1, %v2001_v26 }
0x16bb   :  { %v2082_v53 = vpop.f32.mrf.mxu0 }
0x16bc   :  { %v2169_v33 = vadd.f32 %v2165_v51, %v6534_v59  ;;  %v6537_v57 = vadd.f32 %v2082_v53, %v2005_v30 }
0x16be   :  { %5614 = vtanh.f32 %v2169_v33  ;;  %v4893_v48 = vmul.f32 -1.442695, %v2169_v33 }
0x16bf   :  { %v2086_v47 = vpop.f32.mrf.mxu0 }
0x16c0   :  { %v6539_v49 = vadd.f32 %v2086_v47, %v2001_v26 }
0x16c1   :  { %v2088_v62 = vpop.f32.mrf.mxu0 }
0x16c2   :  { %v6541_v39 = vadd.f32 %v2088_v62, %v2005_v30 }
0x16c4   :  { %v2267_v41 = vadd.f32 %v2265_v38, %v6541_v39 }
0x16c6   :  { %5616 = vtanh.f32 %v2267_v41  ;;  %v4894_v50 = vmul.f32 -1.442695, %v2267_v41 }
0x16c7   :  { %5618 = vpow2.f32 %v4893_v48 }
0x16c8   :  { %5620 = vpow2.f32 %v4894_v50 }
0x16cb   :  { %v5615_v4 = vpop.eup %5614 }
0x16cc   :  { %2179 = vrot.lane.b32.xlu1 %v5615_v4, %s5893_s2 }
0x16d3   :  { %v5617_v44 = vpop.eup %5616 }
0x16d4   :  { %2277 = vrot.lane.b32.xlu0 %v5617_v44, %s5893_s2  ;;  %v5619_v52 = vpop.eup %5618 }
0x16d5   :  { %v2173_v54 = vadd.f32 1.0, %v5619_v52  ;;  %v5621_v6 = vpop.eup %5620 }
0x16d6   :  { %v2271_v8 = vadd.f32 1.0, %v5621_v6 }
0x16d7   :  { %5622 = vrcp.f32 %v2173_v54 }
0x16d8   :  { %5624 = vrcp.f32 %v2271_v8 }
0x16e4   :  { %v5623_v10 = vpop.eup %5622 }
0x16e5   :  { %v5625_v55 = vpop.eup %5624  ;;  %v2177_v36 = vmul.f32 0.0, %v5623_v10 }
0x16e6   :  { %v2275_v43 = vmul.f32 0.0, %v5625_v55 }
0x173e   :  { %v2180_v17 = vpop.permute.xlu1 %2179 }
0x173f   :  { %v2182_v13 = vmul.f32 %v5623_v10, %v2180_v17 }
0x1741   :  { %2184 = vrot.lane.b32.xlu1 %v2182_v13, %s5894_s15 }
0x1746   :  { %v2278_v58 = vpop.permute.xlu0 %2277 }
0x1747   :  { %v2280_v56 = vmul.f32 %v5625_v55, %v2278_v58 }
0x1749   :  { %2282 = vrot.lane.b32.xlu0 %v2280_v56, %s5894_s15 }
0x17b3   :  { %v2185_v20 = vpop.permute.xlu1 %2184 }
0x17b4   :  { %v6548_v61 = vadd.f32 %v2185_v20, %v2177_v36 }
0x17b6   :  { %5626 = vtanh.f32 %v6548_v61  ;;  %v2379_v52 = vrot.slane %v6548_v61, 6 }
0x17bb   :  { %v2283_v23 = vpop.permute.xlu0 %2282 }
0x17bc   :  { %v6551_v40 = vadd.f32 %v2283_v23, %v2275_v43 }
0x17be   :  { %5628 = vtanh.f32 %v6551_v40 }
0x17c3   :  { %v5627_v25 = vpop.eup %5626 }
0x17c4   :  { %2190 = vrot.lane.b32.xlu1 %v5627_v25, %s5893_s2 }
0x17cb   :  { %v5629_v60 = vpop.eup %5628 }
0x17cc   :  { %2288 = vrot.lane.b32.xlu0 %v5629_v60, %s5893_s2 }
0x1836   :  { %v2191_v63 = vpop.permute.xlu1 %2190 }
0x1837   :  { %v2193_v2 = vmul.f32 %v5623_v10, %v2191_v63  ;;  %v2486_v10 = vrot.slane %v6551_v40, 2 }
0x1839   :  { %2293 = vrot.lane.b32.xlu1 %v2193_v2, %s5894_s15 }
0x183e   :  { %v2289_v3 = vpop.permute.xlu0 %2288 }
0x183f   :  { %v6557_v5 = vmul.f32 %v5625_v55, %v2289_v3 }
0x1841   :  { %v2399_v18 = vrot.slane %v6557_v5, 6 }
0x1843   :  { %2400 = vrot.lane.b32.xlu0 %v2399_v18, %s5894_s15 }
0x18ab   :  { %v6561_v7 = vpop.permute.xlu1 %2293 }
0x18ac   :  { %5303 = vmatmul.mubr.msk.f32.vlgmr.msra.gmra.mxu0 %vm234_vm2, %v6561_v7 }
0x18ad   :  { %5317 = vmatpush3.msra.mxu0 %v6437_v37  ;;  %5324 = vmatprep.mubr.msk.f32.mxu0 %vm5892_vm0, %v5891_v0 }
0x18ae   :  { %5318 = vmatprep.subr.mxu0 %v5891_v0 }
0x18af   :  { %5319 = vmatpush3.msra.mxu0 %v6442_v45 }
0x18b0   :  { %5320 = vmatprep.subr.mxu0 %v5891_v0 }
0x18b1   :  { %5321 = vmatpush3.msra.mxu0 %v6450_v35 }
0x18b2   :  { %5322 = vmatprep.subr.mxu0 %v5891_v0 }
0x18b3   :  { %5323 = vmatpush3.msra.mxu0 %v6459_v31 }
0x18b4   :  { %5338 = vmatprep.subr.mxu0 %v5891_v0 }
0x18b5   :  { %v2401_v9 = vpop.permute.xlu0 %2400 }
0x18b6   :  { %5314 = vmatmul.mubr.msk.f32.vlgmr.msra.gmra.mxu1 %vm234_vm2, %v2401_v9 }
0x18b7   :  { %5328 = vmatpush3.msra.mxu1 %v6463_v42  ;;  %5335 = vmatprep.mubr.msk.f32.mxu1 %vm5892_vm0, %v5891_v0 }
0x18b8   :  { %5329 = vmatprep.subr.mxu1 %v5891_v0 }
0x18b9   :  { %5330 = vmatpush3.msra.mxu1 %v6467_v15 }
0x18ba   :  { %5331 = vmatprep.subr.mxu1 %v5891_v0 }
0x18bb   :  { %5332 = vmatpush3.msra.mxu1 %v6472_v34 }
0x18bc   :  { %5333 = vmatprep.subr.mxu1 %v5891_v0 }
0x18bd   :  { %5334 = vmatpush3.msra.mxu1 %v6478_v46 }
0x18be   :  { %5349 = vmatprep.subr.mxu1 %v5891_v0 }
0x196c   :  { %v2363_v11 = vpop.f32.mrf.mxu0 }
0x196d   :  { %v2368_v12 = vrot.slane %v2363_v11, 6 }
0x196e   :  { %v5304_v14 = vpop.f32.mrf.mxu0 }
0x196f   :  { %v2370_v16 = vadd.f32 %v2368_v12, %v6534_v59 }
0x1971   :  { %5630 = vtanh.f32 %v2370_v16  ;;  %v4896_v30 = vmul.f32 -1.442695, %v2370_v16 }
0x1976   :  { %v2470_v51 = vpop.f32.mrf.mxu1 }
0x1977   :  { %v2475_v19 = vrot.slane %v2470_v51, 4 }
0x1978   :  { %v5315_v21 = vpop.f32.mrf.mxu1 }
0x1979   :  { %v2477_v22 = vadd.f32 %v2475_v19, %v6541_v39 }
0x197b   :  { %5632 = vtanh.f32 %v2477_v22  ;;  %v4898_v1 = vmul.f32 -1.442695, %v2477_v22 }
0x197c   :  { %5634 = vpow2.f32 %v4896_v30 }
0x197d   :  { %5636 = vpow2.f32 %v4898_v1 }
0x197e   :  { %v5631_v24 = vpop.eup %5630 }
0x197f   :  { %2383 = vrot.lane.b32.xlu1 %v5631_v24, %s5893_s2 }
0x1988   :  { %v5633_v26 = vpop.eup %5632 }
0x1989   :  { %2490 = vrot.lane.b32.xlu0 %v5633_v26, %s5893_s2  ;;  %v5635_v53 = vpop.eup %5634 }
0x198a   :  { %v2374_v33 = vadd.f32 1.0, %v5635_v53  ;;  %v5637_v47 = vpop.eup %5636 }
0x198b   :  { %v2481_v38 = vadd.f32 1.0, %v5637_v47 }
0x198c   :  { %5638 = vrcp.f32 %v2374_v33 }
0x198d   :  { %5640 = vrcp.f32 %v2481_v38 }
0x1999   :  { %v5639_v62 = vpop.eup %5638 }
0x199a   :  { %v5641_v44 = vpop.eup %5640  ;;  %v2381_v54 = vmul.f32 %v5639_v62, %v2379_v52 }
0x199b   :  { %v2488_v17 = vmul.f32 %v5641_v44, %v2486_v10 }
0x19f1   :  { %v2384_v41 = vpop.permute.xlu1 %2383 }
0x19f2   :  { %v2386_v4 = vmul.f32 %v5639_v62, %v2384_v41 }
0x19f4   :  { %2388 = vrot.lane.b32.xlu1 %v2386_v4, %s5894_s15 }
0x19fb   :  { %v2491_v48 = vpop.permute.xlu0 %2490 }
0x19fc   :  { %v2493_v50 = vmul.f32 %v5641_v44, %v2491_v48 }
0x19fe   :  { %2495 = vrot.lane.b32.xlu0 %v2493_v50, %s5894_s15 }
0x1a66   :  { %v2389_v6 = vpop.permute.xlu1 %2388 }
0x1a67   :  { %v6593_v8 = vadd.f32 %v2389_v6, %v2381_v54 }
0x1a69   :  { %5642 = vtanh.f32 %v6593_v8  ;;  %v2593_v41 = vrot.slane %v6593_v8, 6 }
0x1a70   :  { %v2496_v13 = vpop.permute.xlu0 %2495 }
0x1a71   :  { %v6597_v55 = vadd.f32 %v2496_v13, %v2488_v17 }
0x1a73   :  { %5644 = vtanh.f32 %v6597_v55  ;;  %v2700_v50 = vrot.slane %v6597_v55, 2 }
0x1a76   :  { %v5643_v58 = vpop.eup %5642 }
0x1a77   :  { %2394 = vrot.lane.b32.xlu1 %v5643_v58, %s5893_s2 }
0x1a80   :  { %v5645_v56 = vpop.eup %5644 }
0x1a81   :  { %2501 = vrot.lane.b32.xlu0 %v5645_v56, %s5893_s2 }
0x1ae9   :  { %v2395_v36 = vpop.permute.xlu1 %2394 }
0x1aea   :  { %v6602_v20 = vmul.f32 %v5639_v62, %v2395_v36 }
0x1aec   :  { %v2506_v61 = vrot.slane %v6602_v20, 2 }
0x1aee   :  { %2507 = vrot.lane.b32.xlu1 %v2506_v61, %s5894_s15 }
0x1af3   :  { %v2502_v43 = vpop.permute.xlu0 %2501 }
0x1af4   :  { %v6606_v23 = vmul.f32 %v5641_v44, %v2502_v43 }
0x1af6   :  { %v2613_v40 = vrot.slane %v6606_v23, 4 }
0x1af8   :  { %2614 = vrot.lane.b32.xlu0 %v2613_v40, %s5894_s15 }
0x1b60   :  { %v2508_v25 = vpop.permute.xlu1 %2507 }
0x1b61   :  { %5325 = vmatmul.mubr.msk.f32.vlgmr.msra.gmra.mxu0 %vm234_vm2, %v2508_v25 }
0x1b62   :  { %5339 = vmatpush3.msra.mxu0 %v6437_v37  ;;  %5346 = vmatprep.mubr.msk.f32.mxu0 %vm5892_vm0, %v5891_v0 }
0x1b63   :  { %5340 = vmatprep.subr.mxu0 %v5891_v0 }
0x1b64   :  { %5341 = vmatpush3.msra.mxu0 %v6442_v45 }
0x1b65   :  { %5342 = vmatprep.subr.mxu0 %v5891_v0 }
0x1b66   :  { %5343 = vmatpush3.msra.mxu0 %v6450_v35 }
0x1b67   :  { %5344 = vmatprep.subr.mxu0 %v5891_v0 }
0x1b68   :  { %5345 = vmatpush3.msra.mxu0 %v6459_v31 }
0x1b69   :  { %5360 = vmatprep.subr.mxu0 %v5891_v0 }
0x1b6a   :  { %v2615_v60 = vpop.permute.xlu0 %2614 }
0x1b6b   :  { %5336 = vmatmul.mubr.msk.f32.vlgmr.msra.gmra.mxu1 %vm234_vm2, %v2615_v60 }
0x1b6c   :  { %5350 = vmatpush3.msra.mxu1 %v6463_v42  ;;  %5357 = vmatprep.mubr.msk.f32.mxu1 %vm5892_vm0, %v5891_v0 }
0x1b6d   :  { %5351 = vmatprep.subr.mxu1 %v5891_v0 }
0x1b6e   :  { %5352 = vmatpush3.msra.mxu1 %v6467_v15 }
0x1b6f   :  { %5353 = vmatprep.subr.mxu1 %v5891_v0 }
0x1b70   :  { %5354 = vmatpush3.msra.mxu1 %v6472_v34 }
0x1b71   :  { %5355 = vmatprep.subr.mxu1 %v5891_v0 }
0x1b72   :  { %5356 = vmatpush3.msra.mxu1 %v6478_v46 }
0x1b73   :  { %5371 = vmatprep.subr.mxu1 %v5891_v0 }
0x1c21   :  { %v2577_v63 = vpop.f32.mrf.mxu0 }
0x1c22   :  { %v2582_v2 = vrot.slane %v2577_v63, 4 }
0x1c23   :  { %v5326_v3 = vpop.f32.mrf.mxu0 }
0x1c24   :  { %v2584_v18 = vadd.f32 %v2582_v2, %v6534_v59 }
0x1c26   :  { %5646 = vtanh.f32 %v2584_v18  ;;  %v4900_v19 = vmul.f32 -1.442695, %v2584_v18 }
0x1c2b   :  { %v2684_v9 = vpop.f32.mrf.mxu1 }
0x1c2c   :  { %v2689_v11 = vrot.slane %v2684_v9, 6 }
0x1c2d   :  { %v5337_v12 = vpop.f32.mrf.mxu1 }
0x1c2e   :  { %v2691_v14 = vadd.f32 %v2689_v11, %v6541_v39 }
0x1c30   :  { %5648 = vtanh.f32 %v2691_v14  ;;  %v4902_v21 = vmul.f32 -1.442695, %v2691_v14 }
0x1c31   :  { %5650 = vpow2.f32 %v4900_v19 }
0x1c32   :  { %5652 = vpow2.f32 %v4902_v21 }
0x1c33   :  { %v5647_v16 = vpop.eup %5646 }
0x1c34   :  { %2597 = vrot.lane.b32.xlu1 %v5647_v16, %s5893_s2 }
0x1c3d   :  { %v5649_v51 = vpop.eup %5648 }
0x1c3e   :  { %2704 = vrot.lane.b32.xlu0 %v5649_v51, %s5893_s2  ;;  %v5651_v22 = vpop.eup %5650 }
0x1c3f   :  { %v2588_v24 = vadd.f32 1.0, %v5651_v22  ;;  %v5653_v26 = vpop.eup %5652 }
0x1c40   :  { %v2695_v30 = vadd.f32 1.0, %v5653_v26 }
0x1c41   :  { %5654 = vrcp.f32 %v2588_v24 }
0x1c42   :  { %5656 = vrcp.f32 %v2695_v30 }
0x1c4e   :  { %v5655_v1 = vpop.eup %5654 }
0x1c4f   :  { %v5657_v47 = vpop.eup %5656  ;;  %v2595_v4 = vmul.f32 %v5655_v1, %v2593_v41 }
0x1c50   :  { %v2702_v52 = vmul.f32 %v5657_v47, %v2700_v50 }
0x1ca6   :  { %v2598_v53 = vpop.permute.xlu1 %2597 }
0x1ca7   :  { %v2600_v33 = vmul.f32 %v5655_v1, %v2598_v53 }
0x1ca9   :  { %2602 = vrot.lane.b32.xlu1 %v2600_v33, %s5894_s15 }
0x1cb0   :  { %v2705_v38 = vpop.permute.xlu0 %2704 }
0x1cb1   :  { %v2707_v62 = vmul.f32 %v5657_v47, %v2705_v38 }
0x1cb3   :  { %2709 = vrot.lane.b32.xlu0 %v2707_v62, %s5894_s15 }
0x1d1b   :  { %v2603_v44 = vpop.permute.xlu1 %2602 }
0x1d1c   :  { %v6639_v48 = vadd.f32 %v2603_v44, %v2595_v4 }
0x1d1e   :  { %5658 = vtanh.f32 %v6639_v48 }
0x1d25   :  { %v2710_v54 = vpop.permute.xlu0 %2709 }
0x1d26   :  { %v6643_v6 = vadd.f32 %v2710_v54, %v2702_v52 }
0x1d28   :  { %5660 = vtanh.f32 %v6643_v6  ;;  %v2911_v38 = vrot.slane %v6643_v6, 2 }
0x1d2b   :  { %v5659_v10 = vpop.eup %5658 }
0x1d2c   :  { %2608 = vrot.lane.b32.xlu1 %v5659_v10, %s5893_s2 }
0x1d35   :  { %v5661_v17 = vpop.eup %5660 }
0x1d36   :  { %2715 = vrot.lane.b32.xlu0 %v5661_v17, %s5893_s2 }
0x1d9e   :  { %v2609_v8 = vpop.permute.xlu1 %2608 }
0x1d9f   :  { %v6648_v13 = vmul.f32 %v5655_v1, %v2609_v8  ;;  %v2807_v1 = vrot.slane %v6639_v48, 6 }
0x1da1   :  { %v2720_v58 = vrot.slane %v6648_v13, 4 }
0x1da3   :  { %2721 = vrot.lane.b32.xlu1 %v2720_v58, %s5894_s15 }
0x1da8   :  { %v2716_v55 = vpop.permute.xlu0 %2715 }
0x1da9   :  { %v6652_v56 = vmul.f32 %v5657_v47, %v2716_v55 }
0x1dab   :  { %v2827_v36 = vrot.slane %v6652_v56, 2 }
0x1dad   :  { %2828 = vrot.lane.b32.xlu0 %v2827_v36, %s5894_s15 }
0x1e15   :  { %v2722_v61 = vpop.permute.xlu1 %2721 }
0x1e16   :  { %5347 = vmatmul.mubr.msk.f32.vlgmr.msra.gmra.mxu0 %vm234_vm2, %v2722_v61 }
0x1e17   :  { %5361 = vmatpush3.msra.mxu0 %v6437_v37  ;;  %5368 = vmatprep.mubr.msk.f32.mxu0 %vm5892_vm0, %v5891_v0 }
0x1e18   :  { %5362 = vmatprep.subr.mxu0 %v5891_v0 }
0x1e19   :  { %5363 = vmatpush3.msra.mxu0 %v6442_v45 }
0x1e1a   :  { %5364 = vmatprep.subr.mxu0 %v5891_v0 }
0x1e1b   :  { %5365 = vmatpush3.msra.mxu0 %v6450_v35 }
0x1e1c   :  { %5366 = vmatprep.subr.mxu0 %v5891_v0 }
0x1e1d   :  { %5367 = vmatpush3.msra.mxu0 %v6459_v31 }
0x1e1e   :  { %5382 = vmatprep.subr.mxu0 %v5891_v0 }
0x1e1f   :  { %v2829_v43 = vpop.permute.xlu0 %2828 }
0x1e20   :  { %5358 = vmatmul.mubr.msk.f32.vlgmr.msra.gmra.mxu1 %vm234_vm2, %v2829_v43 }
0x1e21   :  { %5372 = vmatpush3.msra.mxu1 %v6463_v42  ;;  %5379 = vmatprep.mubr.msk.f32.mxu1 %vm5892_vm0, %v5891_v0 }
0x1e22   :  { %5373 = vmatprep.subr.mxu1 %v5891_v0 }
0x1e23   :  { %5374 = vmatpush3.msra.mxu1 %v6467_v15 }
0x1e24   :  { %5375 = vmatprep.subr.mxu1 %v5891_v0 }
0x1e25   :  { %5376 = vmatpush3.msra.mxu1 %v6472_v34 }
0x1e26   :  { %5377 = vmatprep.subr.mxu1 %v5891_v0 }
0x1e27   :  { %5378 = vmatpush3.msra.mxu1 %v6478_v46 }
0x1e28   :  { %5393 = vmatprep.subr.mxu1 %v5891_v0 }
0x1ed6   :  { %v2791_v40 = vpop.f32.mrf.mxu0 }
0x1ed7   :  { %v2796_v25 = vrot.slane %v2791_v40, 2 }
0x1ed8   :  { %v5348_v60 = vpop.f32.mrf.mxu0 }
0x1ed9   :  { %v2798_v63 = vadd.f32 %v2796_v25, %v6534_v59 }
0x1edb   :  { %5662 = vtanh.f32 %v2798_v63  ;;  %v4904_v12 = vmul.f32 -1.442695, %v2798_v63 }
0x1ee0   :  { %v2898_v2 = vpop.f32.mrf.mxu1 }
0x1ee1   :  { %v2902_v3 = vadd.f32 %v2898_v2, %v6541_v39 }
0x1ee2   :  { %v5359_v18 = vpop.f32.mrf.mxu1 }
0x1ee3   :  { %5664 = vtanh.f32 %v2902_v3  ;;  %v4906_v14 = vmul.f32 -1.442695, %v2902_v3 }
0x1ee4   :  { %5666 = vpow2.f32 %v4904_v12 }
0x1ee5   :  { %5668 = vpow2.f32 %v4906_v14 }
0x1ee8   :  { %v5663_v9 = vpop.eup %5662 }
0x1ee9   :  { %2811 = vrot.lane.b32.xlu1 %v5663_v9, %s5893_s2 }
0x1ef0   :  { %v5665_v11 = vpop.eup %5664 }
0x1ef1   :  { %2915 = vrot.lane.b32.xlu0 %v5665_v11, %s5893_s2  ;;  %v5667_v16 = vpop.eup %5666 }
0x1ef2   :  { %v2802_v51 = vadd.f32 1.0, %v5667_v16  ;;  %v5669_v59 = vpop.eup %5668 }
0x1ef3   :  { %v2906_v19 = vadd.f32 1.0, %v5669_v59 }
0x1ef4   :  { %5670 = vrcp.f32 %v2802_v51 }
0x1ef5   :  { %5672 = vrcp.f32 %v2906_v19 }
0x1f01   :  { %v5671_v21 = vpop.eup %5670 }
0x1f02   :  { %v5673_v24 = vpop.eup %5672  ;;  %v2809_v53 = vmul.f32 %v5671_v21, %v2807_v1 }
0x1f03   :  { %v2913_v62 = vmul.f32 %v5673_v24, %v2911_v38 }
0x1f5b   :  { %v2812_v39 = vpop.permute.xlu1 %2811 }
0x1f5c   :  { %v2814_v22 = vmul.f32 %v5671_v21, %v2812_v39 }
0x1f5e   :  { %2816 = vrot.lane.b32.xlu1 %v2814_v22, %s5894_s15 }
0x1f63   :  { %v2916_v26 = vpop.permute.xlu0 %2915 }
0x1f64   :  { %v2918_v30 = vmul.f32 %v5673_v24, %v2916_v26 }
0x1f66   :  { %2920 = vrot.lane.b32.xlu0 %v2918_v30, %s5894_s15 }
0x1fd0   :  { %v2817_v33 = vpop.permute.xlu1 %2816 }
0x1fd1   :  { %v6685_v47 = vadd.f32 %v2817_v33, %v2809_v53 }
0x1fd3   :  { %5674 = vtanh.f32 %v6685_v47  ;;  %v3015_v39 = vrot.slane %v6685_v47, 6 }
0x1fd8   :  { %v2921_v41 = vpop.permute.xlu0 %2920 }
0x1fd9   :  { %v6689_v4 = vadd.f32 %v2921_v41, %v2913_v62 }
0x1fdb   :  { %5676 = vtanh.f32 %v6689_v4  ;;  %v3121_v30 = vrot.slane %v6689_v4, 2 }
0x1fe0   :  { %v5675_v44 = vpop.eup %5674 }
0x1fe1   :  { %2822 = vrot.lane.b32.xlu1 %v5675_v44, %s5893_s2 }
0x1fe8   :  { %v5677_v50 = vpop.eup %5676 }
0x1fe9   :  { %2926 = vrot.lane.b32.xlu0 %v5677_v50, %s5893_s2 }
0x2053   :  { %v2823_v48 = vpop.permute.xlu1 %2822 }
0x2054   :  { %v6694_v52 = vmul.f32 %v5671_v21, %v2823_v48 }
0x2056   :  { %v2931_v54 = vrot.slane %v6694_v52, 6 }
0x2058   :  { %2932 = vrot.lane.b32.xlu1 %v2931_v54, %s5894_s15 }
0x205b   :  { %v2927_v6 = vpop.permute.xlu0 %2926 }
0x205c   :  { %v6698_v10 = vmul.f32 %v5673_v24, %v2927_v6 }
0x205e   :  { %3035 = vrot.lane.b32.xlu0 %v6698_v10, %s5894_s15 }
0x20ca   :  { %v2933_v17 = vpop.permute.xlu1 %2932 }
0x20cb   :  { %5369 = vmatmul.mubr.msk.f32.vlgmr.msra.gmra.mxu0 %vm234_vm2, %v2933_v17 }
0x20cc   :  { %5383 = vmatpush3.msra.mxu0 %v6437_v37  ;;  %5390 = vmatprep.mubr.msk.f32.mxu0 %vm5892_vm0, %v5891_v0 }
0x20cd   :  { %5384 = vmatprep.subr.mxu0 %v5891_v0 }
0x20ce   :  { %5385 = vmatpush3.msra.mxu0 %v6442_v45 }
0x20cf   :  { %5386 = vmatprep.subr.mxu0 %v5891_v0 }
0x20d0   :  { %v3036_v8 = vpop.permute.xlu0 %3035  ;;  %5387 = vmatpush3.msra.mxu0 %v6450_v35 }
0x20d1   :  { %5380 = vmatmul.mubr.msk.f32.vlgmr.msra.gmra.mxu1 %vm234_vm2, %v3036_v8  ;;  %5388 = vmatprep.subr.mxu0 %v5891_v0 }
0x20d2   :  { %5389 = vmatpush3.msra.mxu0 %v6459_v31  ;;  %5394 = vmatpush3.msra.mxu1 %v6463_v42 }
0x20d3   :  { %5395 = vmatprep.subr.mxu1 %v5891_v0  ;;  %5401 = vmatprep.mubr.msk.f32.mxu1 %vm5892_vm0, %v5891_v0 }
0x20d4   :  { %5396 = vmatpush3.msra.mxu1 %v6467_v15  ;;  %5404 = vmatprep.subr.mxu0 %v5891_v0 }
0x20d5   :  { %5397 = vmatprep.subr.mxu1 %v5891_v0 }
0x20d6   :  { %5398 = vmatpush3.msra.mxu1 %v6472_v34 }
0x20d7   :  { %5399 = vmatprep.subr.mxu1 %v5891_v0 }
0x20d8   :  { %5400 = vmatpush3.msra.mxu1 %v6478_v46 }
0x20d9   :  { %5415 = vmatprep.subr.mxu1 %v5891_v0 }
0x218b   :  { %v3002_v58 = vpop.f32.mrf.mxu0 }
0x218c   :  { %v3006_v55 = vadd.f32 %v3002_v58, %v6539_v49 }
0x218d   :  { %v5370_v36 = vpop.f32.mrf.mxu0 }
0x218e   :  { %5678 = vtanh.f32 %v3006_v55  ;;  %v4908_v2 = vmul.f32 -1.442695, %v3006_v55 }
0x2191   :  { %v3105_v61 = vpop.f32.mrf.mxu1 }
0x2192   :  { %v3110_v43 = vrot.slane %v3105_v61, 2 }
0x2193   :  { %v5381_v40 = vpop.f32.mrf.mxu1 }
0x2194   :  { %v3112_v25 = vadd.f32 %v3110_v43, %v6537_v57 }
0x2196   :  { %5680 = vtanh.f32 %v3112_v25  ;;  %v4910_v3 = vmul.f32 -1.442695, %v3112_v25 }
0x2197   :  { %5682 = vpow2.f32 %v4908_v2 }
0x2198   :  { %5684 = vpow2.f32 %v4910_v3 }
0x219b   :  { %v5679_v60 = vpop.eup %5678 }
0x219c   :  { %3019 = vrot.lane.b32.xlu1 %v5679_v60, %s5893_s2 }
0x21a3   :  { %v5681_v63 = vpop.eup %5680 }
0x21a4   :  { %3125 = vrot.lane.b32.xlu0 %v5681_v63, %s5893_s2  ;;  %v5683_v18 = vpop.eup %5682 }
0x21a5   :  { %v3010_v9 = vadd.f32 1.0, %v5683_v18  ;;  %v5685_v11 = vpop.eup %5684 }
0x21a6   :  { %v3116_v12 = vadd.f32 1.0, %v5685_v11 }
0x21a7   :  { %5686 = vrcp.f32 %v3010_v9 }
0x21a8   :  { %5688 = vrcp.f32 %v3116_v12 }
0x21b4   :  { %v5687_v14 = vpop.eup %5686 }
0x21b5   :  { %v5689_v59 = vpop.eup %5688  ;;  %v3017_v22 = vmul.f32 %v5687_v14, %v3015_v39 }
0x21b6   :  { %v3123_v1 = vmul.f32 %v5689_v59, %v3121_v30 }
0x220e   :  { %v3020_v16 = vpop.permute.xlu1 %3019 }
0x220f   :  { %v3022_v51 = vmul.f32 %v5687_v14, %v3020_v16 }
0x2211   :  { %3024 = vrot.lane.b32.xlu1 %v3022_v51, %s5894_s15 }
0x2216   :  { %v3126_v19 = vpop.permute.xlu0 %3125 }
0x2217   :  { %v3128_v21 = vmul.f32 %v5689_v59, %v3126_v19 }
0x2219   :  { %3130 = vrot.lane.b32.xlu0 %v3128_v21, %s5894_s15 }
0x2283   :  { %v3025_v24 = vpop.permute.xlu1 %3024 }
0x2284   :  { %v6731_v26 = vadd.f32 %v3025_v24, %v3017_v22 }
0x2286   :  { %5690 = vtanh.f32 %v6731_v26  ;;  %v3227_v18 = vrot.slane %v6731_v26, 6 }
0x228b   :  { %v3131_v53 = vpop.permute.xlu0 %3130 }
0x228c   :  { %v6735_v33 = vadd.f32 %v3131_v53, %v3123_v1 }
0x228e   :  { %5692 = vtanh.f32 %v6735_v33 }
0x2293   :  { %v5691_v38 = vpop.eup %5690 }
0x2294   :  { %3030 = vrot.lane.b32.xlu1 %v5691_v38, %s5893_s2  ;;  %v5747_v38 = vld [vmem:[#allocation8 + $0x10] sm:$0xff] }
0x229b   :  { %v5693_v62 = vpop.eup %5692 }
0x229c   :  { %3136 = vrot.lane.b32.xlu0 %v5693_v62, %s5893_s2  ;;  %v5748_v62 = vld [vmem:[#allocation8 + $0x8] sm:$0xff] }
0x2306   :  { %v3031_v47 = vpop.permute.xlu1 %3030 }
0x2307   :  { %v3033_v41 = vmul.f32 %v5687_v14, %v3031_v47  ;;  %v3334_v14 = vrot.slane %v6735_v33, 2  ;;  %v5746_v33 = vld [vmem:[#allocation8 + $0x18] sm:$0xff]  ;;  %v5749_v47 = vld [vmem:[#allocation8] sm:$0xff] }
0x2309   :  { %3141 = vrot.lane.b32.xlu1 %v3033_v41, %s5894_s15 }
0x230e   :  { %v3137_v44 = vpop.permute.xlu0 %3136 }
0x230f   :  { %v6741_v50 = vmul.f32 %v5689_v59, %v3137_v44  ;;  %v5750_v44 = vld [vmem:[#allocation10 + $0x18] sm:$0xff] }
0x2311   :  { %v3247_v4 = vrot.slane %v6741_v50, 6 }
0x2313   :  { %3248 = vrot.lane.b32.xlu0 %v3247_v4, %s5894_s15  ;;  %v5751_v4 = vld [vmem:[#allocation10 + $0x10] sm:$0xff] }
0x237b   :  { %v6745_v48 = vpop.permute.xlu1 %3141 }
0x237c   :  { %5391 = vmatmul.mubr.msk.f32.vlgmr.msra.gmra.mxu0 %vm234_vm2, %v6745_v48 }
0x237d   :  { %5405 = vmatpush3.msra.mxu0 %v6437_v37  ;;  %5412 = vmatprep.mubr.msk.f32.mxu0 %vm5892_vm0, %v5891_v0 }
0x237e   :  { %5406 = vmatprep.subr.mxu0 %v5891_v0 }
0x237f   :  { %5407 = vmatpush3.msra.mxu0 %v6442_v45 }
0x2380   :  { %5408 = vmatprep.subr.mxu0 %v5891_v0 }
0x2381   :  { %5409 = vmatpush3.msra.mxu0 %v6450_v35 }
0x2382   :  { %5410 = vmatprep.subr.mxu0 %v5891_v0 }
0x2383   :  { %5411 = vmatpush3.msra.mxu0 %v6459_v31 }
0x2384   :  { %5426 = vmatprep.subr.mxu0 %v5891_v0 }
0x2385   :  { %v3249_v54 = vpop.permute.xlu0 %3248 }
0x2386   :  { %5402 = vmatmul.mubr.msk.f32.vlgmr.msra.gmra.mxu1 %vm234_vm2, %v3249_v54  ;;  %v5752_v54 = vld [vmem:[#allocation10 + $0x8] sm:$0xff] }
0x2387   :  { %5416 = vmatpush3.msra.mxu1 %v6463_v42  ;;  %5423 = vmatprep.mubr.msk.f32.mxu1 %vm5892_vm0, %v5891_v0 }
0x2388   :  { %5417 = vmatprep.subr.mxu1 %v5891_v0 }
0x2389   :  { %5418 = vmatpush3.msra.mxu1 %v6467_v15 }
0x238a   :  { %5419 = vmatprep.subr.mxu1 %v5891_v0 }
0x238b   :  { %5420 = vmatpush3.msra.mxu1 %v6472_v34 }
0x238c   :  { %5421 = vmatprep.subr.mxu1 %v5891_v0 }
0x238d   :  { %5422 = vmatpush3.msra.mxu1 %v6478_v46 }
0x238e   :  { %5437 = vmatprep.subr.mxu1 %v5891_v0 }
0x243c   :  { %v3211_v37 = vpop.f32.mrf.mxu0 }
0x243d   :  { %v3216_v45 = vrot.slane %v3211_v37, 6  ;;  %v5753_v37 = vld [vmem:[#allocation10] sm:$0xff] }
0x243e   :  { %v5392_v35 = vpop.f32.mrf.mxu0 }
0x243f   :  { %v3218_v31 = vadd.f32 %v3216_v45, %v6539_v49 }
0x2441   :  { %5694 = vtanh.f32 %v3218_v31  ;;  %v4912_v46 = vmul.f32 -1.442695, %v3218_v31 }
0x2446   :  { %v3318_v42 = vpop.f32.mrf.mxu1 }
0x2447   :  { %v3323_v6 = vrot.slane %v3318_v42, 4 }
0x2448   :  { %v5403_v17 = vpop.f32.mrf.mxu1 }
0x2449   :  { %v3325_v15 = vadd.f32 %v3323_v6, %v6537_v57 }
0x244b   :  { %5696 = vtanh.f32 %v3325_v15  ;;  %v4914_v58 = vmul.f32 -1.442695, %v3325_v15 }
0x244c   :  { %5698 = vpow2.f32 %v4912_v46 }
0x244d   :  { %5700 = vpow2.f32 %v4914_v58 }
0x244e   :  { %v5695_v8 = vpop.eup %5694 }
0x244f   :  { %3231 = vrot.lane.b32.xlu1 %v5695_v8, %s5893_s2 }
0x2458   :  { %v5697_v34 = vpop.eup %5696 }
0x2459   :  { %3338 = vrot.lane.b32.xlu0 %v5697_v34, %s5893_s2  ;;  %v5699_v55 = vpop.eup %5698 }
0x245a   :  { %v3222_v36 = vadd.f32 1.0, %v5699_v55  ;;  %v5701_v61 = vpop.eup %5700 }
0x245b   :  { %v3329_v43 = vadd.f32 1.0, %v5701_v61 }
0x245c   :  { %5702 = vrcp.f32 %v3222_v36 }
0x245d   :  { %5704 = vrcp.f32 %v3329_v43 }
0x2469   :  { %v5703_v40 = vpop.eup %5702 }
0x246a   :  { %v5705_v63 = vpop.eup %5704  ;;  %v3229_v9 = vmul.f32 %v5703_v40, %v3227_v18 }
0x246b   :  { %v3336_v16 = vmul.f32 %v5705_v63, %v3334_v14 }
0x24c1   :  { %v3232_v25 = vpop.permute.xlu1 %3231 }
0x24c2   :  { %v3234_v60 = vmul.f32 %v5703_v40, %v3232_v25 }
0x24c4   :  { %3236 = vrot.lane.b32.xlu1 %v3234_v60, %s5894_s15 }
0x24cb   :  { %v3339_v2 = vpop.permute.xlu0 %3338 }
0x24cc   :  { %v3341_v3 = vmul.f32 %v5705_v63, %v3339_v2 }
0x24ce   :  { %3343 = vrot.lane.b32.xlu0 %v3341_v3, %s5894_s15 }
0x2536   :  { %v3237_v11 = vpop.permute.xlu1 %3236 }
0x2537   :  { %v6777_v12 = vadd.f32 %v3237_v11, %v3229_v9 }
0x2539   :  { %5706 = vtanh.f32 %v6777_v12  ;;  %v3441_v18 = vrot.slane %v6777_v12, 6 }
0x2540   :  { %v3344_v51 = vpop.permute.xlu0 %3343 }
0x2541   :  { %v6781_v59 = vadd.f32 %v3344_v51, %v3336_v16 }
0x2543   :  { %5708 = vtanh.f32 %v6781_v59  ;;  %v3548_v16 = vrot.slane %v6781_v59, 2 }
0x2546   :  { %v5707_v19 = vpop.eup %5706 }
0x2547   :  { %3242 = vrot.lane.b32.xlu1 %v5707_v19, %s5893_s2 }
0x2550   :  { %v5709_v21 = vpop.eup %5708 }
0x2551   :  { %3349 = vrot.lane.b32.xlu0 %v5709_v21, %s5893_s2 }
0x25b9   :  { %v3243_v39 = vpop.permute.xlu1 %3242 }
0x25ba   :  { %v6786_v22 = vmul.f32 %v5703_v40, %v3243_v39 }
0x25bc   :  { %v3354_v24 = vrot.slane %v6786_v22, 2 }
0x25be   :  { %3355 = vrot.lane.b32.xlu1 %v3354_v24, %s5894_s15 }
0x25c3   :  { %v3350_v26 = vpop.permute.xlu0 %3349 }
0x25c4   :  { %v6790_v30 = vmul.f32 %v5705_v63, %v3350_v26 }
0x25c6   :  { %v3461_v1 = vrot.slane %v6790_v30, 4 }
0x25c8   :  { %3462 = vrot.lane.b32.xlu0 %v3461_v1, %s5894_s15 }
0x2630   :  { %v3356_v53 = vpop.permute.xlu1 %3355 }
0x2631   :  { %5413 = vmatmul.mubr.msk.f32.vlgmr.msra.gmra.mxu0 %vm234_vm2, %v3356_v53 }
0x2632   :  { %5427 = vmatpush3.msra.mxu0 %v5746_v33  ;;  %5434 = vmatprep.mubr.msk.f32.mxu0 %vm5892_vm0, %v5891_v0 }
0x2633   :  { %5428 = vmatprep.subr.mxu0 %v5891_v0 }
0x2634   :  { %5429 = vmatpush3.msra.mxu0 %v5747_v38 }
0x2635   :  { %5430 = vmatprep.subr.mxu0 %v5891_v0 }
0x2636   :  { %5431 = vmatpush3.msra.mxu0 %v5748_v62 }
0x2637   :  { %5432 = vmatprep.subr.mxu0 %v5891_v0 }
0x2638   :  { %5433 = vmatpush3.msra.mxu0 %v5749_v47 }
0x263a   :  { %v3463_v41 = vpop.permute.xlu0 %3462 }
0x263b   :  { %5424 = vmatmul.mubr.msk.f32.vlgmr.msra.gmra.mxu1 %vm234_vm2, %v3463_v41 }
0x263c   :  { %5438 = vmatpush3.msra.mxu1 %v5750_v44  ;;  %5445 = vmatprep.mubr.msk.f32.mxu1 %vm5892_vm0, %v5891_v0 }
0x263d   :  { %5439 = vmatprep.subr.mxu1 %v5891_v0 }
0x263e   :  { %5440 = vmatpush3.msra.mxu1 %v5751_v4 }
0x263f   :  { %5441 = vmatprep.subr.mxu1 %v5891_v0 }
0x2640   :  { %5442 = vmatpush3.msra.mxu1 %v5752_v54 }
0x2641   :  { %5443 = vmatprep.subr.mxu1 %v5891_v0 }
0x2642   :  { %5444 = vmatpush3.msra.mxu1 %v5753_v37 }
0x26f1   :  { %v3425_v45 = vpop.f32.mrf.mxu0 }
0x26f2   :  { %v3430_v35 = vrot.slane %v3425_v45, 4 }
0x26f3   :  { %v5414_v31 = vpop.f32.mrf.mxu0 }
0x26f4   :  { %v3432_v42 = vadd.f32 %v3430_v35, %v6539_v49 }
0x26f6   :  { %5710 = vtanh.f32 %v3432_v42  ;;  %v4916_v0 = vmul.f32 -1.442695, %v3432_v42 }
0x26fb   :  { %v3532_v6 = vpop.f32.mrf.mxu1 }
0x26fc   :  { %v3537_v17 = vrot.slane %v3532_v6, 6 }
0x26fd   :  { %v5425_v15 = vpop.f32.mrf.mxu1 }
0x26fe   :  { %v3539_v8 = vadd.f32 %v3537_v17, %v6537_v57 }
0x2700   :  { %5712 = vtanh.f32 %v3539_v8  ;;  %v4918_v58 = vmul.f32 -1.442695, %v3539_v8 }
0x2701   :  { %5714 = vpow2.f32 %v4916_v0 }
0x2702   :  { %5716 = vpow2.f32 %v4918_v58 }
0x2703   :  { %v5711_v34 = vpop.eup %5710 }
0x2704   :  { %3445 = vrot.lane.b32.xlu1 %v5711_v34, %s5893_s2 }
0x270d   :  { %v5713_v46 = vpop.eup %5712 }
0x270e   :  { %3552 = vrot.lane.b32.xlu0 %v5713_v46, %s5893_s2  ;;  %v5715_v55 = vpop.eup %5714 }
0x270f   :  { %v3436_v36 = vadd.f32 1.0, %v5715_v55  ;;  %v5717_v61 = vpop.eup %5716 }
0x2710   :  { %v3543_v43 = vadd.f32 1.0, %v5717_v61 }
0x2711   :  { %5718 = vrcp.f32 %v3436_v36 }
0x2712   :  { %5720 = vrcp.f32 %v3543_v43 }
0x271e   :  { %v5719_v40 = vpop.eup %5718 }
0x271f   :  { %v5721_v63 = vpop.eup %5720  ;;  %v3443_v9 = vmul.f32 %v5719_v40, %v3441_v18 }
0x2720   :  { %v3550_v51 = vmul.f32 %v5721_v63, %v3548_v16  ;;  %v5896_v16 = vmov -10000.0  }
0x2776   :  { %v3446_v25 = vpop.permute.xlu1 %3445 }
0x2777   :  { %v3448_v60 = vmul.f32 %v5719_v40, %v3446_v25 }
0x2779   :  { %3450 = vrot.lane.b32.xlu1 %v3448_v60, %s5894_s15 }
0x2780   :  { %v3553_v2 = vpop.permute.xlu0 %3552 }
0x2781   :  { %v3555_v3 = vmul.f32 %v5721_v63, %v3553_v2 }
0x2783   :  { %3557 = vrot.lane.b32.xlu0 %v3555_v3, %s5894_s15 }
0x27eb   :  { %v3451_v11 = vpop.permute.xlu1 %3450 }
0x27ec   :  { %v3453_v14 = vadd.f32 %v3451_v11, %v3443_v9 }
0x27ee   :  { %5722 = vtanh.f32 %v3453_v14  ;;  %v3655_v36 = vrot.slane %v3453_v14, 6 }
0x27f5   :  { %v3558_v19 = vpop.permute.xlu0 %3557 }
0x27f6   :  { %v3560_v21 = vadd.f32 %v3558_v19, %v3550_v51 }
0x27f8   :  { %5724 = vtanh.f32 %v3560_v21  ;;  %v3759_v25 = vrot.slane %v3560_v21, 2 }
0x27fb   :  { %v5723_v39 = vpop.eup %5722 }
0x27fc   :  { %3456 = vrot.lane.b32.xlu1 %v5723_v39, %s5893_s2 }
0x2805   :  { %v5725_v24 = vpop.eup %5724 }
0x2806   :  { %3563 = vrot.lane.b32.xlu0 %v5725_v24, %s5893_s2 }
0x286e   :  { %v3457_v26 = vpop.permute.xlu1 %3456 }
0x286f   :  { %v6816_v1 = vmul.f32 %v5719_v40, %v3457_v26 }
0x2871   :  { %v3568_v12 = vrot.slane %v6816_v1, 4 }
0x2873   :  { %3569 = vrot.lane.b32.xlu1 %v3568_v12, %s5894_s15  ;;  %v6895_v12 = vld [vmem:[%s7197_s11] sm:$0xff] }
0x2878   :  { %v3564_v53 = vpop.permute.xlu0 %3563 }
0x2879   :  { %v3566_v33 = vmul.f32 %v5721_v63, %v3564_v53 }
0x287b   :  { %v3675_v59 = vrot.slane %v3566_v33, 2 }
0x287d   :  { %3676 = vrot.lane.b32.xlu0 %v3675_v59, %s5894_s15 }
0x28e5   :  { %v3570_v38 = vpop.permute.xlu1 %3569 }
0x28e6   :  { %5435 = vmatmul.mubr.msk.f32.vlgmr.msra.gmra.mxu0 %vm234_vm2, %v3570_v38 }
0x28ef   :  { %v3677_v62 = vpop.permute.xlu0 %3676 }
0x28f0   :  { %5446 = vmatmul.mubr.msk.f32.vlgmr.msra.gmra.mxu1 %vm234_vm2, %v3677_v62 }
0x29a6   :  { %v3639_v47 = vpop.f32.mrf.mxu0 }
0x29a7   :  { %v3644_v41 = vrot.slane %v3639_v47, 2 }
0x29a8   :  { %v5436_v44 = vpop.f32.mrf.mxu0 }
0x29a9   :  { %v3646_v4 = vadd.f32 %v3644_v41, %v6539_v49 }
0x29ab   :  { %5726 = vtanh.f32 %v3646_v4  ;;  %v4920_v42 = vmul.f32 -1.442695, %v3646_v4 }
0x29b0   :  { %v3746_v54 = vpop.f32.mrf.mxu1 }
0x29b1   :  { %v3750_v37 = vadd.f32 %v3746_v54, %v6537_v57 }
0x29b2   :  { %v5447_v45 = vpop.f32.mrf.mxu1 }
0x29b3   :  { %5728 = vtanh.f32 %v3750_v37  ;;  %v4922_v6 = vmul.f32 -1.442695, %v3750_v37 }
0x29b4   :  { %5730 = vpow2.f32 %v4920_v42 }
0x29b5   :  { %5732 = vpow2.f32 %v4922_v6 }
0x29b8   :  { %v5727_v35 = vpop.eup %5726 }
0x29b9   :  { %3659 = vrot.lane.b32.xlu1 %v5727_v35, %s5893_s2 }
0x29c0   :  { %v5729_v31 = vpop.eup %5728 }
0x29c1   :  { %3763 = vrot.lane.b32.xlu0 %v5729_v31, %s5893_s2  ;;  %v5731_v17 = vpop.eup %5730 }
0x29c2   :  { %v3650_v15 = vadd.f32 1.0, %v5731_v17  ;;  %v5733_v49 = vpop.eup %5732 }
0x29c3   :  { %v3754_v8 = vadd.f32 1.0, %v5733_v49 }
0x29c4   :  { %5734 = vrcp.f32 %v3650_v15 }
0x29c5   :  { %5736 = vrcp.f32 %v3754_v8 }
0x29d1   :  { %v6827_v34 = vpop.eup %5734 }
0x29d2   :  { %v5737_v0 = vpop.eup %5736  ;;  %v3657_v61 = vmul.f32 %v6827_v34, %v3655_v36 }
0x29d3   :  { %v3761_v60 = vmul.f32 %v5737_v0, %v3759_v25 }
0x2a2b   :  { %v3660_v57 = vpop.permute.xlu1 %3659 }
0x2a2c   :  { %v3662_v46 = vmul.f32 %v6827_v34, %v3660_v57 }
0x2a2e   :  { %3664 = vrot.lane.b32.xlu1 %v3662_v46, %s5894_s15 }
0x2a33   :  { %v3764_v58 = vpop.permute.xlu0 %3763 }
0x2a34   :  { %v3766_v55 = vmul.f32 %v5737_v0, %v3764_v58 }
0x2a36   :  { %3768 = vrot.lane.b32.xlu0 %v3766_v55, %s5894_s15 }
0x2aa0   :  { %v3665_v43 = vpop.permute.xlu1 %3664 }
0x2aa1   :  { %v3667_v40 = vadd.f32 %v3665_v43, %v3657_v61 }
0x2aa3   :  { %5738 = vtanh.f32 %v3667_v40 }
0x2aa8   :  { %v3769_v63 = vpop.permute.xlu0 %3768 }
0x2aa9   :  { %v3771_v2 = vadd.f32 %v3769_v63, %v3761_v60 }
0x2aab   :  { %5740 = vtanh.f32 %v3771_v2 }
0x2ab0   :  { %v5739_v3 = vpop.eup %5738 }
0x2ab1   :  { %3670 = vrot.lane.b32.xlu1 %v5739_v3, %s5893_s2  ;;  %v4923_v3 = vld [vmem:[%s7196_s10] ss:$0 sm:$0xff] }
0x2ab5   :  { %3784 = vrot.lane.b32.xlu1 %v6602_v20, %s5894_s15  ;;  %v3845_v20 = vld [vmem:[%s7195_s9 + $0x38] sm:$0xff] }
0x2ab6   :  { %5448 = vmatprep.subr.mxu0 %v3845_v20 }
0x2ab7   :  { %5449 = vmatpush3.msra.mxu0 %v3845_v20 }
0x2ab8   :  { %v5741_v18 = vpop.eup %5740 }
0x2ab9   :  { %3791 = vrot.lane.b32.xlu1 %v6648_v13, %s5894_s15  ;;  %3774 = vrot.lane.b32.xlu0 %v5741_v18, %s5893_s2  ;;  %v3844_v13 = vld [vmem:[%s7195_s9 + $0x30] sm:$0xff]  ;;  %v4025_v18 = vsub.s32 3, %v6088_v28 }
0x2aba   :  { %5450 = vmatprep.subr.mxu0 %v3844_v13 }
0x2abb   :  { %5451 = vmatpush3.msra.mxu0 %v3844_v13  ;;  %v4018_v13 = vsub.s32 2, %v6088_v28 }
0x2abd   :  { %3806 = vrot.lane.b32.xlu1 %v6698_v10, %s5893_s2  ;;  %3787 = vrot.lane.b32.xlu0 %v3566_v33, %s5893_s2  ;;  %v3843_v10 = vld [vmem:[%s7195_s9 + $0x28] sm:$0xff] }
0x2abe   :  { %5452 = vmatprep.subr.mxu0 %v3843_v10 }
0x2abf   :  { %5453 = vmatpush3.msra.mxu0 %v3843_v10  ;;  %v4122_v10 = vsub.s32 5, %v6088_v28 }
0x2ac1   :  { %3813 = vrot.lane.b32.xlu1 %v6652_v56, %s5893_s2  ;;  %3794 = vrot.lane.b32.xlu0 %v6790_v30, %s5893_s2  ;;  %v3842_v56 = vld [vmem:[%s7195_s9 + $0x20] sm:$0xff]  ;;  %v5895_v30 = vmov 1966171168  }
0x2ac2   :  { %5454 = vmatprep.subr.mxu0 %v3842_v56  ;;  %v3941_v9 = vunpack.c.l.s4 %v5895_v30 }
0x2ac3   :  { %5455 = vmatpush3.msra.mxu0 %v3842_v56  ;;  %v4115_v56 = vsub.s32 4, %v6088_v28 }
0x2ac4   :  { %v3942_v11 = vunpack.c.0.s8 %v3941_v9 }
0x2ac5   :  { %3801 = vrot.lane.b32.xlu1 %v6741_v50, %s5893_s2  ;;  %3810 = vrot.lane.b32.xlu0 %v6786_v22, %s5894_s15  ;;  %v3841_v50 = vld [vmem:[%s7195_s9 + $0x18] sm:$0xff]  ;;  %v6880_v22 = vand.u32 127, %v132_v27 }
0x2ac6   :  { %5456 = vmatprep.subr.mxu0 %v3841_v50  ;;  %v3945_v27 = vsub.s32 %v3942_v11, %v6088_v28 }
0x2ac7   :  { %5457 = vmatpush3.msra.mxu0 %v3841_v50  ;;  %vm3937_vm6 = vcmp.eq.s32.totalorder %v6880_v22, 0  ;;  %v4212_v50 = vsub.s32 7, %v6088_v28 }
0x2ac8   :  { %v3938_v51 = vsel %vm3937_vm6, 0.0, %v5896_v16 }
0x2ac9   :  { %3820 = vrot.lane.b32.xlu1 %v6606_v23, %s5893_s2  ;;  %3798 = vrot.lane.b32.xlu0 %v6694_v52, %s5894_s15  ;;  %v3840_v23 = vld [vmem:[%s7195_s9 + $0x10] sm:$0xff]  ;;  %v3839_v52 = vld [vmem:[%s7195_s9 + $0x8] sm:$0xff]  ;;  %v3946_v39 = vrot.slane %v3938_v51, %v3945_v27 }
0x2aca   :  { %5458 = vmatprep.subr.mxu0 %v3840_v23 }
0x2acb   :  { %5459 = vmatpush3.msra.mxu0 %v3840_v23  ;;  %v3947_v26 = vcombine.high %v3946_v39, %v3946_v39  ;;  %v3954_v38 = vrot.slane %v3946_v39, %v3945_v27 }
0x2acc   :  { %5460 = vmatprep.subr.mxu0 %v3839_v52 }
0x2acd   :  { %3828 = vrot.lane.b32.xlu1 %v6557_v5, %s5893_s2  ;;  %3817 = vrot.lane.b32.xlu0 %v6816_v1, %s5894_s15  ;;  %v3838_v5 = vld [vmem:[%s7195_s9] sm:$0xff]  ;;  %v3961_v1 = vrot.slane %v3947_v26, %v3945_v27  ;;  %v3965_v62 = vrot.slane %v3954_v38, %v6091_v29  ;;  %v6964_v38 = vsub.s32 %v6880_v22, %v6088_v28 }
0x2ace   :  { %5461 = vmatpush3.msra.mxu0 %v3839_v52 }
0x2acf   :  { %5462 = vmatprep.subr.mxu0 %v3838_v5  ;;  %v3969_v53 = vrot.slane %v3961_v1, %v6091_v29  ;;  %v6905_v47 = vadd.f32 %v3965_v62, %v6895_v12 }
0x2ad0   :  { %5463 = vmatpush3.msra.mxu0 %v3838_v5  ;;  %v4205_v5 = vsub.s32 6, %v6088_v28 }
0x2ad1   :  { %v6899_v33 = vadd.f32 %v3969_v53, %v6895_v12  ;;  %v3975_v41 = vsel %vm3974_vm7, %v6905_v47, -inf }
0x2ad3   :  { %v3978_v59 = vsel %vm3974_vm7, %v6899_v33, -inf }
0x2af1   :  { %3979 = vmax.xlane.f32.xlu1 %v3978_v59 }
0x2b23   :  { %v3671_v21 = vpop.permute.xlu1 %3670 }
0x2b24   :  { %v3673_v24 = vmul.f32 %v6827_v34, %v3671_v21 }
0x2b27   :  { %v3785_v44 = vpop.permute.xlu1 %3784 }
0x2b2b   :  { %v3775_v14 = vpop.permute.xlu0 %3774  ;;  %v3792_v54 = vpop.permute.xlu1 %3791 }
0x2b2c   :  { %v3777_v19 = vmul.f32 %v5737_v0, %v3775_v14 }
0x2b2e   :  { %3780 = vrot.lane.b32.xlu0 %v3777_v19, %s5893_s2 }
0x2b2f   :  { %v3788_v4 = vpop.permute.xlu0 %3787  ;;  %v3807_v45 = vpop.permute.xlu1 %3806 }
0x2b30   :  { %v3790_v8 = vsel %vm234_vm2, %v3785_v44, %v3788_v4  ;;  %v3809_v55 = vsel %vm234_vm2, %v6745_v48, %v3807_v45  ;;  %v5897_v48 = vmov 0  }
0x2b31   :  { %5485 = vset.pattern.permute.xlu1 %v5897_v48  ;;  %5484 = vset.pattern.permute.xlu0 %v5897_v48 }
0x2b32   :  { %3825 = vrot.lane.b32.xlu0 %v3673_v24, %s5894_s15 }
0x2b33   :  { %v3795_v37 = vpop.permute.xlu0 %3794  ;;  %v3814_v31 = vpop.permute.xlu1 %3813 }
0x2b34   :  { %v3797_v46 = vsel %vm234_vm2, %v3792_v54, %v3795_v37 }
0x2b37   :  { %v3811_v35 = vpop.permute.xlu0 %3810  ;;  %v3802_v6 = vpop.permute.xlu1 %3801 }
0x2b38   :  { %v3816_v34 = vsel %vm234_vm2, %v3811_v35, %v3814_v31 }
0x2b39   :  { %v3835_v43 = vsel %vm1971_vm4, %v3809_v55, %v3816_v34 }
0x2b3b   :  { %v3799_v42 = vpop.permute.xlu0 %3798  ;;  %v3821_v15 = vpop.permute.xlu1 %3820 }
0x2b3c   :  { %v3804_v36 = vsel %vm234_vm2, %v3799_v42, %v3802_v6 }
0x2b3f   :  { %v3818_v17 = vpop.permute.xlu0 %3817  ;;  %v3829_v40 = vpop.permute.xlu1 %3828 }
0x2b40   :  { %v3823_v0 = vsel %vm234_vm2, %v3818_v17, %v3821_v15 }
0x2b51   :  { %3976 = vmax.xlane.f32.xlu0 %v3975_v41 }
0x2b7a   :  { %v6956_v39 = vpop.xlane.xlu1 %3979 }
0x2ba0   :  { %v3781_v49 = vpop.permute.xlu0 %3780 }
0x2ba1   :  { %v3783_v57 = vsel %vm234_vm2, %v6561_v7, %v3781_v49  ;;  %v3836_v7 = vsel %vm1973_vm3, %v3835_v43, %v3823_v0 }
0x2ba2   :  { %v3832_v58 = vsel %vm1971_vm4, %v3783_v57, %v3790_v8 }
0x2ba3   :  { %v3833_v61 = vsel %vm1973_vm3, %v3832_v58, %v3797_v46 }
0x2ba4   :  { %v3826_v25 = vpop.permute.xlu0 %3825  ;;  %v3834_v60 = vsel %vm1975_vm5, %v3833_v61, %v3804_v36 }
0x2ba5   :  { %v3831_v63 = vsel %vm234_vm2, %v3826_v25, %v3829_v40  ;;  %5464 = vmatprep.mubr.msk.f32.mxu0 %vm142_vm1, %v3834_v60 }
0x2ba6   :  { %v3837_v2 = vsel %vm1975_vm5, %v3836_v7, %v3831_v63 }
0x2ba7   :  { %5465 = vmatmul.mubr.msk.f32.vlgmr.msra.gmra.mxu0 %vm142_vm1, %v3837_v2 }
0x2bda   :  { %v6958_v24 = vpop.xlane.xlu0 %3976 }
0x2c67   :  { %v5466_v20 = vpop.f32.mrf.mxu0 }
0x2c68   :  { %v6935_v23 = vadd.f32 %v5466_v20, %v4923_v3 }
0x2c69   :  { %v3925_v52 = vpop.f32.mrf.mxu0 }
0x2c6a   :  { %v3926_v30 = vadd.f32 %v4923_v3, %v3925_v52  ;;  %v6939_v9 = vrot.slane %v6935_v23, %v4025_v18  ;;  %v6942_v11 = vrot.slane %v6935_v23, %v4018_v13  ;;  %v6945_v14 = vrot.slane %v6935_v23, %v4122_v10 }
0x2c6b   :  { %v6948_v16 = vrot.slane %v6935_v23, %v4115_v56  ;;  %v6951_v51 = vrot.slane %v6935_v23, %v4212_v50  ;;  %v6954_v21 = vrot.slane %v6935_v23, %v4205_v5 }
0x2c6c   :  { %v4026_v19 = vrot.slane %v3926_v30, %v4025_v18  ;;  %v4019_v27 = vrot.slane %v3926_v30, %v4018_v13  ;;  %v4123_v28 = vrot.slane %v3926_v30, %v4122_v10  ;;  %v4116_v31 = vrot.slane %v3926_v30, %v4115_v56 }
0x2c6d   :  { %v4213_v43 = vrot.slane %v3926_v30, %v4212_v50  ;;  %v4206_v40 = vrot.slane %v3926_v30, %v4205_v5  ;;  %v4304_v5 = vrot.slane %v6935_v23, %v6097_v32  ;;  %v4297_v30 = vrot.slane %v6935_v23, %v6091_v29 }
0x2c6e   :  { %4028 = vbcast.lane.b32.xlu1 %v4026_v19, 256  ;;  %4021 = vbcast.lane.b32.xlu0 %v4019_v27, 256 }
0x2ce0   :  { %v4029_v26 = vpop.permute.xlu1 %4028  ;;  %v4022_v1 = vpop.permute.xlu0 %4021 }
0x2ce1   :  { %v4033_v53 = vadd.f32 %v4029_v26, %v6956_v39  ;;  %v4032_v59 = vadd.f32 %v4022_v1, %v6958_v24 }
0x2ce3   :  { %4040 = vperm.xlu1 %5485, %v4033_v53   ;;  %4037 = vperm.xlu0 %5484, %v4032_v59  }
0x2d5e   :  { %v4041_v62 = vpop.permute.xlu1 %4040  ;;  %v4038_v41 = vpop.permute.xlu0 %4037 }
0x2d5f   :  { %v4049_v44 = vrot.slane %v4041_v62, %v6964_v38  ;;  %v4045_v4 = vrot.slane %v4038_v41, %v6964_v38 }
0x2d61   :  { %v6969_v54 = vadd.f32 %v4049_v44, %v6895_v12  ;;  %v6972_v37 = vadd.f32 %v4045_v4, %v6895_v12 }
0x2d63   :  { %v4076_v45 = vsel %vm3974_vm7, %v6969_v54, -inf  ;;  %v4073_v35 = vsel %vm3974_vm7, %v6972_v37, -inf }
0x2d64   :  { %4077 = vmax.xlane.f32.xlu0 %v4076_v45  ;;  %4074 = vmax.xlane.f32.xlu1 %v4073_v35 }
0x2d75   :  { %4125 = vbcast.lane.b32.xlu1 %v4123_v28, 256 }
0x2d7a   :  { %4118 = vbcast.lane.b32.xlu0 %v4116_v31, 256 }
0x2ded   :  { %v6978_v42 = vpop.xlane.xlu1 %4074  ;;  %v6980_v6 = vpop.xlane.xlu0 %4077 }
0x2df1   :  { %v4126_v17 = vpop.permute.xlu1 %4125  ;;  %v4119_v15 = vpop.permute.xlu0 %4118 }
0x2df2   :  { %v4130_v49 = vadd.f32 %v4126_v17, %v6980_v6  ;;  %v4129_v8 = vadd.f32 %v4119_v15, %v6978_v42 }
0x2df4   :  { %4137 = vperm.xlu0 %5484, %v4130_v49   ;;  %4134 = vperm.xlu1 %5485, %v4129_v8  }
0x2e6f   :  { %v4135_v34 = vpop.permute.xlu1 %4134  ;;  %v4138_v57 = vpop.permute.xlu0 %4137 }
0x2e70   :  { %v4142_v46 = vrot.slane %v4135_v34, %v6964_v38  ;;  %v4146_v0 = vrot.slane %v4138_v57, %v6964_v38 }
0x2e72   :  { %v6987_v58 = vadd.f32 %v4142_v46, %v6895_v12  ;;  %v6990_v55 = vadd.f32 %v4146_v0, %v6895_v12 }
0x2e74   :  { %v4163_v36 = vsel %vm3974_vm7, %v6987_v58, -inf  ;;  %v4166_v61 = vsel %vm3974_vm7, %v6990_v55, -inf }
0x2e75   :  { %4164 = vmax.xlane.f32.xlu1 %v4163_v36  ;;  %4167 = vmax.xlane.f32.xlu0 %v4166_v61 }
0x2e86   :  { %4215 = vbcast.lane.b32.xlu1 %v4213_v43, 256 }
0x2e8b   :  { %4208 = vbcast.lane.b32.xlu0 %v4206_v40, 256 }
0x2efe   :  { %v6996_v25 = vpop.xlane.xlu1 %4164  ;;  %v6998_v60 = vpop.xlane.xlu0 %4167 }
0x2f02   :  { %v4216_v7 = vpop.permute.xlu1 %4215  ;;  %v4209_v63 = vpop.permute.xlu0 %4208 }
0x2f03   :  { %v4220_v2 = vadd.f32 %v4216_v7, %v6998_v60  ;;  %v4219_v48 = vadd.f32 %v4209_v63, %v6996_v25 }
0x2f05   :  { %4227 = vperm.xlu0 %5484, %v4220_v2   ;;  %4224 = vperm.xlu1 %5485, %v4219_v48  }
0x2f80   :  { %v4225_v3 = vpop.permute.xlu1 %4224  ;;  %v4228_v18 = vpop.permute.xlu0 %4227 }
0x2f81   :  { %v4232_v20 = vrot.slane %v4225_v3, %v6964_v38  ;;  %v4236_v13 = vrot.slane %v4228_v18, %v6964_v38 }
0x2f83   :  { %v7005_v10 = vadd.f32 %v4232_v20, %v6895_v12  ;;  %v7008_v56 = vadd.f32 %v4236_v13, %v6895_v12 }
0x2f85   :  { %v4253_v50 = vsel %vm3974_vm7, %v7005_v10, -inf  ;;  %v4256_v52 = vsel %vm3974_vm7, %v7008_v56, -inf }
0x2f86   :  { %4254 = vmax.xlane.f32.xlu1 %v4253_v50  ;;  %4257 = vmax.xlane.f32.xlu0 %v4256_v52 }
0x2f97   :  { %4306 = vbcast.lane.b32.xlu1 %v4304_v5, 256 }
0x2f9c   :  { %4299 = vbcast.lane.b32.xlu0 %v4297_v30, 256 }
0x300f   :  { %v7018_v19 = vpop.xlane.xlu1 %4254  ;;  %v7020_v27 = vpop.xlane.xlu0 %4257 }
0x3013   :  { %v4307_v26 = vpop.permute.xlu1 %4306  ;;  %v4300_v1 = vpop.permute.xlu0 %4299 }
0x3014   :  { %v4311_v53 = vadd.f32 %v4307_v26, %v7020_v27  ;;  %v4310_v59 = vadd.f32 %v4300_v1, %v7018_v19 }
0x3016   :  { %4318 = vperm.xlu0 %5484, %v4311_v53   ;;  %4315 = vperm.xlu1 %5485, %v4310_v59  }
0x3091   :  { %v4316_v62 = vpop.permute.xlu1 %4315  ;;  %v4319_v41 = vpop.permute.xlu0 %4318 }
0x3092   :  { %v4323_v44 = vrot.slane %v4316_v62, %v6964_v38  ;;  %v4327_v4 = vrot.slane %v4319_v41, %v6964_v38 }
0x3094   :  { %v7027_v23 = vadd.f32 %v4323_v44, %v6895_v12  ;;  %v7030_v45 = vadd.f32 %v4327_v4, %v6895_v12 }
0x3096   :  { %v4344_v35 = vsel %vm3974_vm7, %v7027_v23, -inf  ;;  %v4347_v28 = vsel %vm3974_vm7, %v7030_v45, -inf }
0x3097   :  { %4345 = vmax.xlane.f32.xlu1 %v4344_v35  ;;  %4348 = vmax.xlane.f32.xlu0 %v4347_v28 }
0x30a8   :  { %4396 = vbcast.lane.b32.xlu1 %v6939_v9, 256 }
0x30ad   :  { %4389 = vbcast.lane.b32.xlu0 %v6942_v11, 256 }
0x3120   :  { %v7038_v31 = vpop.xlane.xlu1 %4345  ;;  %v7040_v17 = vpop.xlane.xlu0 %4348 }
0x3121   :  { %vm4350_vm5 = vcmp.eq.f32.partialorder %v7027_v23, %v7038_v31 }
0x3124   :  { %v4397_v15 = vpop.permute.xlu1 %4396  ;;  %v4390_v49 = vpop.permute.xlu0 %4389 }
0x3125   :  { %v4401_v8 = vadd.f32 %v4397_v15, %v7040_v17  ;;  %v4400_v34 = vadd.f32 %v4390_v49, %v7038_v31 }
0x3127   :  { %4408 = vperm.xlu0 %5484, %v4401_v8   ;;  %4405 = vperm.xlu1 %5485, %v4400_v34  }
0x31a2   :  { %v4406_v57 = vpop.permute.xlu1 %4405  ;;  %v4409_v46 = vpop.permute.xlu0 %4408 }
0x31a3   :  { %v4413_v0 = vrot.slane %v4406_v57, %v6964_v38  ;;  %v4417_v9 = vrot.slane %v4409_v46, %v6964_v38 }
0x31a5   :  { %v7047_v11 = vadd.f32 %v4413_v0, %v6895_v12  ;;  %v7050_v36 = vadd.f32 %v4417_v9, %v6895_v12 }
0x31a7   :  { %v4434_v61 = vsel %vm3974_vm7, %v7047_v11, -inf  ;;  %v4437_v43 = vsel %vm3974_vm7, %v7050_v36, -inf }
0x31a8   :  { %4435 = vmax.xlane.f32.xlu1 %v4434_v61  ;;  %4438 = vmax.xlane.f32.xlu0 %v4437_v43 }
0x31b9   :  { %4486 = vbcast.lane.b32.xlu1 %v6945_v14, 256 }
0x31be   :  { %4479 = vbcast.lane.b32.xlu0 %v6948_v16, 256 }
0x3231   :  { %v4436_v40 = vpop.xlane.xlu1 %4435  ;;  %v7058_v7 = vpop.xlane.xlu0 %4438 }
0x3232   :  { %vm4440_vm15 = vcmp.eq.f32.partialorder %v7047_v11, %v4436_v40  ;;  %vm4441_vm3 = vcmp.eq.f32.partialorder %v7050_v36, %v7058_v7 }
0x3235   :  { %v4487_v63 = vpop.permute.xlu1 %4486  ;;  %v4480_v2 = vpop.permute.xlu0 %4479 }
0x3236   :  { %v4491_v48 = vadd.f32 %v4487_v63, %v7058_v7  ;;  %v4490_v3 = vadd.f32 %v4480_v2, %v4436_v40 }
0x3238   :  { %4498 = vperm.xlu0 %5484, %v4491_v48   ;;  %4495 = vperm.xlu1 %5485, %v4490_v3  }
0x32b3   :  { %v4496_v18 = vpop.permute.xlu1 %4495  ;;  %v4499_v20 = vpop.permute.xlu0 %4498 }
0x32b4   :  { %v4503_v13 = vrot.slane %v4496_v18, %v6964_v38  ;;  %v4507_v50 = vrot.slane %v4499_v20, %v6964_v38 }
0x32b6   :  { %v4522_v14 = vadd.f32 %v4503_v13, %v6895_v12  ;;  %v4523_v16 = vadd.f32 %v4507_v50, %v6895_v12 }
0x32b8   :  { %v4524_v52 = vsel %vm3974_vm7, %v4522_v14, -inf  ;;  %v4527_v5 = vsel %vm3974_vm7, %v4523_v16, -inf }
0x32b9   :  { %4525 = vmax.xlane.f32.xlu1 %v4524_v52  ;;  %4528 = vmax.xlane.f32.xlu0 %v4527_v5 }
0x32ca   :  { %4576 = vbcast.lane.b32.xlu1 %v6951_v51, 256 }
0x32cf   :  { %4569 = vbcast.lane.b32.xlu0 %v6954_v21, 256 }
0x3342   :  { %v4526_v30 = vpop.xlane.xlu1 %4525  ;;  %v4529_v26 = vpop.xlane.xlu0 %4528 }
0x3343   :  { %vm4531_vm8 = vcmp.eq.f32.partialorder %v4523_v16, %v4529_v26  ;;  %vm4530_vm14 = vcmp.eq.f32.partialorder %v4522_v14, %v4526_v30 }
0x3344   :  { %v4533_v12 = vsel %vm4531_vm8, %v6880_v22, 8  ;;  %v4532_v61 = vsel %vm4530_vm14, %v6880_v22, 8  ;;  %vm4351_vm8 = vcmp.eq.f32.partialorder %v7030_v45, %v7040_v17  ;;  %vm4260_vm14 = vcmp.eq.f32.partialorder %v7008_v56, %v7020_v27 }
0x3345   :  { %v4549_v41 = vsel %vm3974_vm7, %v4533_v12, 2147483647  ;;  %v4534_v43 = vsel %vm3974_vm7, %v4532_v61, 2147483647  ;;  %v4262_v56 = vsel %vm4260_vm14, %v6880_v22, 8  ;;  %vm4079_vm14 = vcmp.eq.f32.partialorder %v6972_v37, %v6978_v42 }
0x3346   :  { %v4577_v1 = vpop.permute.xlu1 %4576  ;;  %v4570_v53 = vpop.permute.xlu0 %4569  ;;  %v4551_v28 = vshra.s32 %v4549_v41, 16  ;;  %v4550_v2 = vand.u32 65535, %v4549_v41  ;;  %v4081_v37 = vsel %vm4079_vm14, %v6880_v22, 8 }
0x3347   :  { %v4581_v59 = vadd.f32 %v4577_v1, %v4529_v26  ;;  %v4580_v62 = vadd.f32 %v4570_v53, %v4526_v30  ;;  %v4535_v1 = vand.u32 65535, %v4534_v43 }
0x3348   :  { %v4553_v49 = vcvt.s32.f32 %v4551_v28  ;;  %v4552_v18 = vcvt.s32.f32 %v4550_v2 }
0x3349   :  { %4588 = vperm.xlu0 %5484, %v4581_v59   ;;  %4585 = vperm.xlu1 %5485, %v4580_v62  }
0x334d   :  { %4618 = vbcast.lane.b32.xlu0 %v6880_v22, 256 }
0x33c4   :  { %v4586_v44 = vpop.permute.xlu1 %4585  ;;  %v4589_v4 = vpop.permute.xlu0 %4588 }
0x33c5   :  { %v4593_v51 = vrot.slane %v4586_v44, %v6964_v38  ;;  %v4597_v21 = vrot.slane %v4589_v4, %v6964_v38 }
0x33c7   :  { %v4598_v35 = vsel %vm4050_vm9, %v4597_v21, %v4593_v51  ;;  %v4443_v21 = vsel %vm4441_vm3, %v6880_v22, 8 }
0x33c8   :  { %v4601_v15 = vsel %vm4600_vm10, %v4598_v35, -inf  ;;  %v4619_v46 = vpop.permute.xlu0 %4618  ;;  %v4459_v28 = vsel %vm3974_vm7, %v4443_v21, 2147483647 }
0x33c9   :  { %4602 = vmax.xlane.f32.xlu1 %v4601_v15 }
0x33cd   :  { %4554 = vmin.xlane.f32.xlu1 %v4553_v49 }
0x3452   :  { %v4603_v8 = vpop.xlane.xlu1 %4602 }
0x3453   :  { %v4608_v34 = vrot.slane %v4603_v8, %v6091_v29  ;;  %v4612_v57 = vrot.slane %v4603_v8, %v6097_v32  ;;  %4653 = vst.msk [vmem:[%s7198_s12] sm:$0x3] %vm4652_vm11, %v4603_v8  ;;  %v4536_v29 = vshra.s32 %v4534_v43, 16  ;;  %v4442_v32 = vsel %vm4440_vm15, %v6880_v22, 8  ;;  %s5898_s12 = smov [#allocation11]  }
0x3454   :  { %v4444_v3 = vsel %vm3974_vm7, %v4442_v32, 2147483647  ;;  %v4461_v8 = vshra.s32 %v4459_v28, 16  ;;  %vm4654_vm15 = vcmp.eq.s32.totalorder %v6880_v22, 7  ;;  %s4846_s18 = sshll.u32 %s5898_s12, 4  ;;  %s4847_s18 = int_to_ptr.vmem [resolvable:$true] %s4846_s18 }
0x3455   :  { %vm4615_vm12 = vcmp.eq.f32.partialorder %v4580_v62, %v4608_v34  ;;  %vm4616_vm13 = vcmp.eq.f32.partialorder %v4581_v59, %v4612_v57  ;;  %v4538_v48 = vcvt.s32.f32 %v4536_v29  ;;  %v4446_v20 = vshra.s32 %v4444_v3, 16  ;;  %s5854_s5 = scalar_lea.vmem %s4847_s18, 32  ;;  %p5859_p12 = scmp.lt.s32.totalorder %s4847_s18, %s4847_s18 }
0x3456   :  { %v4620_v0 = vsel %vm4615_vm12, %v4619_v46, 8  ;;  %v4621_v9 = vsel %vm4616_vm13, %v4619_v46, 8  ;;  %v4555_v63 = vpop.xlane.xlu1 %4554  ;;  %v4537_v59 = vcvt.s32.f32 %v4535_v1  ;;  %v4445_v41 = vand.u32 65535, %v4444_v3  ;;  %p5855_p11 = scmp.ne.s32.totalorder %s4847_s18, %s5854_s5  ;;  %p5860_p13 = scmp.lt.s32.totalorder %s5854_s5, %s5854_s5 }
0x3457   :  { %4623 = vperm.xlu0 %5484, %v4620_v0   ;;  %vm4556_vm0 = vcmp.eq.f32.partialorder %v4553_v49, %v4555_v63  ;;  %v4448_v50 = vcvt.s32.f32 %v4446_v20  ;;  %v4463_v57 = vcvt.s32.f32 %v4461_v8  ;;  %v4561_v46 = vcvt.f32.s32 %v4555_v63 }
0x3458   :  { %v4557_v13 = vsel %vm4556_vm0, %v4552_v18, inf  ;;  %v4447_v4 = vcvt.s32.f32 %v4445_v41  ;;  %vm4259_vm13 = vcmp.eq.f32.partialorder %v7005_v10, %v7018_v19  ;;  %vm4680_vm0 = vcmp.eq.s32.totalorder %v6880_v22, 6  ;;  %p5861_p0 = por %p5860_p13, %p5859_p12 }
0x3459   :  { %v4562_v61 = vshll.u32 %v4561_v46, 16 }
0x345a   :  { %p5862_p1 = pnand %p5861_p0, %p5855_p11 }
0x345b   :  { %4626 = vperm.xlu0 %5484, %v4621_v9  }
0x347a   :  { %4539 = vmin.xlane.f32.xlu0 %v4538_v48 }
0x347e   :  { %4558 = vmin.xlane.f32.xlu0 %v4557_v13  ;;  %v4460_v13 = vand.u32 65535, %v4459_v28 }
0x3482   :  { %4449 = vmin.xlane.f32.xlu0 %v4448_v50 }
0x34d2   :  { %v4624_v14 = vpop.permute.xlu0 %4623 }
0x34d3   :  { %v4631_v11 = vrot.slane %v4624_v14, %v6964_v38 }
0x34d6   :  { %v4627_v16 = vpop.permute.xlu0 %4626 }
0x34d7   :  { %v4635_v40 = vrot.slane %v4627_v16, %v6964_v38  ;;  %v4352_v16 = vsel %vm4350_vm5, %v6880_v22, 8  ;;  %vm4170_vm5 = vcmp.eq.f32.partialorder %v6990_v55, %v6998_v60 }
0x34d9   :  { %v4636_v52 = vsel %vm4050_vm9, %v4635_v40, %v4631_v11  ;;  %v4353_v11 = vsel %vm4351_vm8, %v6880_v22, 8  ;;  %vm4706_vm8 = vcmp.eq.s32.totalorder %v6880_v22, 5 }
0x34da   :  { %v4637_v5 = vsel %vm4600_vm10, %v4636_v52, 2147483647  ;;  %v4462_v52 = vcvt.s32.f32 %v4460_v13  ;;  %v4369_v23 = vsel %vm3974_vm7, %v4353_v11, 2147483647  ;;  %v4278_v11 = vsel %vm3974_vm7, %v4262_v56, 2147483647 }
0x34db   :  { %v4639_v30 = vshra.s32 %v4637_v5, 16  ;;  %v4638_v35 = vand.u32 65535, %v4637_v5 }
0x34dd   :  { %v4641_v26 = vcvt.s32.f32 %v4639_v30  ;;  %v4640_v49 = vcvt.s32.f32 %v4638_v35 }
0x34df   :  { %4642 = vmin.xlane.f32.xlu1 %v4641_v26 }
0x3503   :  { %v4540_v53 = vpop.xlane.xlu0 %4539 }
0x3504   :  { %vm4541_vm1 = vcmp.eq.f32.partialorder %v4538_v48, %v4540_v53  ;;  %v4546_v0 = vcvt.f32.s32 %v4540_v53 }
0x3505   :  { %v4542_v62 = vsel %vm4541_vm1, %v4537_v59, inf  ;;  %v4371_v59 = vshra.s32 %v4369_v23, 16 }
0x3506   :  { %4543 = vmin.xlane.f32.xlu1 %v4542_v62  ;;  %v4547_v29 = vshll.u32 %v4546_v0, 16  ;;  %v4370_v0 = vand.u32 65535, %v4369_v23 }
0x3507   :  { %v4559_v12 = vpop.xlane.xlu0 %4558 }
0x3508   :  { %v4560_v9 = vcvt.f32.s32 %v4559_v12  ;;  %v4373_v12 = vcvt.s32.f32 %v4371_v59 }
0x350a   :  { %v4563_v36 = vadd.s32 %v4562_v61, %v4560_v9 }
0x350b   :  { %v7090_v44 = vpop.xlane.xlu0 %4449 }
0x350c   :  { %vm4451_vm2 = vcmp.eq.f32.partialorder %v4448_v50, %v7090_v44  ;;  %v4664_v2 = vrot.slane %v4563_v36, %v6964_v38  ;;  %v4456_v21 = vcvt.f32.s32 %v7090_v44 }
0x350d   :  { %v4452_v51 = vsel %vm4451_vm2, %v4447_v4, inf }
0x350e   :  { %4453 = vmin.xlane.f32.xlu0 %v4452_v51  ;;  %v4457_v8 = vshll.u32 %v4456_v21, 16 }
0x3568   :  { %v4643_v15 = vpop.xlane.xlu1 %4642 }
0x3569   :  { %vm4644_vm4 = vcmp.eq.f32.partialorder %v4641_v26, %v4643_v15  ;;  %v4649_v18 = vcvt.f32.s32 %v4643_v15  ;;  %v4354_v26 = vsel %vm3974_vm7, %v4352_v16, 2147483647 }
0x356a   :  { %v4645_v34 = vsel %vm4644_vm4, %v4640_v49, inf  ;;  %v4356_v62 = vshra.s32 %v4354_v26, 16  ;;  %v4355_v9 = vand.u32 65535, %v4354_v26  ;;  %v4280_v26 = vshra.s32 %v4278_v11, 16 }
0x356b   :  { %4646 = vmin.xlane.f32.xlu1 %v4645_v34  ;;  %v4650_v63 = vshll.u32 %v4649_v18, 16  ;;  %vm4169_vm4 = vcmp.eq.f32.partialorder %v6987_v58, %v6996_v25  ;;  %v4172_v25 = vsel %vm4170_vm5, %v6880_v22, 8  ;;  %vm3981_vm5 = vcmp.eq.f32.partialorder %v6905_v47, %v6958_v24 }
0x356c   :  { %v4358_v41 = vcvt.s32.f32 %v4356_v62  ;;  %v4171_v58 = vsel %vm4169_vm4, %v6880_v22, 8  ;;  %vm3982_vm4 = vcmp.eq.f32.partialorder %v6899_v33, %v6956_v39  ;;  %v3983_v39 = vsel %vm3981_vm5, %v6880_v22, 8 }
0x356d   :  { %v3984_v33 = vsel %vm3982_vm4, %v6880_v22, 8 }
0x356f   :  { %4464 = vmin.xlane.f32.xlu1 %v4463_v57 }
0x358f   :  { %v4544_v43 = vpop.xlane.xlu1 %4543 }
0x3590   :  { %v4545_v7 = vcvt.f32.s32 %v4544_v43 }
0x3592   :  { %v4548_v32 = vadd.s32 %v4547_v29, %v4545_v7  ;;  %v4261_v7 = vsel %vm4259_vm13, %v6880_v22, 8 }
0x3593   :  { %v4263_v16 = vsel %vm3974_vm7, %v4261_v7, 2147483647 }
0x3594   :  { %v4660_v48 = vrot.slane %v4548_v32, %v6964_v38  ;;  %v4265_v23 = vshra.s32 %v4263_v16, 16 }
0x3596   :  { %v4665_v3 = vsel %vm4050_vm9, %v4664_v2, %v4660_v48  ;;  %v4372_v48 = vcvt.s32.f32 %v4370_v0 }
0x3597   :  { %v4454_v51 = vpop.xlane.xlu0 %4453 }
0x3598   :  { %v4455_v15 = vcvt.f32.s32 %v4454_v51 }
0x359a   :  { %v4458_v61 = vadd.s32 %v4457_v8, %v4455_v15  ;;  %v4279_v15 = vand.u32 65535, %v4278_v11 }
0x359c   :  { %v4686_v10 = vrot.slane %v4458_v61, %v6964_v38 }
0x35f4   :  { %v4647_v20 = vpop.xlane.xlu1 %4646 }
0x35f5   :  { %v4648_v50 = vcvt.f32.s32 %v4647_v20 }
0x35f7   :  { %v4651_v14 = vadd.s32 %v4650_v63, %v4648_v50 }
0x35f8   :  { %v4465_v40 = vpop.xlane.xlu1 %4464 }
0x35f9   :  { %vm4656_vm11 = vcmp.eq.s32.totalorder %v6880_v22, %v4651_v14  ;;  %vm4466_vm12 = vcmp.eq.f32.partialorder %v4463_v57, %v4465_v40  ;;  %v4471_v4 = vcvt.f32.s32 %v4465_v40  ;;  %v4655_v27 = vsel %vm4654_vm15, %v4651_v14, 0 }
0x35fa   :  { %v4666_v5 = vsel %vm4656_vm11, %v4665_v3, 0  ;;  %v4467_v30 = vsel %vm4466_vm12, %v4462_v52, inf  ;;  %v4357_v3 = vcvt.s32.f32 %v4355_v9  ;;  %vm4080_vm15 = vcmp.eq.f32.partialorder %v6969_v54, %v6980_v6 }
0x35fb   :  { %4468 = vmin.xlane.f32.xlu1 %v4467_v30  ;;  %v4667_v45 = vsel %vm4600_vm10, %v4666_v5, 0  ;;  %v4472_v49 = vshll.u32 %v4471_v4, 16  ;;  %v4082_v42 = vsel %vm4080_vm15, %v6880_v22, 8 }
0x35fc   :  { %v4668_v31 = vand.u32 65535, %v4667_v45  ;;  %v4669_v17 = vshrl.u32 %v4667_v45, 16  ;;  %v4282_v45 = vcvt.s32.f32 %v4280_v26 }
0x35fe   :  { %v4670_v1 = vcvt.s32.f32 %v4668_v31  ;;  %v4671_v53 = vcvt.s32.f32 %v4669_v17  ;;  %v4267_v31 = vcvt.s32.f32 %v4265_v23 }
0x3600   :  { %4672 = vadd.xlane.f32.xlu1 %v4670_v1  ;;  %4674 = vadd.xlane.f32.xlu0 %v4671_v53 }
0x3604   :  { %4374 = vmin.xlane.f32.xlu1 %v4373_v12  ;;  %4359 = vmin.xlane.f32.xlu0 %v4358_v41 }
0x3684   :  { %v4469_v35 = vpop.xlane.xlu1 %4468 }
0x3685   :  { %v4470_v28 = vcvt.f32.s32 %v4469_v35 }
0x3687   :  { %v4473_v34 = vadd.s32 %v4472_v49, %v4470_v28  ;;  %v4264_v49 = vand.u32 65535, %v4263_v16 }
0x3689   :  { %v4673_v57 = vpop.xlane.xlu1 %4672  ;;  %v4675_v46 = vpop.xlane.xlu0 %4674  ;;  %v4690_v44 = vrot.slane %v4473_v34, %v6964_v38 }
0x368a   :  { %v4677_v43 = vcvt.f32.s32 %v4675_v46  ;;  %v4676_v29 = vcvt.f32.s32 %v4673_v57 }
0x368b   :  { %v4691_v13 = vsel %vm4050_vm9, %v4690_v44, %v4686_v10  ;;  %v4266_v44 = vcvt.s32.f32 %v4264_v49 }
0x368c   :  { %v4678_v36 = vshll.u32 %v4677_v43, 16  ;;  %v4281_v43 = vcvt.s32.f32 %v4279_v15 }
0x368d   :  { %v4375_v32 = vpop.xlane.xlu1 %4374  ;;  %v4360_v2 = vpop.xlane.xlu0 %4359 }
0x368e   :  { %v4679_v19 = vadd.s32 %v4678_v36, %v4676_v29  ;;  %vm4376_vm1 = vcmp.eq.f32.partialorder %v4373_v12, %v4375_v32  ;;  %vm4361_vm2 = vcmp.eq.f32.partialorder %v4358_v41, %v4360_v2  ;;  %v4381_v17 = vcvt.f32.s32 %v4375_v32 }
0x368f   :  { %v4377_v18 = vsel %vm4376_vm1, %v4372_v48, inf  ;;  %v4362_v20 = vsel %vm4361_vm2, %v4357_v3, inf  ;;  %v4366_v1 = vcvt.f32.s32 %v4360_v2  ;;  %v4173_v2 = vsel %vm3974_vm7, %v4171_v58, 2147483647 }
0x3690   :  { %v4681_v63 = vsel %vm4680_vm0, %v4679_v19, %v4655_v27  ;;  %vm4682_vm3 = vcmp.eq.s32.totalorder %v6880_v22, %v4679_v19  ;;  %4378 = vmin.xlane.f32.xlu1 %v4377_v18  ;;  %4363 = vmin.xlane.f32.xlu0 %v4362_v20  ;;  %v4382_v41 = vshll.u32 %v4381_v17, 16  ;;  %v4188_v48 = vsel %vm3974_vm7, %v4172_v25, 2147483647 }
0x3691   :  { %v4692_v50 = vsel %vm4682_vm3, %v4691_v13, 0  ;;  %v4367_v4 = vshll.u32 %v4366_v1, 16  ;;  %v4190_v18 = vshra.s32 %v4188_v48, 16  ;;  %v4175_v20 = vshra.s32 %v4173_v2, 16 }
0x3692   :  { %v4693_v40 = vsel %vm4600_vm10, %v4692_v50, 0  ;;  %v4189_v17 = vand.u32 65535, %v4188_v48  ;;  %v4174_v1 = vand.u32 65535, %v4173_v2  ;;  %vm4732_vm0 = vcmp.eq.s32.totalorder %v6880_v22, 4 }
0x3693   :  { %v4694_v52 = vand.u32 65535, %v4693_v40  ;;  %v4695_v5 = vshrl.u32 %v4693_v40, 16  ;;  %v4192_v13 = vcvt.s32.f32 %v4190_v18 }
0x3695   :  { %v4696_v30 = vcvt.s32.f32 %v4694_v52  ;;  %v4697_v14 = vcvt.s32.f32 %v4695_v5 }
0x3697   :  { %4698 = vadd.xlane.f32.xlu1 %v4696_v30  ;;  %4700 = vadd.xlane.f32.xlu0 %v4697_v14 }
0x369b   :  { %4283 = vmin.xlane.f32.xlu1 %v4282_v45  ;;  %4268 = vmin.xlane.f32.xlu0 %v4267_v31 }
0x3719   :  { %v4379_v53 = vpop.xlane.xlu1 %4378  ;;  %v4364_v59 = vpop.xlane.xlu0 %4363 }
0x371a   :  { %v4380_v62 = vcvt.f32.s32 %v4379_v53  ;;  %v4365_v12 = vcvt.f32.s32 %v4364_v59 }
0x371c   :  { %v4383_v51 = vadd.s32 %v4382_v41, %v4380_v62  ;;  %v4368_v21 = vadd.s32 %v4367_v4, %v4365_v12 }
0x371e   :  { %v4716_v34 = vrot.slane %v4383_v51, %v6964_v38  ;;  %v4712_v57 = vrot.slane %v4368_v21, %v6964_v38  ;;  %v4191_v21 = vcvt.s32.f32 %v4189_v17  ;;  %v3985_v17 = vsel %vm3974_vm7, %v3983_v39, 2147483647 }
0x3720   :  { %v4699_v35 = vpop.xlane.xlu1 %4698  ;;  %v4701_v28 = vpop.xlane.xlu0 %4700  ;;  %v4717_v36 = vsel %vm4050_vm9, %v4716_v34, %v4712_v57  ;;  %v4083_v34 = vsel %vm3974_vm7, %v4081_v37, 2147483647  ;;  %v4098_v57 = vsel %vm3974_vm7, %v4082_v42, 2147483647 }
0x3721   :  { %v4703_v8 = vcvt.f32.s32 %v4701_v28  ;;  %v4702_v46 = vcvt.f32.s32 %v4699_v35  ;;  %v4176_v35 = vcvt.s32.f32 %v4174_v1  ;;  %v4099_v18 = vand.u32 65535, %v4098_v57 }
0x3723   :  { %v4704_v0 = vshll.u32 %v4703_v8, 16 }
0x3724   :  { %v4284_v9 = vpop.xlane.xlu1 %4283  ;;  %v4269_v61 = vpop.xlane.xlu0 %4268 }
0x3725   :  { %v4705_v29 = vadd.s32 %v4704_v0, %v4702_v46  ;;  %vm4285_vm11 = vcmp.eq.f32.partialorder %v4282_v45, %v4284_v9  ;;  %vm4270_vm12 = vcmp.eq.f32.partialorder %v4267_v31, %v4269_v61  ;;  %v4290_v50 = vcvt.f32.s32 %v4284_v9 }
0x3726   :  { %v4286_v55 = vsel %vm4285_vm11, %v4281_v43, inf  ;;  %v4271_v60 = vsel %vm4270_vm12, %v4266_v44, inf  ;;  %v4275_v16 = vcvt.f32.s32 %v4269_v61  ;;  %v4100_v44 = vshra.s32 %v4098_v57, 16 }
0x3727   :  { %v4707_v7 = vsel %vm4706_vm8, %v4705_v29, %v4681_v63  ;;  %vm4708_vm13 = vcmp.eq.s32.totalorder %v6880_v22, %v4705_v29  ;;  %4287 = vmin.xlane.f32.xlu1 %v4286_v55  ;;  %4272 = vmin.xlane.f32.xlu0 %v4271_v60  ;;  %v4177_v63 = vcvt.s32.f32 %v4175_v20  ;;  %v4291_v30 = vshll.u32 %v4290_v50, 16 }
0x3728   :  { %v4718_v32 = vsel %vm4708_vm13, %v4717_v36, 0  ;;  %v4276_v14 = vshll.u32 %v4275_v16, 16  ;;  %v4085_v29 = vshra.s32 %v4083_v34, 16  ;;  %v4102_v58 = vcvt.s32.f32 %v4100_v44 }
0x3729   :  { %v4719_v3 = vsel %vm4600_vm10, %v4718_v32, 0  ;;  %v4084_v20 = vand.u32 65535, %v4083_v34  ;;  %vm4758_vm8 = vcmp.eq.s32.totalorder %v6880_v22, 3 }
0x372a   :  { %v4720_v10 = vand.u32 65535, %v4719_v3  ;;  %v4721_v19 = vshrl.u32 %v4719_v3, 16  ;;  %v4087_v25 = vcvt.s32.f32 %v4085_v29 }
0x372c   :  { %v4722_v56 = vcvt.s32.f32 %v4720_v10  ;;  %v4723_v27 = vcvt.s32.f32 %v4721_v19 }
0x372e   :  { %4724 = vadd.xlane.f32.xlu1 %v4722_v56  ;;  %4726 = vadd.xlane.f32.xlu0 %v4723_v27 }
0x3732   :  { %4193 = vmin.xlane.f32.xlu1 %v4192_v13  ;;  %4178 = vmin.xlane.f32.xlu0 %v4177_v63 }
0x37b0   :  { %v4288_v11 = vpop.xlane.xlu1 %4287  ;;  %v4273_v40 = vpop.xlane.xlu0 %4272 }
0x37b1   :  { %v4289_v52 = vcvt.f32.s32 %v4288_v11  ;;  %v4274_v5 = vcvt.f32.s32 %v4273_v40 }
0x37b3   :  { %v4292_v26 = vadd.s32 %v4291_v30, %v4289_v52  ;;  %v4277_v23 = vadd.s32 %v4276_v14, %v4274_v5  ;;  %v4101_v5 = vcvt.s32.f32 %v4099_v18  ;;  %v4086_v30 = vcvt.s32.f32 %v4084_v20 }
0x37b5   :  { %v4742_v59 = vrot.slane %v4292_v26, %v6964_v38  ;;  %v4738_v62 = vrot.slane %v4277_v23, %v6964_v38 }
0x37b7   :  { %v4725_v45 = vpop.xlane.xlu1 %4724  ;;  %v4727_v31 = vpop.xlane.xlu0 %4726  ;;  %v4743_v15 = vsel %vm4050_vm9, %v4742_v59, %v4738_v62 }
0x37b8   :  { %v4729_v53 = vcvt.f32.s32 %v4727_v31  ;;  %v4728_v12 = vcvt.f32.s32 %v4725_v45  ;;  %v4000_v31 = vsel %vm3974_vm7, %v3984_v33, 2147483647  ;;  %vm4784_vm7 = vcmp.eq.s32.totalorder %v6880_v22, 2 }
0x37ba   :  { %v4730_v41 = vshll.u32 %v4729_v53, 16 }
0x37bb   :  { %v4194_v4 = vpop.xlane.xlu1 %4193  ;;  %v4179_v51 = vpop.xlane.xlu0 %4178 }
0x37bc   :  { %v4731_v28 = vadd.s32 %v4730_v41, %v4728_v12  ;;  %vm4195_vm1 = vcmp.eq.f32.partialorder %v4192_v13, %v4194_v4  ;;  %vm4180_vm2 = vcmp.eq.f32.partialorder %v4177_v63, %v4179_v51  ;;  %v4200_v55 = vcvt.f32.s32 %v4194_v4 }
0x37bd   :  { %v4196_v54 = vsel %vm4195_vm1, %v4191_v21, inf  ;;  %v4181_v6 = vsel %vm4180_vm2, %v4176_v35, inf  ;;  %v4185_v60 = vcvt.f32.s32 %v4179_v51  ;;  %v4002_v41 = vshra.s32 %v4000_v31, 16 }
0x37be   :  { %v4733_v49 = vsel %vm4732_vm0, %v4731_v28, %v4707_v7  ;;  %vm4734_vm3 = vcmp.eq.s32.totalorder %v6880_v22, %v4731_v28  ;;  %4197 = vmin.xlane.f32.xlu1 %v4196_v54  ;;  %4182 = vmin.xlane.f32.xlu0 %v4181_v6  ;;  %v4201_v48 = vshll.u32 %v4200_v55, 16  ;;  %v3987_v4 = vshra.s32 %v3985_v17, 16 }
0x37bf   :  { %v4744_v8 = vsel %vm4734_vm3, %v4743_v15, 0  ;;  %v4186_v3 = vshll.u32 %v4185_v60, 16  ;;  %v4004_v51 = vcvt.s32.f32 %v4002_v41  ;;  %vm4810_vm1 = vcmp.eq.s32.totalorder %v6880_v22, 1 }
0x37c0   :  { %v4745_v46 = vsel %vm4600_vm10, %v4744_v8, 0  ;;  %v3989_v21 = vcvt.s32.f32 %v3987_v4 }
0x37c1   :  { %v4746_v0 = vand.u32 65535, %v4745_v46  ;;  %v4747_v9 = vshrl.u32 %v4745_v46, 16 }
0x37c3   :  { %v4748_v61 = vcvt.s32.f32 %v4746_v0  ;;  %v4749_v43 = vcvt.s32.f32 %v4747_v9  ;;  %v4001_v0 = vand.u32 65535, %v4000_v31  ;;  %v3986_v9 = vand.u32 65535, %v3985_v17 }
0x37c5   :  { %4750 = vadd.xlane.f32.xlu1 %v4748_v61  ;;  %4752 = vadd.xlane.f32.xlu0 %v4749_v43  ;;  %v4003_v60 = vcvt.s32.f32 %v4001_v0 }
0x37c9   :  { %4103 = vmin.xlane.f32.xlu1 %v4102_v58  ;;  %4088 = vmin.xlane.f32.xlu0 %v4087_v25 }
0x3847   :  { %v4198_v36 = vpop.xlane.xlu1 %4197  ;;  %v4183_v7 = vpop.xlane.xlu0 %4182 }
0x3848   :  { %v4199_v32 = vcvt.f32.s32 %v4198_v36  ;;  %v4184_v2 = vcvt.f32.s32 %v4183_v7  ;;  %v3988_v36 = vcvt.s32.f32 %v3986_v9 }
0x384a   :  { %v4202_v10 = vadd.s32 %v4201_v48, %v4199_v32  ;;  %v4187_v19 = vadd.s32 %v4186_v3, %v4184_v2 }
0x384c   :  { %v4768_v63 = vrot.slane %v4202_v10, %v6964_v38  ;;  %v4764_v50 = vrot.slane %v4187_v19, %v6964_v38 }
0x384e   :  { %v4751_v56 = vpop.xlane.xlu1 %4750  ;;  %v4753_v27 = vpop.xlane.xlu0 %4752  ;;  %v4769_v26 = vsel %vm4050_vm9, %v4768_v63, %v4764_v50 }
0x384f   :  { %v4755_v13 = vcvt.f32.s32 %v4753_v27  ;;  %v4754_v16 = vcvt.f32.s32 %v4751_v56 }
0x3851   :  { %v4756_v11 = vshll.u32 %v4755_v13, 16 }
0x3852   :  { %v4104_v40 = vpop.xlane.xlu1 %4103  ;;  %v4089_v52 = vpop.xlane.xlu0 %4088 }
0x3853   :  { %v4757_v14 = vadd.s32 %v4756_v11, %v4754_v16  ;;  %vm4105_vm11 = vcmp.eq.f32.partialorder %v4102_v58, %v4104_v40  ;;  %vm4090_vm12 = vcmp.eq.f32.partialorder %v4087_v25, %v4089_v52  ;;  %v4110_v35 = vcvt.f32.s32 %v4104_v40 }
0x3854   :  { %v4106_v47 = vsel %vm4105_vm11, %v4101_v5, inf  ;;  %v4091_v24 = vsel %vm4090_vm12, %v4086_v30, inf  ;;  %v4095_v28 = vcvt.f32.s32 %v4089_v52 }
0x3855   :  { %v4759_v23 = vsel %vm4758_vm8, %v4757_v14, %v4733_v49  ;;  %vm4760_vm13 = vcmp.eq.s32.totalorder %v6880_v22, %v4757_v14  ;;  %4107 = vmin.xlane.f32.xlu1 %v4106_v47  ;;  %4092 = vmin.xlane.f32.xlu0 %v4091_v24  ;;  %v4111_v15 = vshll.u32 %v4110_v35, 16 }
0x3856   :  { %v4770_v45 = vsel %vm4760_vm13, %v4769_v26, 0  ;;  %v4096_v49 = vshll.u32 %v4095_v28, 16 }
0x3857   :  { %v4771_v1 = vsel %vm4600_vm10, %v4770_v45, 0 }
0x3858   :  { %v4772_v53 = vand.u32 65535, %v4771_v1  ;;  %v4773_v59 = vshrl.u32 %v4771_v1, 16 }
0x385a   :  { %v4774_v62 = vcvt.s32.f32 %v4772_v53  ;;  %v4775_v12 = vcvt.s32.f32 %v4773_v59 }
0x385c   :  { %4776 = vadd.xlane.f32.xlu1 %v4774_v62  ;;  %4778 = vadd.xlane.f32.xlu0 %v4775_v12 }
0x3860   :  { %4005 = vmin.xlane.f32.xlu1 %v4004_v51  ;;  %3990 = vmin.xlane.f32.xlu0 %v3989_v21 }
0x38de   :  { %v4108_v37 = vpop.xlane.xlu1 %4107  ;;  %v4093_v42 = vpop.xlane.xlu0 %4092 }
0x38df   :  { %v4109_v54 = vcvt.f32.s32 %v4108_v37  ;;  %v4094_v6 = vcvt.f32.s32 %v4093_v42 }
0x38e1   :  { %v4112_v8 = vadd.s32 %v4111_v15, %v4109_v54  ;;  %v4097_v34 = vadd.s32 %v4096_v49, %v4094_v6 }
0x38e3   :  { %v4794_v43 = vrot.slane %v4112_v8, %v6964_v38  ;;  %v4790_v44 = vrot.slane %v4097_v34, %v6964_v38 }
0x38e5   :  { %v4777_v57 = vpop.xlane.xlu1 %4776  ;;  %v4779_v46 = vpop.xlane.xlu0 %4778  ;;  %v4795_v48 = vsel %vm4050_vm9, %v4794_v43, %v4790_v44 }
0x38e6   :  { %v4781_v61 = vcvt.f32.s32 %v4779_v46  ;;  %v4780_v29 = vcvt.f32.s32 %v4777_v57 }
0x38e8   :  { %v4782_v58 = vshll.u32 %v4781_v61, 16 }
0x38e9   :  { %v4006_v25 = vpop.xlane.xlu1 %4005  ;;  %v3991_v55 = vpop.xlane.xlu0 %3990 }
0x38ea   :  { %v4783_v7 = vadd.s32 %v4782_v58, %v4780_v29  ;;  %vm4007_vm14 = vcmp.eq.f32.partialorder %v4004_v51, %v4006_v25  ;;  %vm3992_vm15 = vcmp.eq.f32.partialorder %v3989_v21, %v3991_v55  ;;  %v4012_v13 = vcvt.f32.s32 %v4006_v25 }
0x38eb   :  { %v4008_v32 = vsel %vm4007_vm14, %v4003_v60, inf  ;;  %v3993_v2 = vsel %vm3992_vm15, %v3988_v36, inf  ;;  %v3997_v63 = vcvt.f32.s32 %v3991_v55 }
0x38ec   :  { %v4785_v3 = vsel %vm4784_vm7, %v4783_v7, %v4759_v23  ;;  %vm4786_vm0 = vcmp.eq.s32.totalorder %v6880_v22, %v4783_v7  ;;  %4009 = vmin.xlane.f32.xlu1 %v4008_v32  ;;  %3994 = vmin.xlane.f32.xlu0 %v3993_v2  ;;  %v4013_v52 = vshll.u32 %v4012_v13, 16 }
0x38ed   :  { %v4796_v10 = vsel %vm4786_vm0, %v4795_v48, 0  ;;  %v3998_v5 = vshll.u32 %v3997_v63, 16 }
0x38ee   :  { %v4797_v19 = vsel %vm4600_vm10, %v4796_v10, 0 }
0x38ef   :  { %v4798_v56 = vand.u32 65535, %v4797_v19  ;;  %v4799_v27 = vshrl.u32 %v4797_v19, 16 }
0x38f1   :  { %v4800_v18 = vcvt.s32.f32 %v4798_v56  ;;  %v4801_v20 = vcvt.s32.f32 %v4799_v27 }
0x38f3   :  { %4802 = vadd.xlane.f32.xlu1 %v4800_v18  ;;  %4804 = vadd.xlane.f32.xlu0 %v4801_v20 }
0x3975   :  { %v4010_v50 = vpop.xlane.xlu1 %4009  ;;  %v3995_v16 = vpop.xlane.xlu0 %3994 }
0x3976   :  { %v4011_v11 = vcvt.f32.s32 %v4010_v50  ;;  %v3996_v40 = vcvt.f32.s32 %v3995_v16 }
0x3978   :  { %v4014_v30 = vadd.s32 %v4013_v52, %v4011_v11  ;;  %v3999_v14 = vadd.s32 %v3998_v5, %v3996_v40 }
0x397a   :  { %v4820_v24 = vrot.slane %v4014_v30, %v6964_v38  ;;  %v4816_v26 = vrot.slane %v3999_v14, %v6964_v38 }
0x397c   :  { %v4803_v33 = vpop.xlane.xlu1 %4802  ;;  %v4805_v39 = vpop.xlane.xlu0 %4804  ;;  %v4821_v17 = vsel %vm4050_vm9, %v4820_v24, %v4816_v26 }
0x397d   :  { %v4807_v47 = vcvt.f32.s32 %v4805_v39  ;;  %v4806_v23 = vcvt.f32.s32 %v4803_v33 }
0x397f   :  { %v4808_v45 = vshll.u32 %v4807_v47, 16 }
0x3981   :  { %v4809_v31 = vadd.s32 %v4808_v45, %v4806_v23 }
0x3983   :  { %vm4812_vm2 = vcmp.eq.s32.totalorder %v6880_v22, %v4809_v31  ;;  %v4811_v1 = vsel %vm4810_vm1, %v4809_v31, %v4785_v3 }
0x3984   :  { %v4822_v53 = vsel %vm4812_vm2, %v4821_v17, 0 }
0x3985   :  { %v4823_v59 = vsel %vm4600_vm10, %v4822_v53, 0 }
0x3986   :  { %v4825_v62 = vshrl.u32 %v4823_v59, 16  ;;  %v4824_v12 = vand.u32 65535, %v4823_v59 }
0x3988   :  { %v4827_v41 = vcvt.s32.f32 %v4825_v62  ;;  %v4826_v4 = vcvt.s32.f32 %v4824_v12 }
0x398a   :  { %4830 = vadd.xlane.f32.xlu0 %v4827_v41  ;;  %4828 = vadd.xlane.f32.xlu1 %v4826_v4 }
0x3a13   :  { %v4831_v38 = vpop.xlane.xlu0 %4830  ;;  %v4829_v51 = vpop.xlane.xlu1 %4828 }
0x3a14   :  { %v4833_v21 = vcvt.f32.s32 %v4831_v38  ;;  %v4832_v28 = vcvt.f32.s32 %v4829_v51 }
0x3a16   :  { %v4834_v35 = vshll.u32 %v4833_v21, 16 }
0x3a18   :  { %v4835_v37 = vadd.s32 %v4834_v35, %v4832_v28 }
0x3a1a   :  { %v4836_v42 = vsel %vm3937_vm6, %v4835_v37, %v4811_v1 }
0x3a1b   :  { %4837 = vst.msk [vmem:[#allocation11] sm:$0x3] %vm4600_vm10, %v4836_v42 }
0x3a1c   :  { %5865 = shalt.err (!%p5862_p1)
}
0x3a1d   :  { %4849 = dma.vmem_to_hbm [thread:$0]  %s4847_s18, 32, %s7199_s13, [#allocation4]  }
0x3a1e   :  { %5880 = dma.done.wait [#allocation4], 32  }
0x3a1f   :  { %5881 = vsyncadd [#allocation4], 4294967264 }
0x3a20   :  { %4855 = vsyncpa [#allocation3], 1 }
0x3a21   :  { %4856 = vsyncpa [#allocation6], 1 }
0x3a22   :  { %4857 = vsyncpa [#allocation9], 1 }
0x3a23   :  { %4858 = vsyncpa [#allocation4], 1 }

</bundles_post_ra>
